<compile_context>
chip_gen: v7x
topology: tpu7x:2x2x1
jax: 0.10.0
libtpu: 0.0.40
codegen_flags: <defaults>
</compile_context>

<pallas_src>
import jax
import jax.numpy as jnp
from jax import lax
from jax.experimental import pallas as pl
from jax.experimental.pallas import tpu as pltpu


_VMEM_LIMIT_BYTES = 48 * 1024 * 1024     # conservative for v7x (64 MiB physical VMEM)
_VMEM_BLOCK_BUDGET = 24 * 1024 * 1024    # target per-step footprint for tile sizing


def _interp_matrix_align_corners(n_out, n_in):
    """1-D bilinear interpolation matrix (align_corners=True), shape (n_out, n_in)."""
    if n_out == n_in:
        return jnp.eye(n_out, dtype=jnp.float32)
    if n_in == 1:
        return jnp.ones((n_out, 1), dtype=jnp.float32)
    pos = jnp.arange(n_out, dtype=jnp.float32) * ((n_in - 1) / max(n_out - 1, 1))
    lo = jnp.clip(jnp.floor(pos).astype(jnp.int32), 0, n_in - 2)
    frac = pos - lo.astype(jnp.float32)
    rows = jnp.arange(n_out)
    m = jnp.zeros((n_out, n_in), dtype=jnp.float32)
    m = m.at[rows, lo].add(1.0 - frac)
    m = m.at[rows, lo + 1].add(frac)
    return m


def _padded_bytes(shape, bytes_per_elt=4):
    """f32 VMEM bytes of `shape` after (8, 128) tile padding of the last two dims."""
    s = list(shape)
    if len(s) >= 1:
        s[-1] = -(-s[-1] // 128) * 128
    if len(s) >= 2:
        s[-2] = -(-s[-2] // 8) * 8
    n = 1
    for d in s:
        n *= d
    return n * bytes_per_elt


def _choose_h_tile(hout, cin, cout, hin, win, wout, budget_bytes):
    """Largest output-row tile (full Hout, else a multiple-of-8 divisor) whose
    estimated per-step VMEM footprint (double-buffered blocks + temporaries)
    fits the budget (sized for v7x's smaller VMEM)."""
    def footprint(ht):
        blocks = (_padded_bytes((cin * hin, win))        # x block
                  + _padded_bytes((win, 3 * wout))       # folded width interp
                  + _padded_bytes((3 * ht, hin))         # folded height interp block
                  + _padded_bytes((cout, ht, wout)))     # output block
        temps = (_padded_bytes((cin * hin, 3 * wout))    # U
                 + _padded_bytes((3 * ht, wout))         # per-(c,kw) tap planes
                 + cout * _padded_bytes((ht, wout)))     # accumulators
        return 2 * blocks + temps                        # x2: pipeline double-buffering
    cands = [hout] + sorted((d for d in range(8, hout, 8) if hout % d == 0),
                            reverse=True)
    for ht in cands:
        if footprint(ht) <= budget_bytes:
            return ht
    return cands[-1]


def _pick_dimension_semantics():
    """CORE_PARALLEL on the batch axis for v7x-class parts (2 TensorCores/chip);
    plain PARALLEL elsewhere (v5e/v6e have a single TensorCore)."""
    try:
        kind = jax.devices()[0].device_kind.lower()
    except Exception:
        kind = ""
    if "7" in kind:
        return (pltpu.CORE_PARALLEL, pltpu.PARALLEL)
    return (pltpu.PARALLEL, pltpu.PARALLEL)


def _upsample_conv3x3_bn_relu_kernel(x_ref, awT_ref, ah_ref, w_ref, shift_ref, o_ref):
    # x_ref:     (1, Cin*Hin, Win)    VMEM: one image, channels+rows stacked on M
    # awT_ref:   (Win, 3*Wout)        VMEM: width interp; conv kw taps + zero pad folded
    # ah_ref:    (3*H_tile, Hin)      VMEM: height interp rows for this H tile,
    #                                  conv kh taps + zero pad folded; rows = (kh, i)
    # w_ref:     (Cout*Cin*9,)        SMEM: BN-scale-folded conv weights, order [o,c,kw,kh]
    # shift_ref: (Cout,)              SMEM: folded BN shift
    # o_ref:     (1, Cout, H_tile, Wout)
    hin = ah_ref.shape[1]
    cin = x_ref.shape[1] // hin
    cout, h_tile, wout = o_ref.shape[1], o_ref.shape[2], o_ref.shape[3]

    # ---- Stage 1: width interp + kw taps, ONE MXU matmul for all channels/rows.
    # u[c*Hin + p, kw*Wout + j] = sum_q x[c, p, q] * A_w_pad[kw + j, q]
    u = jnp.dot(x_ref[0], awT_ref[...], preferred_element_type=jnp.float32)

    ah = ah_ref[...]                                   # (3*H_tile, Hin), rows (kh, i)

    # ---- Stages 2+3: height interp (+kh taps) on the MXU, channel mix on the VPU.
    accs = [jnp.full((h_tile, wout), shift_ref[o], dtype=jnp.float32)
            for o in range(cout)]
    for c in range(cin):
        for kw in range(3):
            # Tiny pre-upsample-sized block of U (static slice).
            ublk = u[c * hin:(c + 1) * hin, kw * wout:(kw + 1) * wout]
            # All three kh tap-planes for this (c, kw) in one MXU matmul; the
            # result rows are consumed contiguously -> no misaligned plane slices.
            taps = jnp.dot(ah, ublk, preferred_element_type=jnp.float32)
            t = [taps[kh * h_tile:(kh + 1) * h_tile, :] for kh in range(3)]
            # Channel mixing as VPU broadcast-FMAs (C is tiny here).
            for o in range(cout):
                base = ((o * cin + c) * 3 + kw) * 3
                accs[o] = (accs[o]
                           + w_ref[base + 0] * t[0]
                           + w_ref[base + 1] * t[1]
                           + w_ref[base + 2] * t[2])

    for o in range(cout):
        o_ref[0, o] = jnp.maximum(accs[o], 0.0).astype(o_ref.dtype)


def conv_upsample_forward(params, x, target, eps=1e-5):
    """Pallas equivalent of conv_upsample.forward(x, target), NCHW in/out."""
    n, cin, hin, win = x.shape
    hout, wout = target.shape[2], target.shape[3]
    w, gamma, beta, mean, var = (params["w"], params["gamma"], params["beta"],
                                 params["mean"], params["var"])
    cout = w.shape[0]

    # ---- grid-invariant prep, done ONCE in the wrapper ----
    scale = gamma / jnp.sqrt(var + eps)                        # (Cout,)
    shift = beta - mean * scale                                # (Cout,)
    w_eff = w * scale[:, None, None, None]                     # BN scale folded, [o,c,kh,kw]
    w_smem = jnp.transpose(w_eff, (0, 1, 3, 2)).reshape(-1)    # flat, order [o,c,kw,kh]

    # Bilinear (align_corners) interp matrices with the conv's zero padding folded
    # in as zero rows/cols, then the three conv taps folded in per axis.
    a_h_pad = jnp.zeros((hout + 2, hin), jnp.float32).at[1:hout + 1].set(
        _interp_matrix_align_corners(hout, hin))
    a_w_pad = jnp.zeros((wout + 2, win), jnp.float32).at[1:wout + 1].set(
        _interp_matrix_align_corners(wout, win))
    # (Win, 3*Wout): column block kw holds A_w_pad[kw : kw+Wout, :]^T
    awT_cat = jnp.concatenate([a_w_pad[kw:kw + wout, :].T for kw in range(3)], axis=1)

    h_tile = _choose_h_tile(hout, cin, cout, hin, win, wout, _VMEM_BLOCK_BUDGET)
    n_h = hout // h_tile
    # (n_h*3*h_tile, Hin): rows grouped (tile, kh, i) so the H-blocked BlockSpec hands
    # the kernel a ready-to-use (3*H_tile, Hin) operator (no in-kernel reshapes).
    ah_taps = jnp.stack([a_h_pad[kh:kh + hout, :] for kh in range(3)], axis=0)
    ah2d = (ah_taps.reshape(3, n_h, h_tile, hin)
            .transpose(1, 0, 2, 3)
            .reshape(n_h * 3 * h_tile, hin))

    # Free, contiguous collapse in HBM: stacks channels+rows on the matmul M axis.
    x3 = x.reshape(n, cin * hin, win)

    grid = (n, n_h)

    def build(dim_sems):
        return pl.pallas_call(
            _upsample_conv3x3_bn_relu_kernel,
            out_shape=jax.ShapeDtypeStruct((n, cout, hout, wout), x.dtype),
            grid_spec=pltpu.PrefetchScalarGridSpec(
                num_scalar_prefetch=0,
                grid=grid,
                in_specs=[
                    pl.BlockSpec((1, cin * hin, win), lambda b, h: (b, 0, 0)),
                    pl.BlockSpec((win, 3 * wout), lambda b, h: (0, 0)),
                    pl.BlockSpec((3 * h_tile, hin), lambda b, h: (h, 0)),
                    pl.BlockSpec(memory_space=pltpu.MemorySpace.SMEM),   # folded weights
                    pl.BlockSpec(memory_space=pltpu.MemorySpace.SMEM),   # folded BN shift
                ],
                out_specs=pl.BlockSpec((1, cout, h_tile, wout),
                                       lambda b, h: (b, 0, h, 0)),
            ),
            compiler_params=pltpu.CompilerParams(
                dimension_semantics=dim_sems,
                vmem_limit_bytes=_VMEM_LIMIT_BYTES),
        )

    args = (x3, awT_cat, ah2d, w_smem, shift)
    dim_sems = _pick_dimension_semantics()
    if dim_sems[0] == pltpu.CORE_PARALLEL:
        # Conservative fallback: if core_parallel is rejected on this part, use
        # plain parallel (identical kernel, identical results).
        try:
            return jax.block_until_ready(build(dim_sems)(*args))
        except Exception:
            dim_sems = (pltpu.PARALLEL, pltpu.PARALLEL)
    return build(dim_sems)(*args)


def make_conv_upsample_params(key, channel):
    """Mirror conv_upsample.__init__ / BasicConv2d: 3x3 conv weight ~ N(0, 0.01^2),
    no bias; BatchNorm gamma=1, beta=0 with inference running stats."""
    w = 0.01 * jax.random.normal(key, (channel, channel, 3, 3), dtype=jnp.float32)
    return {
        "w": w,                                        # (Cout, Cin, 3, 3), OIHW
        "gamma": jnp.ones((channel,), jnp.float32),
        "beta": jnp.zeros((channel,), jnp.float32),
        "mean": jnp.zeros((channel,), jnp.float32),
        "var": jnp.ones((channel,), jnp.float32),
    }


if __name__ == "__main__":
    channel = 4
    n = 2
    hin, win = 8, 8        # low-res input
    hout, wout = 16, 16    # target spatial size -> exercises the upsample path

    key = jax.random.PRNGKey(0)
    kparam, kx, kt = jax.random.split(key, 3)
    params = make_conv_upsample_params(kparam, channel)

    x = jax.random.normal(kx, (n, channel, hin, win), dtype=jnp.float32)
    target = jax.random.normal(kt, (n, channel, hout, wout), dtype=jnp.float32)

    y = conv_upsample_forward(params, x, target)
    y = jax.block_until_ready(y)
    assert y.shape == (n, channel, hout, wout)

    # ---- pure-JAX reference: bilinear(align_corners=True) -> conv3x3(pad=1) -> BN -> ReLU ----
    a_h = _interp_matrix_align_corners(hout, hin)
    a_w = _interp_matrix_align_corners(wout, win)
    x_up = jnp.einsum("Hh,nchw,Ww->ncHW", a_h, x, a_w)
    y_ref = lax.conv_general_dilated(
        x_up, params["w"], window_strides=(1, 1), padding=((1, 1), (1, 1)),
        dimension_numbers=("NCHW", "OIHW", "NCHW"))
    scale = params["gamma"] / jnp.sqrt(params["var"] + 1e-5)
    shift = params["beta"] - params["mean"] * scale
    y_ref = jnp.maximum(y_ref * scale[None, :, None, None] + shift[None, :, None, None], 0.0)

    max_err = jnp.max(jnp.abs(y - y_ref))
    assert jnp.allclose(y, y_ref, atol=5e-3), f"mismatch vs reference, max err {max_err}"

    print("KERNEL_OK")
</pallas_src>

<mosaic_0001>
module attributes {stable_mosaic.version = 11 : i64} {
  func.func @_upsample_conv3x3_bn_relu_kernel(%arg0: i32, %arg1: i32, %arg2: memref<1x32x8xf32, #tpu.memory_space<vmem>>, %arg3: memref<8x48xf32, #tpu.memory_space<vmem>>, %arg4: memref<48x8xf32, #tpu.memory_space<vmem>>, %arg5: memref<144xf32, #tpu.memory_space<smem>>, %arg6: memref<4xf32, #tpu.memory_space<smem>>, %arg7: memref<1x4x16x16xf32, #tpu.memory_space<vmem>>) attributes {dimension_semantics = [#tpu.dimension_semantics<parallel>, #tpu.dimension_semantics<parallel>], iteration_bounds = array<i64: 2, 1>, scalar_prefetch = 0 : i64, scratch_operands = 0 : i64, tpu.core_type = #tpu.core_type<tc>, window_params = [{transform_indices = @transform_0, window_bounds = array<i64: 1, 32, 8>}, {pipeline_mode = #tpu.pipeline_mode<synchronous>, transform_indices = @transform_1, window_bounds = array<i64: 8, 48>}, {transform_indices = @transform_2, window_bounds = array<i64: 48, 8>}, {transform_indices = @transform_3, window_bounds = array<i64: 144>}, {transform_indices = @transform_4, window_bounds = array<i64: 4>}, {transform_indices = @transform_5, window_bounds = array<i64: 1, 4, 16, 16>}]} {
    %c0 = arith.constant 0 : index
    %c0_0 = arith.constant 0 : index
    %c0_1 = arith.constant 0 : index
    %0 = vector.load %arg2[%c0, %c0_0, %c0_1] : memref<1x32x8xf32, #tpu.memory_space<vmem>>, vector<1x32x8xf32>
    %1 = vector.shape_cast %0 : vector<1x32x8xf32> to vector<32x8xf32>
    %c0_2 = arith.constant 0 : index
    %c0_3 = arith.constant 0 : index
    %2 = vector.load %arg3[%c0_2, %c0_3] : memref<8x48xf32, #tpu.memory_space<vmem>>, vector<8x48xf32>
    %cst = arith.constant dense<0.000000e+00> : vector<32x48xf32>
    %3 = tpu.matmul %1, %2, %cst {dimension_numbers = #tpu.dot_dimension_numbers<[1], [0], [0], [1], [0, 0, 1, 1], [], []>} : vector<32x8xf32>, vector<8x48xf32>, vector<32x48xf32> -> vector<32x48xf32>
    %c0_4 = arith.constant 0 : index
    %c0_5 = arith.constant 0 : index
    %4 = vector.load %arg4[%c0_4, %c0_5] : memref<48x8xf32, #tpu.memory_space<vmem>>, vector<48x8xf32>
    %c0_6 = arith.constant 0 : index
    %5 = memref.load %arg6[%c0_6] : memref<4xf32, #tpu.memory_space<smem>>
    %6 = vector.broadcast %5 : f32 to vector<16x16xf32>
    %c1 = arith.constant 1 : index
    %7 = memref.load %arg6[%c1] : memref<4xf32, #tpu.memory_space<smem>>
    %8 = vector.broadcast %7 : f32 to vector<16x16xf32>
    %c2 = arith.constant 2 : index
    %9 = memref.load %arg6[%c2] : memref<4xf32, #tpu.memory_space<smem>>
    %10 = vector.broadcast %9 : f32 to vector<16x16xf32>
    %c3 = arith.constant 3 : index
    %11 = memref.load %arg6[%c3] : memref<4xf32, #tpu.memory_space<smem>>
    %12 = vector.broadcast %11 : f32 to vector<16x16xf32>
    %13 = vector.extract_strided_slice %3 {offsets = [0, 0], sizes = [8, 16], strides = [1, 1]} : vector<32x48xf32> to vector<8x16xf32>
    %cst_7 = arith.constant dense<0.000000e+00> : vector<48x16xf32>
    %14 = tpu.matmul %4, %13, %cst_7 {dimension_numbers = #tpu.dot_dimension_numbers<[1], [0], [0], [1], [0, 0, 1, 1], [], []>} : vector<48x8xf32>, vector<8x16xf32>, vector<48x16xf32> -> vector<48x16xf32>
    %15 = vector.extract_strided_slice %14 {offsets = [0, 0], sizes = [16, 16], strides = [1, 1]} : vector<48x16xf32> to vector<16x16xf32>
    %16 = vector.extract_strided_slice %14 {offsets = [16, 0], sizes = [16, 16], strides = [1, 1]} : vector<48x16xf32> to vector<16x16xf32>
    %17 = vector.extract_strided_slice %14 {offsets = [32, 0], sizes = [16, 16], strides = [1, 1]} : vector<48x16xf32> to vector<16x16xf32>
    %c0_8 = arith.constant 0 : index
    %18 = memref.load %arg5[%c0_8] : memref<144xf32, #tpu.memory_space<smem>>
    %19 = vector.broadcast %18 : f32 to vector<16x16xf32>
    %20 = arith.mulf %19, %15 : vector<16x16xf32>
    %21 = arith.addf %6, %20 : vector<16x16xf32>
    %c1_9 = arith.constant 1 : index
    %22 = memref.load %arg5[%c1_9] : memref<144xf32, #tpu.memory_space<smem>>
    %23 = vector.broadcast %22 : f32 to vector<16x16xf32>
    %24 = arith.mulf %23, %16 : vector<16x16xf32>
    %25 = arith.addf %21, %24 : vector<16x16xf32>
    %c2_10 = arith.constant 2 : index
    %26 = memref.load %arg5[%c2_10] : memref<144xf32, #tpu.memory_space<smem>>
    %27 = vector.broadcast %26 : f32 to vector<16x16xf32>
    %28 = arith.mulf %27, %17 : vector<16x16xf32>
    %29 = arith.addf %25, %28 : vector<16x16xf32>
    %c36 = arith.constant 36 : index
    %30 = memref.load %arg5[%c36] : memref<144xf32, #tpu.memory_space<smem>>
    %31 = vector.broadcast %30 : f32 to vector<16x16xf32>
    %32 = arith.mulf %31, %15 : vector<16x16xf32>
    %33 = arith.addf %8, %32 : vector<16x16xf32>
    %c37 = arith.constant 37 : index
    %34 = memref.load %arg5[%c37] : memref<144xf32, #tpu.memory_space<smem>>
    %35 = vector.broadcast %34 : f32 to vector<16x16xf32>
    %36 = arith.mulf %35, %16 : vector<16x16xf32>
    %37 = arith.addf %33, %36 : vector<16x16xf32>
    %c38 = arith.constant 38 : index
    %38 = memref.load %arg5[%c38] : memref<144xf32, #tpu.memory_space<smem>>
    %39 = vector.broadcast %38 : f32 to vector<16x16xf32>
    %40 = arith.mulf %39, %17 : vector<16x16xf32>
    %41 = arith.addf %37, %40 : vector<16x16xf32>
    %c72 = arith.constant 72 : index
    %42 = memref.load %arg5[%c72] : memref<144xf32, #tpu.memory_space<smem>>
    %43 = vector.broadcast %42 : f32 to vector<16x16xf32>
    %44 = arith.mulf %43, %15 : vector<16x16xf32>
    %45 = arith.addf %10, %44 : vector<16x16xf32>
    %c73 = arith.constant 73 : index
    %46 = memref.load %arg5[%c73] : memref<144xf32, #tpu.memory_space<smem>>
    %47 = vector.broadcast %46 : f32 to vector<16x16xf32>
    %48 = arith.mulf %47, %16 : vector<16x16xf32>
    %49 = arith.addf %45, %48 : vector<16x16xf32>
    %c74 = arith.constant 74 : index
    %50 = memref.load %arg5[%c74] : memref<144xf32, #tpu.memory_space<smem>>
    %51 = vector.broadcast %50 : f32 to vector<16x16xf32>
    %52 = arith.mulf %51, %17 : vector<16x16xf32>
    %53 = arith.addf %49, %52 : vector<16x16xf32>
    %c108 = arith.constant 108 : index
    %54 = memref.load %arg5[%c108] : memref<144xf32, #tpu.memory_space<smem>>
    %55 = vector.broadcast %54 : f32 to vector<16x16xf32>
    %56 = arith.mulf %55, %15 : vector<16x16xf32>
    %57 = arith.addf %12, %56 : vector<16x16xf32>
    %c109 = arith.constant 109 : index
    %58 = memref.load %arg5[%c109] : memref<144xf32, #tpu.memory_space<smem>>
    %59 = vector.broadcast %58 : f32 to vector<16x16xf32>
    %60 = arith.mulf %59, %16 : vector<16x16xf32>
    %61 = arith.addf %57, %60 : vector<16x16xf32>
    %c110 = arith.constant 110 : index
    %62 = memref.load %arg5[%c110] : memref<144xf32, #tpu.memory_space<smem>>
    %63 = vector.broadcast %62 : f32 to vector<16x16xf32>
    %64 = arith.mulf %63, %17 : vector<16x16xf32>
    %65 = arith.addf %61, %64 : vector<16x16xf32>
    %66 = vector.extract_strided_slice %3 {offsets = [0, 16], sizes = [8, 16], strides = [1, 1]} : vector<32x48xf32> to vector<8x16xf32>
    %cst_11 = arith.constant dense<0.000000e+00> : vector<48x16xf32>
    %67 = tpu.matmul %4, %66, %cst_11 {dimension_numbers = #tpu.dot_dimension_numbers<[1], [0], [0], [1], [0, 0, 1, 1], [], []>} : vector<48x8xf32>, vector<8x16xf32>, vector<48x16xf32> -> vector<48x16xf32>
    %68 = vector.extract_strided_slice %67 {offsets = [0, 0], sizes = [16, 16], strides = [1, 1]} : vector<48x16xf32> to vector<16x16xf32>
    %69 = vector.extract_strided_slice %67 {offsets = [16, 0], sizes = [16, 16], strides = [1, 1]} : vector<48x16xf32> to vector<16x16xf32>
    %70 = vector.extract_strided_slice %67 {offsets = [32, 0], sizes = [16, 16], strides = [1, 1]} : vector<48x16xf32> to vector<16x16xf32>
    %c3_12 = arith.constant 3 : index
    %71 = memref.load %arg5[%c3_12] : memref<144xf32, #tpu.memory_space<smem>>
    %72 = vector.broadcast %71 : f32 to vector<16x16xf32>
    %73 = arith.mulf %72, %68 : vector<16x16xf32>
    %74 = arith.addf %29, %73 : vector<16x16xf32>
    %c4 = arith.constant 4 : index
    %75 = memref.load %arg5[%c4] : memref<144xf32, #tpu.memory_space<smem>>
    %76 = vector.broadcast %75 : f32 to vector<16x16xf32>
    %77 = arith.mulf %76, %69 : vector<16x16xf32>
    %78 = arith.addf %74, %77 : vector<16x16xf32>
    %c5 = arith.constant 5 : index
    %79 = memref.load %arg5[%c5] : memref<144xf32, #tpu.memory_space<smem>>
    %80 = vector.broadcast %79 : f32 to vector<16x16xf32>
    %81 = arith.mulf %80, %70 : vector<16x16xf32>
    %82 = arith.addf %78, %81 : vector<16x16xf32>
    %c39 = arith.constant 39 : index
    %83 = memref.load %arg5[%c39] : memref<144xf32, #tpu.memory_space<smem>>
    %84 = vector.broadcast %83 : f32 to vector<16x16xf32>
    %85 = arith.mulf %84, %68 : vector<16x16xf32>
    %86 = arith.addf %41, %85 : vector<16x16xf32>
    %c40 = arith.constant 40 : index
    %87 = memref.load %arg5[%c40] : memref<144xf32, #tpu.memory_space<smem>>
    %88 = vector.broadcast %87 : f32 to vector<16x16xf32>
    %89 = arith.mulf %88, %69 : vector<16x16xf32>
    %90 = arith.addf %86, %89 : vector<16x16xf32>
    %c41 = arith.constant 41 : index
    %91 = memref.load %arg5[%c41] : memref<144xf32, #tpu.memory_space<smem>>
    %92 = vector.broadcast %91 : f32 to vector<16x16xf32>
    %93 = arith.mulf %92, %70 : vector<16x16xf32>
    %94 = arith.addf %90, %93 : vector<16x16xf32>
    %c75 = arith.constant 75 : index
    %95 = memref.load %arg5[%c75] : memref<144xf32, #tpu.memory_space<smem>>
    %96 = vector.broadcast %95 : f32 to vector<16x16xf32>
    %97 = arith.mulf %96, %68 : vector<16x16xf32>
    %98 = arith.addf %53, %97 : vector<16x16xf32>
    %c76 = arith.constant 76 : index
    %99 = memref.load %arg5[%c76] : memref<144xf32, #tpu.memory_space<smem>>
    %100 = vector.broadcast %99 : f32 to vector<16x16xf32>
    %101 = arith.mulf %100, %69 : vector<16x16xf32>
    %102 = arith.addf %98, %101 : vector<16x16xf32>
    %c77 = arith.constant 77 : index
    %103 = memref.load %arg5[%c77] : memref<144xf32, #tpu.memory_space<smem>>
    %104 = vector.broadcast %103 : f32 to vector<16x16xf32>
    %105 = arith.mulf %104, %70 : vector<16x16xf32>
    %106 = arith.addf %102, %105 : vector<16x16xf32>
    %c111 = arith.constant 111 : index
    %107 = memref.load %arg5[%c111] : memref<144xf32, #tpu.memory_space<smem>>
    %108 = vector.broadcast %107 : f32 to vector<16x16xf32>
    %109 = arith.mulf %108, %68 : vector<16x16xf32>
    %110 = arith.addf %65, %109 : vector<16x16xf32>
    %c112 = arith.constant 112 : index
    %111 = memref.load %arg5[%c112] : memref<144xf32, #tpu.memory_space<smem>>
    %112 = vector.broadcast %111 : f32 to vector<16x16xf32>
    %113 = arith.mulf %112, %69 : vector<16x16xf32>
    %114 = arith.addf %110, %113 : vector<16x16xf32>
    %c113 = arith.constant 113 : index
    %115 = memref.load %arg5[%c113] : memref<144xf32, #tpu.memory_space<smem>>
    %116 = vector.broadcast %115 : f32 to vector<16x16xf32>
    %117 = arith.mulf %116, %70 : vector<16x16xf32>
    %118 = arith.addf %114, %117 : vector<16x16xf32>
    %119 = vector.extract_strided_slice %3 {offsets = [0, 32], sizes = [8, 16], strides = [1, 1]} : vector<32x48xf32> to vector<8x16xf32>
    %cst_13 = arith.constant dense<0.000000e+00> : vector<48x16xf32>
    %120 = tpu.matmul %4, %119, %cst_13 {dimension_numbers = #tpu.dot_dimension_numbers<[1], [0], [0], [1], [0, 0, 1, 1], [], []>} : vector<48x8xf32>, vector<8x16xf32>, vector<48x16xf32> -> vector<48x16xf32>
    %121 = vector.extract_strided_slice %120 {offsets = [0, 0], sizes = [16, 16], strides = [1, 1]} : vector<48x16xf32> to vector<16x16xf32>
    %122 = vector.extract_strided_slice %120 {offsets = [16, 0], sizes = [16, 16], strides = [1, 1]} : vector<48x16xf32> to vector<16x16xf32>
    %123 = vector.extract_strided_slice %120 {offsets = [32, 0], sizes = [16, 16], strides = [1, 1]} : vector<48x16xf32> to vector<16x16xf32>
    %c6 = arith.constant 6 : index
    %124 = memref.load %arg5[%c6] : memref<144xf32, #tpu.memory_space<smem>>
    %125 = vector.broadcast %124 : f32 to vector<16x16xf32>
    %126 = arith.mulf %125, %121 : vector<16x16xf32>
    %127 = arith.addf %82, %126 : vector<16x16xf32>
    %c7 = arith.constant 7 : index
    %128 = memref.load %arg5[%c7] : memref<144xf32, #tpu.memory_space<smem>>
    %129 = vector.broadcast %128 : f32 to vector<16x16xf32>
    %130 = arith.mulf %129, %122 : vector<16x16xf32>
    %131 = arith.addf %127, %130 : vector<16x16xf32>
    %c8 = arith.constant 8 : index
    %132 = memref.load %arg5[%c8] : memref<144xf32, #tpu.memory_space<smem>>
    %133 = vector.broadcast %132 : f32 to vector<16x16xf32>
    %134 = arith.mulf %133, %123 : vector<16x16xf32>
    %135 = arith.addf %131, %134 : vector<16x16xf32>
    %c42 = arith.constant 42 : index
    %136 = memref.load %arg5[%c42] : memref<144xf32, #tpu.memory_space<smem>>
    %137 = vector.broadcast %136 : f32 to vector<16x16xf32>
    %138 = arith.mulf %137, %121 : vector<16x16xf32>
    %139 = arith.addf %94, %138 : vector<16x16xf32>
    %c43 = arith.constant 43 : index
    %140 = memref.load %arg5[%c43] : memref<144xf32, #tpu.memory_space<smem>>
    %141 = vector.broadcast %140 : f32 to vector<16x16xf32>
    %142 = arith.mulf %141, %122 : vector<16x16xf32>
    %143 = arith.addf %139, %142 : vector<16x16xf32>
    %c44 = arith.constant 44 : index
    %144 = memref.load %arg5[%c44] : memref<144xf32, #tpu.memory_space<smem>>
    %145 = vector.broadcast %144 : f32 to vector<16x16xf32>
    %146 = arith.mulf %145, %123 : vector<16x16xf32>
    %147 = arith.addf %143, %146 : vector<16x16xf32>
    %c78 = arith.constant 78 : index
    %148 = memref.load %arg5[%c78] : memref<144xf32, #tpu.memory_space<smem>>
    %149 = vector.broadcast %148 : f32 to vector<16x16xf32>
    %150 = arith.mulf %149, %121 : vector<16x16xf32>
    %151 = arith.addf %106, %150 : vector<16x16xf32>
    %c79 = arith.constant 79 : index
    %152 = memref.load %arg5[%c79] : memref<144xf32, #tpu.memory_space<smem>>
    %153 = vector.broadcast %152 : f32 to vector<16x16xf32>
    %154 = arith.mulf %153, %122 : vector<16x16xf32>
    %155 = arith.addf %151, %154 : vector<16x16xf32>
    %c80 = arith.constant 80 : index
    %156 = memref.load %arg5[%c80] : memref<144xf32, #tpu.memory_space<smem>>
    %157 = vector.broadcast %156 : f32 to vector<16x16xf32>
    %158 = arith.mulf %157, %123 : vector<16x16xf32>
    %159 = arith.addf %155, %158 : vector<16x16xf32>
    %c114 = arith.constant 114 : index
    %160 = memref.load %arg5[%c114] : memref<144xf32, #tpu.memory_space<smem>>
    %161 = vector.broadcast %160 : f32 to vector<16x16xf32>
    %162 = arith.mulf %161, %121 : vector<16x16xf32>
    %163 = arith.addf %118, %162 : vector<16x16xf32>
    %c115 = arith.constant 115 : index
    %164 = memref.load %arg5[%c115] : memref<144xf32, #tpu.memory_space<smem>>
    %165 = vector.broadcast %164 : f32 to vector<16x16xf32>
    %166 = arith.mulf %165, %122 : vector<16x16xf32>
    %167 = arith.addf %163, %166 : vector<16x16xf32>
    %c116 = arith.constant 116 : index
    %168 = memref.load %arg5[%c116] : memref<144xf32, #tpu.memory_space<smem>>
    %169 = vector.broadcast %168 : f32 to vector<16x16xf32>
    %170 = arith.mulf %169, %123 : vector<16x16xf32>
    %171 = arith.addf %167, %170 : vector<16x16xf32>
    %172 = vector.extract_strided_slice %3 {offsets = [8, 0], sizes = [8, 16], strides = [1, 1]} : vector<32x48xf32> to vector<8x16xf32>
    %cst_14 = arith.constant dense<0.000000e+00> : vector<48x16xf32>
    %173 = tpu.matmul %4, %172, %cst_14 {dimension_numbers = #tpu.dot_dimension_numbers<[1], [0], [0], [1], [0, 0, 1, 1], [], []>} : vector<48x8xf32>, vector<8x16xf32>, vector<48x16xf32> -> vector<48x16xf32>
    %174 = vector.extract_strided_slice %173 {offsets = [0, 0], sizes = [16, 16], strides = [1, 1]} : vector<48x16xf32> to vector<16x16xf32>
    %175 = vector.extract_strided_slice %173 {offsets = [16, 0], sizes = [16, 16], strides = [1, 1]} : vector<48x16xf32> to vector<16x16xf32>
    %176 = vector.extract_strided_slice %173 {offsets = [32, 0], sizes = [16, 16], strides = [1, 1]} : vector<48x16xf32> to vector<16x16xf32>
    %c9 = arith.constant 9 : index
    %177 = memref.load %arg5[%c9] : memref<144xf32, #tpu.memory_space<smem>>
    %178 = vector.broadcast %177 : f32 to vector<16x16xf32>
    %179 = arith.mulf %178, %174 : vector<16x16xf32>
    %180 = arith.addf %135, %179 : vector<16x16xf32>
    %c10 = arith.constant 10 : index
    %181 = memref.load %arg5[%c10] : memref<144xf32, #tpu.memory_space<smem>>
    %182 = vector.broadcast %181 : f32 to vector<16x16xf32>
    %183 = arith.mulf %182, %175 : vector<16x16xf32>
    %184 = arith.addf %180, %183 : vector<16x16xf32>
    %c11 = arith.constant 11 : index
    %185 = memref.load %arg5[%c11] : memref<144xf32, #tpu.memory_space<smem>>
    %186 = vector.broadcast %185 : f32 to vector<16x16xf32>
    %187 = arith.mulf %186, %176 : vector<16x16xf32>
    %188 = arith.addf %184, %187 : vector<16x16xf32>
    %c45 = arith.constant 45 : index
    %189 = memref.load %arg5[%c45] : memref<144xf32, #tpu.memory_space<smem>>
    %190 = vector.broadcast %189 : f32 to vector<16x16xf32>
    %191 = arith.mulf %190, %174 : vector<16x16xf32>
    %192 = arith.addf %147, %191 : vector<16x16xf32>
    %c46 = arith.constant 46 : index
    %193 = memref.load %arg5[%c46] : memref<144xf32, #tpu.memory_space<smem>>
    %194 = vector.broadcast %193 : f32 to vector<16x16xf32>
    %195 = arith.mulf %194, %175 : vector<16x16xf32>
    %196 = arith.addf %192, %195 : vector<16x16xf32>
    %c47 = arith.constant 47 : index
    %197 = memref.load %arg5[%c47] : memref<144xf32, #tpu.memory_space<smem>>
    %198 = vector.broadcast %197 : f32 to vector<16x16xf32>
    %199 = arith.mulf %198, %176 : vector<16x16xf32>
    %200 = arith.addf %196, %199 : vector<16x16xf32>
    %c81 = arith.constant 81 : index
    %201 = memref.load %arg5[%c81] : memref<144xf32, #tpu.memory_space<smem>>
    %202 = vector.broadcast %201 : f32 to vector<16x16xf32>
    %203 = arith.mulf %202, %174 : vector<16x16xf32>
    %204 = arith.addf %159, %203 : vector<16x16xf32>
    %c82 = arith.constant 82 : index
    %205 = memref.load %arg5[%c82] : memref<144xf32, #tpu.memory_space<smem>>
    %206 = vector.broadcast %205 : f32 to vector<16x16xf32>
    %207 = arith.mulf %206, %175 : vector<16x16xf32>
    %208 = arith.addf %204, %207 : vector<16x16xf32>
    %c83 = arith.constant 83 : index
    %209 = memref.load %arg5[%c83] : memref<144xf32, #tpu.memory_space<smem>>
    %210 = vector.broadcast %209 : f32 to vector<16x16xf32>
    %211 = arith.mulf %210, %176 : vector<16x16xf32>
    %212 = arith.addf %208, %211 : vector<16x16xf32>
    %c117 = arith.constant 117 : index
    %213 = memref.load %arg5[%c117] : memref<144xf32, #tpu.memory_space<smem>>
    %214 = vector.broadcast %213 : f32 to vector<16x16xf32>
    %215 = arith.mulf %214, %174 : vector<16x16xf32>
    %216 = arith.addf %171, %215 : vector<16x16xf32>
    %c118 = arith.constant 118 : index
    %217 = memref.load %arg5[%c118] : memref<144xf32, #tpu.memory_space<smem>>
    %218 = vector.broadcast %217 : f32 to vector<16x16xf32>
    %219 = arith.mulf %218, %175 : vector<16x16xf32>
    %220 = arith.addf %216, %219 : vector<16x16xf32>
    %c119 = arith.constant 119 : index
    %221 = memref.load %arg5[%c119] : memref<144xf32, #tpu.memory_space<smem>>
    %222 = vector.broadcast %221 : f32 to vector<16x16xf32>
    %223 = arith.mulf %222, %176 : vector<16x16xf32>
    %224 = arith.addf %220, %223 : vector<16x16xf32>
    %225 = vector.extract_strided_slice %3 {offsets = [8, 16], sizes = [8, 16], strides = [1, 1]} : vector<32x48xf32> to vector<8x16xf32>
    %cst_15 = arith.constant dense<0.000000e+00> : vector<48x16xf32>
    %226 = tpu.matmul %4, %225, %cst_15 {dimension_numbers = #tpu.dot_dimension_numbers<[1], [0], [0], [1], [0, 0, 1, 1], [], []>} : vector<48x8xf32>, vector<8x16xf32>, vector<48x16xf32> -> vector<48x16xf32>
    %227 = vector.extract_strided_slice %226 {offsets = [0, 0], sizes = [16, 16], strides = [1, 1]} : vector<48x16xf32> to vector<16x16xf32>
    %228 = vector.extract_strided_slice %226 {offsets = [16, 0], sizes = [16, 16], strides = [1, 1]} : vector<48x16xf32> to vector<16x16xf32>
    %229 = vector.extract_strided_slice %226 {offsets = [32, 0], sizes = [16, 16], strides = [1, 1]} : vector<48x16xf32> to vector<16x16xf32>
    %c12 = arith.constant 12 : index
    %230 = memref.load %arg5[%c12] : memref<144xf32, #tpu.memory_space<smem>>
    %231 = vector.broadcast %230 : f32 to vector<16x16xf32>
    %232 = arith.mulf %231, %227 : vector<16x16xf32>
    %233 = arith.addf %188, %232 : vector<16x16xf32>
    %c13 = arith.constant 13 : index
    %234 = memref.load %arg5[%c13] : memref<144xf32, #tpu.memory_space<smem>>
    %235 = vector.broadcast %234 : f32 to vector<16x16xf32>
    %236 = arith.mulf %235, %228 : vector<16x16xf32>
    %237 = arith.addf %233, %236 : vector<16x16xf32>
    %c14 = arith.constant 14 : index
    %238 = memref.load %arg5[%c14] : memref<144xf32, #tpu.memory_space<smem>>
    %239 = vector.broadcast %238 : f32 to vector<16x16xf32>
    %240 = arith.mulf %239, %229 : vector<16x16xf32>
    %241 = arith.addf %237, %240 : vector<16x16xf32>
    %c48 = arith.constant 48 : index
    %242 = memref.load %arg5[%c48] : memref<144xf32, #tpu.memory_space<smem>>
    %243 = vector.broadcast %242 : f32 to vector<16x16xf32>
    %244 = arith.mulf %243, %227 : vector<16x16xf32>
    %245 = arith.addf %200, %244 : vector<16x16xf32>
    %c49 = arith.constant 49 : index
    %246 = memref.load %arg5[%c49] : memref<144xf32, #tpu.memory_space<smem>>
    %247 = vector.broadcast %246 : f32 to vector<16x16xf32>
    %248 = arith.mulf %247, %228 : vector<16x16xf32>
    %249 = arith.addf %245, %248 : vector<16x16xf32>
    %c50 = arith.constant 50 : index
    %250 = memref.load %arg5[%c50] : memref<144xf32, #tpu.memory_space<smem>>
    %251 = vector.broadcast %250 : f32 to vector<16x16xf32>
    %252 = arith.mulf %251, %229 : vector<16x16xf32>
    %253 = arith.addf %249, %252 : vector<16x16xf32>
    %c84 = arith.constant 84 : index
    %254 = memref.load %arg5[%c84] : memref<144xf32, #tpu.memory_space<smem>>
    %255 = vector.broadcast %254 : f32 to vector<16x16xf32>
    %256 = arith.mulf %255, %227 : vector<16x16xf32>
    %257 = arith.addf %212, %256 : vector<16x16xf32>
    %c85 = arith.constant 85 : index
    %258 = memref.load %arg5[%c85] : memref<144xf32, #tpu.memory_space<smem>>
    %259 = vector.broadcast %258 : f32 to vector<16x16xf32>
    %260 = arith.mulf %259, %228 : vector<16x16xf32>
    %261 = arith.addf %257, %260 : vector<16x16xf32>
    %c86 = arith.constant 86 : index
    %262 = memref.load %arg5[%c86] : memref<144xf32, #tpu.memory_space<smem>>
    %263 = vector.broadcast %262 : f32 to vector<16x16xf32>
    %264 = arith.mulf %263, %229 : vector<16x16xf32>
    %265 = arith.addf %261, %264 : vector<16x16xf32>
    %c120 = arith.constant 120 : index
    %266 = memref.load %arg5[%c120] : memref<144xf32, #tpu.memory_space<smem>>
    %267 = vector.broadcast %266 : f32 to vector<16x16xf32>
    %268 = arith.mulf %267, %227 : vector<16x16xf32>
    %269 = arith.addf %224, %268 : vector<16x16xf32>
    %c121 = arith.constant 121 : index
    %270 = memref.load %arg5[%c121] : memref<144xf32, #tpu.memory_space<smem>>
    %271 = vector.broadcast %270 : f32 to vector<16x16xf32>
    %272 = arith.mulf %271, %228 : vector<16x16xf32>
    %273 = arith.addf %269, %272 : vector<16x16xf32>
    %c122 = arith.constant 122 : index
    %274 = memref.load %arg5[%c122] : memref<144xf32, #tpu.memory_space<smem>>
    %275 = vector.broadcast %274 : f32 to vector<16x16xf32>
    %276 = arith.mulf %275, %229 : vector<16x16xf32>
    %277 = arith.addf %273, %276 : vector<16x16xf32>
    %278 = vector.extract_strided_slice %3 {offsets = [8, 32], sizes = [8, 16], strides = [1, 1]} : vector<32x48xf32> to vector<8x16xf32>
    %cst_16 = arith.constant dense<0.000000e+00> : vector<48x16xf32>
    %279 = tpu.matmul %4, %278, %cst_16 {dimension_numbers = #tpu.dot_dimension_numbers<[1], [0], [0], [1], [0, 0, 1, 1], [], []>} : vector<48x8xf32>, vector<8x16xf32>, vector<48x16xf32> -> vector<48x16xf32>
    %280 = vector.extract_strided_slice %279 {offsets = [0, 0], sizes = [16, 16], strides = [1, 1]} : vector<48x16xf32> to vector<16x16xf32>
    %281 = vector.extract_strided_slice %279 {offsets = [16, 0], sizes = [16, 16], strides = [1, 1]} : vector<48x16xf32> to vector<16x16xf32>
    %282 = vector.extract_strided_slice %279 {offsets = [32, 0], sizes = [16, 16], strides = [1, 1]} : vector<48x16xf32> to vector<16x16xf32>
    %c15 = arith.constant 15 : index
    %283 = memref.load %arg5[%c15] : memref<144xf32, #tpu.memory_space<smem>>
    %284 = vector.broadcast %283 : f32 to vector<16x16xf32>
    %285 = arith.mulf %284, %280 : vector<16x16xf32>
    %286 = arith.addf %241, %285 : vector<16x16xf32>
    %c16 = arith.constant 16 : index
    %287 = memref.load %arg5[%c16] : memref<144xf32, #tpu.memory_space<smem>>
    %288 = vector.broadcast %287 : f32 to vector<16x16xf32>
    %289 = arith.mulf %288, %281 : vector<16x16xf32>
    %290 = arith.addf %286, %289 : vector<16x16xf32>
    %c17 = arith.constant 17 : index
    %291 = memref.load %arg5[%c17] : memref<144xf32, #tpu.memory_space<smem>>
    %292 = vector.broadcast %291 : f32 to vector<16x16xf32>
    %293 = arith.mulf %292, %282 : vector<16x16xf32>
    %294 = arith.addf %290, %293 : vector<16x16xf32>
    %c51 = arith.constant 51 : index
    %295 = memref.load %arg5[%c51] : memref<144xf32, #tpu.memory_space<smem>>
    %296 = vector.broadcast %295 : f32 to vector<16x16xf32>
    %297 = arith.mulf %296, %280 : vector<16x16xf32>
    %298 = arith.addf %253, %297 : vector<16x16xf32>
    %c52 = arith.constant 52 : index
    %299 = memref.load %arg5[%c52] : memref<144xf32, #tpu.memory_space<smem>>
    %300 = vector.broadcast %299 : f32 to vector<16x16xf32>
    %301 = arith.mulf %300, %281 : vector<16x16xf32>
    %302 = arith.addf %298, %301 : vector<16x16xf32>
    %c53 = arith.constant 53 : index
    %303 = memref.load %arg5[%c53] : memref<144xf32, #tpu.memory_space<smem>>
    %304 = vector.broadcast %303 : f32 to vector<16x16xf32>
    %305 = arith.mulf %304, %282 : vector<16x16xf32>
    %306 = arith.addf %302, %305 : vector<16x16xf32>
    %c87 = arith.constant 87 : index
    %307 = memref.load %arg5[%c87] : memref<144xf32, #tpu.memory_space<smem>>
    %308 = vector.broadcast %307 : f32 to vector<16x16xf32>
    %309 = arith.mulf %308, %280 : vector<16x16xf32>
    %310 = arith.addf %265, %309 : vector<16x16xf32>
    %c88 = arith.constant 88 : index
    %311 = memref.load %arg5[%c88] : memref<144xf32, #tpu.memory_space<smem>>
    %312 = vector.broadcast %311 : f32 to vector<16x16xf32>
    %313 = arith.mulf %312, %281 : vector<16x16xf32>
    %314 = arith.addf %310, %313 : vector<16x16xf32>
    %c89 = arith.constant 89 : index
    %315 = memref.load %arg5[%c89] : memref<144xf32, #tpu.memory_space<smem>>
    %316 = vector.broadcast %315 : f32 to vector<16x16xf32>
    %317 = arith.mulf %316, %282 : vector<16x16xf32>
    %318 = arith.addf %314, %317 : vector<16x16xf32>
    %c123 = arith.constant 123 : index
    %319 = memref.load %arg5[%c123] : memref<144xf32, #tpu.memory_space<smem>>
    %320 = vector.broadcast %319 : f32 to vector<16x16xf32>
    %321 = arith.mulf %320, %280 : vector<16x16xf32>
    %322 = arith.addf %277, %321 : vector<16x16xf32>
    %c124 = arith.constant 124 : index
    %323 = memref.load %arg5[%c124] : memref<144xf32, #tpu.memory_space<smem>>
    %324 = vector.broadcast %323 : f32 to vector<16x16xf32>
    %325 = arith.mulf %324, %281 : vector<16x16xf32>
    %326 = arith.addf %322, %325 : vector<16x16xf32>
    %c125 = arith.constant 125 : index
    %327 = memref.load %arg5[%c125] : memref<144xf32, #tpu.memory_space<smem>>
    %328 = vector.broadcast %327 : f32 to vector<16x16xf32>
    %329 = arith.mulf %328, %282 : vector<16x16xf32>
    %330 = arith.addf %326, %329 : vector<16x16xf32>
    %331 = vector.extract_strided_slice %3 {offsets = [16, 0], sizes = [8, 16], strides = [1, 1]} : vector<32x48xf32> to vector<8x16xf32>
    %cst_17 = arith.constant dense<0.000000e+00> : vector<48x16xf32>
    %332 = tpu.matmul %4, %331, %cst_17 {dimension_numbers = #tpu.dot_dimension_numbers<[1], [0], [0], [1], [0, 0, 1, 1], [], []>} : vector<48x8xf32>, vector<8x16xf32>, vector<48x16xf32> -> vector<48x16xf32>
    %333 = vector.extract_strided_slice %332 {offsets = [0, 0], sizes = [16, 16], strides = [1, 1]} : vector<48x16xf32> to vector<16x16xf32>
    %334 = vector.extract_strided_slice %332 {offsets = [16, 0], sizes = [16, 16], strides = [1, 1]} : vector<48x16xf32> to vector<16x16xf32>
    %335 = vector.extract_strided_slice %332 {offsets = [32, 0], sizes = [16, 16], strides = [1, 1]} : vector<48x16xf32> to vector<16x16xf32>
    %c18 = arith.constant 18 : index
    %336 = memref.load %arg5[%c18] : memref<144xf32, #tpu.memory_space<smem>>
    %337 = vector.broadcast %336 : f32 to vector<16x16xf32>
    %338 = arith.mulf %337, %333 : vector<16x16xf32>
    %339 = arith.addf %294, %338 : vector<16x16xf32>
    %c19 = arith.constant 19 : index
    %340 = memref.load %arg5[%c19] : memref<144xf32, #tpu.memory_space<smem>>
    %341 = vector.broadcast %340 : f32 to vector<16x16xf32>
    %342 = arith.mulf %341, %334 : vector<16x16xf32>
    %343 = arith.addf %339, %342 : vector<16x16xf32>
    %c20 = arith.constant 20 : index
    %344 = memref.load %arg5[%c20] : memref<144xf32, #tpu.memory_space<smem>>
    %345 = vector.broadcast %344 : f32 to vector<16x16xf32>
    %346 = arith.mulf %345, %335 : vector<16x16xf32>
    %347 = arith.addf %343, %346 : vector<16x16xf32>
    %c54 = arith.constant 54 : index
    %348 = memref.load %arg5[%c54] : memref<144xf32, #tpu.memory_space<smem>>
    %349 = vector.broadcast %348 : f32 to vector<16x16xf32>
    %350 = arith.mulf %349, %333 : vector<16x16xf32>
    %351 = arith.addf %306, %350 : vector<16x16xf32>
    %c55 = arith.constant 55 : index
    %352 = memref.load %arg5[%c55] : memref<144xf32, #tpu.memory_space<smem>>
    %353 = vector.broadcast %352 : f32 to vector<16x16xf32>
    %354 = arith.mulf %353, %334 : vector<16x16xf32>
    %355 = arith.addf %351, %354 : vector<16x16xf32>
    %c56 = arith.constant 56 : index
    %356 = memref.load %arg5[%c56] : memref<144xf32, #tpu.memory_space<smem>>
    %357 = vector.broadcast %356 : f32 to vector<16x16xf32>
    %358 = arith.mulf %357, %335 : vector<16x16xf32>
    %359 = arith.addf %355, %358 : vector<16x16xf32>
    %c90 = arith.constant 90 : index
    %360 = memref.load %arg5[%c90] : memref<144xf32, #tpu.memory_space<smem>>
    %361 = vector.broadcast %360 : f32 to vector<16x16xf32>
    %362 = arith.mulf %361, %333 : vector<16x16xf32>
    %363 = arith.addf %318, %362 : vector<16x16xf32>
    %c91 = arith.constant 91 : index
    %364 = memref.load %arg5[%c91] : memref<144xf32, #tpu.memory_space<smem>>
    %365 = vector.broadcast %364 : f32 to vector<16x16xf32>
    %366 = arith.mulf %365, %334 : vector<16x16xf32>
    %367 = arith.addf %363, %366 : vector<16x16xf32>
    %c92 = arith.constant 92 : index
    %368 = memref.load %arg5[%c92] : memref<144xf32, #tpu.memory_space<smem>>
    %369 = vector.broadcast %368 : f32 to vector<16x16xf32>
    %370 = arith.mulf %369, %335 : vector<16x16xf32>
    %371 = arith.addf %367, %370 : vector<16x16xf32>
    %c126 = arith.constant 126 : index
    %372 = memref.load %arg5[%c126] : memref<144xf32, #tpu.memory_space<smem>>
    %373 = vector.broadcast %372 : f32 to vector<16x16xf32>
    %374 = arith.mulf %373, %333 : vector<16x16xf32>
    %375 = arith.addf %330, %374 : vector<16x16xf32>
    %c127 = arith.constant 127 : index
    %376 = memref.load %arg5[%c127] : memref<144xf32, #tpu.memory_space<smem>>
    %377 = vector.broadcast %376 : f32 to vector<16x16xf32>
    %378 = arith.mulf %377, %334 : vector<16x16xf32>
    %379 = arith.addf %375, %378 : vector<16x16xf32>
    %c128 = arith.constant 128 : index
    %380 = memref.load %arg5[%c128] : memref<144xf32, #tpu.memory_space<smem>>
    %381 = vector.broadcast %380 : f32 to vector<16x16xf32>
    %382 = arith.mulf %381, %335 : vector<16x16xf32>
    %383 = arith.addf %379, %382 : vector<16x16xf32>
    %384 = vector.extract_strided_slice %3 {offsets = [16, 16], sizes = [8, 16], strides = [1, 1]} : vector<32x48xf32> to vector<8x16xf32>
    %cst_18 = arith.constant dense<0.000000e+00> : vector<48x16xf32>
    %385 = tpu.matmul %4, %384, %cst_18 {dimension_numbers = #tpu.dot_dimension_numbers<[1], [0], [0], [1], [0, 0, 1, 1], [], []>} : vector<48x8xf32>, vector<8x16xf32>, vector<48x16xf32> -> vector<48x16xf32>
    %386 = vector.extract_strided_slice %385 {offsets = [0, 0], sizes = [16, 16], strides = [1, 1]} : vector<48x16xf32> to vector<16x16xf32>
    %387 = vector.extract_strided_slice %385 {offsets = [16, 0], sizes = [16, 16], strides = [1, 1]} : vector<48x16xf32> to vector<16x16xf32>
    %388 = vector.extract_strided_slice %385 {offsets = [32, 0], sizes = [16, 16], strides = [1, 1]} : vector<48x16xf32> to vector<16x16xf32>
    %c21 = arith.constant 21 : index
    %389 = memref.load %arg5[%c21] : memref<144xf32, #tpu.memory_space<smem>>
    %390 = vector.broadcast %389 : f32 to vector<16x16xf32>
    %391 = arith.mulf %390, %386 : vector<16x16xf32>
    %392 = arith.addf %347, %391 : vector<16x16xf32>
    %c22 = arith.constant 22 : index
    %393 = memref.load %arg5[%c22] : memref<144xf32, #tpu.memory_space<smem>>
    %394 = vector.broadcast %393 : f32 to vector<16x16xf32>
    %395 = arith.mulf %394, %387 : vector<16x16xf32>
    %396 = arith.addf %392, %395 : vector<16x16xf32>
    %c23 = arith.constant 23 : index
    %397 = memref.load %arg5[%c23] : memref<144xf32, #tpu.memory_space<smem>>
    %398 = vector.broadcast %397 : f32 to vector<16x16xf32>
    %399 = arith.mulf %398, %388 : vector<16x16xf32>
    %400 = arith.addf %396, %399 : vector<16x16xf32>
    %c57 = arith.constant 57 : index
    %401 = memref.load %arg5[%c57] : memref<144xf32, #tpu.memory_space<smem>>
    %402 = vector.broadcast %401 : f32 to vector<16x16xf32>
    %403 = arith.mulf %402, %386 : vector<16x16xf32>
    %404 = arith.addf %359, %403 : vector<16x16xf32>
    %c58 = arith.constant 58 : index
    %405 = memref.load %arg5[%c58] : memref<144xf32, #tpu.memory_space<smem>>
    %406 = vector.broadcast %405 : f32 to vector<16x16xf32>
    %407 = arith.mulf %406, %387 : vector<16x16xf32>
    %408 = arith.addf %404, %407 : vector<16x16xf32>
    %c59 = arith.constant 59 : index
    %409 = memref.load %arg5[%c59] : memref<144xf32, #tpu.memory_space<smem>>
    %410 = vector.broadcast %409 : f32 to vector<16x16xf32>
    %411 = arith.mulf %410, %388 : vector<16x16xf32>
    %412 = arith.addf %408, %411 : vector<16x16xf32>
    %c93 = arith.constant 93 : index
    %413 = memref.load %arg5[%c93] : memref<144xf32, #tpu.memory_space<smem>>
    %414 = vector.broadcast %413 : f32 to vector<16x16xf32>
    %415 = arith.mulf %414, %386 : vector<16x16xf32>
    %416 = arith.addf %371, %415 : vector<16x16xf32>
    %c94 = arith.constant 94 : index
    %417 = memref.load %arg5[%c94] : memref<144xf32, #tpu.memory_space<smem>>
    %418 = vector.broadcast %417 : f32 to vector<16x16xf32>
    %419 = arith.mulf %418, %387 : vector<16x16xf32>
    %420 = arith.addf %416, %419 : vector<16x16xf32>
    %c95 = arith.constant 95 : index
    %421 = memref.load %arg5[%c95] : memref<144xf32, #tpu.memory_space<smem>>
    %422 = vector.broadcast %421 : f32 to vector<16x16xf32>
    %423 = arith.mulf %422, %388 : vector<16x16xf32>
    %424 = arith.addf %420, %423 : vector<16x16xf32>
    %c129 = arith.constant 129 : index
    %425 = memref.load %arg5[%c129] : memref<144xf32, #tpu.memory_space<smem>>
    %426 = vector.broadcast %425 : f32 to vector<16x16xf32>
    %427 = arith.mulf %426, %386 : vector<16x16xf32>
    %428 = arith.addf %383, %427 : vector<16x16xf32>
    %c130 = arith.constant 130 : index
    %429 = memref.load %arg5[%c130] : memref<144xf32, #tpu.memory_space<smem>>
    %430 = vector.broadcast %429 : f32 to vector<16x16xf32>
    %431 = arith.mulf %430, %387 : vector<16x16xf32>
    %432 = arith.addf %428, %431 : vector<16x16xf32>
    %c131 = arith.constant 131 : index
    %433 = memref.load %arg5[%c131] : memref<144xf32, #tpu.memory_space<smem>>
    %434 = vector.broadcast %433 : f32 to vector<16x16xf32>
    %435 = arith.mulf %434, %388 : vector<16x16xf32>
    %436 = arith.addf %432, %435 : vector<16x16xf32>
    %437 = vector.extract_strided_slice %3 {offsets = [16, 32], sizes = [8, 16], strides = [1, 1]} : vector<32x48xf32> to vector<8x16xf32>
    %cst_19 = arith.constant dense<0.000000e+00> : vector<48x16xf32>
    %438 = tpu.matmul %4, %437, %cst_19 {dimension_numbers = #tpu.dot_dimension_numbers<[1], [0], [0], [1], [0, 0, 1, 1], [], []>} : vector<48x8xf32>, vector<8x16xf32>, vector<48x16xf32> -> vector<48x16xf32>
    %439 = vector.extract_strided_slice %438 {offsets = [0, 0], sizes = [16, 16], strides = [1, 1]} : vector<48x16xf32> to vector<16x16xf32>
    %440 = vector.extract_strided_slice %438 {offsets = [16, 0], sizes = [16, 16], strides = [1, 1]} : vector<48x16xf32> to vector<16x16xf32>
    %441 = vector.extract_strided_slice %438 {offsets = [32, 0], sizes = [16, 16], strides = [1, 1]} : vector<48x16xf32> to vector<16x16xf32>
    %c24 = arith.constant 24 : index
    %442 = memref.load %arg5[%c24] : memref<144xf32, #tpu.memory_space<smem>>
    %443 = vector.broadcast %442 : f32 to vector<16x16xf32>
    %444 = arith.mulf %443, %439 : vector<16x16xf32>
    %445 = arith.addf %400, %444 : vector<16x16xf32>
    %c25 = arith.constant 25 : index
    %446 = memref.load %arg5[%c25] : memref<144xf32, #tpu.memory_space<smem>>
    %447 = vector.broadcast %446 : f32 to vector<16x16xf32>
    %448 = arith.mulf %447, %440 : vector<16x16xf32>
    %449 = arith.addf %445, %448 : vector<16x16xf32>
    %c26 = arith.constant 26 : index
    %450 = memref.load %arg5[%c26] : memref<144xf32, #tpu.memory_space<smem>>
    %451 = vector.broadcast %450 : f32 to vector<16x16xf32>
    %452 = arith.mulf %451, %441 : vector<16x16xf32>
    %453 = arith.addf %449, %452 : vector<16x16xf32>
    %c60 = arith.constant 60 : index
    %454 = memref.load %arg5[%c60] : memref<144xf32, #tpu.memory_space<smem>>
    %455 = vector.broadcast %454 : f32 to vector<16x16xf32>
    %456 = arith.mulf %455, %439 : vector<16x16xf32>
    %457 = arith.addf %412, %456 : vector<16x16xf32>
    %c61 = arith.constant 61 : index
    %458 = memref.load %arg5[%c61] : memref<144xf32, #tpu.memory_space<smem>>
    %459 = vector.broadcast %458 : f32 to vector<16x16xf32>
    %460 = arith.mulf %459, %440 : vector<16x16xf32>
    %461 = arith.addf %457, %460 : vector<16x16xf32>
    %c62 = arith.constant 62 : index
    %462 = memref.load %arg5[%c62] : memref<144xf32, #tpu.memory_space<smem>>
    %463 = vector.broadcast %462 : f32 to vector<16x16xf32>
    %464 = arith.mulf %463, %441 : vector<16x16xf32>
    %465 = arith.addf %461, %464 : vector<16x16xf32>
    %c96 = arith.constant 96 : index
    %466 = memref.load %arg5[%c96] : memref<144xf32, #tpu.memory_space<smem>>
    %467 = vector.broadcast %466 : f32 to vector<16x16xf32>
    %468 = arith.mulf %467, %439 : vector<16x16xf32>
    %469 = arith.addf %424, %468 : vector<16x16xf32>
    %c97 = arith.constant 97 : index
    %470 = memref.load %arg5[%c97] : memref<144xf32, #tpu.memory_space<smem>>
    %471 = vector.broadcast %470 : f32 to vector<16x16xf32>
    %472 = arith.mulf %471, %440 : vector<16x16xf32>
    %473 = arith.addf %469, %472 : vector<16x16xf32>
    %c98 = arith.constant 98 : index
    %474 = memref.load %arg5[%c98] : memref<144xf32, #tpu.memory_space<smem>>
    %475 = vector.broadcast %474 : f32 to vector<16x16xf32>
    %476 = arith.mulf %475, %441 : vector<16x16xf32>
    %477 = arith.addf %473, %476 : vector<16x16xf32>
    %c132 = arith.constant 132 : index
    %478 = memref.load %arg5[%c132] : memref<144xf32, #tpu.memory_space<smem>>
    %479 = vector.broadcast %478 : f32 to vector<16x16xf32>
    %480 = arith.mulf %479, %439 : vector<16x16xf32>
    %481 = arith.addf %436, %480 : vector<16x16xf32>
    %c133 = arith.constant 133 : index
    %482 = memref.load %arg5[%c133] : memref<144xf32, #tpu.memory_space<smem>>
    %483 = vector.broadcast %482 : f32 to vector<16x16xf32>
    %484 = arith.mulf %483, %440 : vector<16x16xf32>
    %485 = arith.addf %481, %484 : vector<16x16xf32>
    %c134 = arith.constant 134 : index
    %486 = memref.load %arg5[%c134] : memref<144xf32, #tpu.memory_space<smem>>
    %487 = vector.broadcast %486 : f32 to vector<16x16xf32>
    %488 = arith.mulf %487, %441 : vector<16x16xf32>
    %489 = arith.addf %485, %488 : vector<16x16xf32>
    %490 = vector.extract_strided_slice %3 {offsets = [24, 0], sizes = [8, 16], strides = [1, 1]} : vector<32x48xf32> to vector<8x16xf32>
    %cst_20 = arith.constant dense<0.000000e+00> : vector<48x16xf32>
    %491 = tpu.matmul %4, %490, %cst_20 {dimension_numbers = #tpu.dot_dimension_numbers<[1], [0], [0], [1], [0, 0, 1, 1], [], []>} : vector<48x8xf32>, vector<8x16xf32>, vector<48x16xf32> -> vector<48x16xf32>
    %492 = vector.extract_strided_slice %491 {offsets = [0, 0], sizes = [16, 16], strides = [1, 1]} : vector<48x16xf32> to vector<16x16xf32>
    %493 = vector.extract_strided_slice %491 {offsets = [16, 0], sizes = [16, 16], strides = [1, 1]} : vector<48x16xf32> to vector<16x16xf32>
    %494 = vector.extract_strided_slice %491 {offsets = [32, 0], sizes = [16, 16], strides = [1, 1]} : vector<48x16xf32> to vector<16x16xf32>
    %c27 = arith.constant 27 : index
    %495 = memref.load %arg5[%c27] : memref<144xf32, #tpu.memory_space<smem>>
    %496 = vector.broadcast %495 : f32 to vector<16x16xf32>
    %497 = arith.mulf %496, %492 : vector<16x16xf32>
    %498 = arith.addf %453, %497 : vector<16x16xf32>
    %c28 = arith.constant 28 : index
    %499 = memref.load %arg5[%c28] : memref<144xf32, #tpu.memory_space<smem>>
    %500 = vector.broadcast %499 : f32 to vector<16x16xf32>
    %501 = arith.mulf %500, %493 : vector<16x16xf32>
    %502 = arith.addf %498, %501 : vector<16x16xf32>
    %c29 = arith.constant 29 : index
    %503 = memref.load %arg5[%c29] : memref<144xf32, #tpu.memory_space<smem>>
    %504 = vector.broadcast %503 : f32 to vector<16x16xf32>
    %505 = arith.mulf %504, %494 : vector<16x16xf32>
    %506 = arith.addf %502, %505 : vector<16x16xf32>
    %c63 = arith.constant 63 : index
    %507 = memref.load %arg5[%c63] : memref<144xf32, #tpu.memory_space<smem>>
    %508 = vector.broadcast %507 : f32 to vector<16x16xf32>
    %509 = arith.mulf %508, %492 : vector<16x16xf32>
    %510 = arith.addf %465, %509 : vector<16x16xf32>
    %c64 = arith.constant 64 : index
    %511 = memref.load %arg5[%c64] : memref<144xf32, #tpu.memory_space<smem>>
    %512 = vector.broadcast %511 : f32 to vector<16x16xf32>
    %513 = arith.mulf %512, %493 : vector<16x16xf32>
    %514 = arith.addf %510, %513 : vector<16x16xf32>
    %c65 = arith.constant 65 : index
    %515 = memref.load %arg5[%c65] : memref<144xf32, #tpu.memory_space<smem>>
    %516 = vector.broadcast %515 : f32 to vector<16x16xf32>
    %517 = arith.mulf %516, %494 : vector<16x16xf32>
    %518 = arith.addf %514, %517 : vector<16x16xf32>
    %c99 = arith.constant 99 : index
    %519 = memref.load %arg5[%c99] : memref<144xf32, #tpu.memory_space<smem>>
    %520 = vector.broadcast %519 : f32 to vector<16x16xf32>
    %521 = arith.mulf %520, %492 : vector<16x16xf32>
    %522 = arith.addf %477, %521 : vector<16x16xf32>
    %c100 = arith.constant 100 : index
    %523 = memref.load %arg5[%c100] : memref<144xf32, #tpu.memory_space<smem>>
    %524 = vector.broadcast %523 : f32 to vector<16x16xf32>
    %525 = arith.mulf %524, %493 : vector<16x16xf32>
    %526 = arith.addf %522, %525 : vector<16x16xf32>
    %c101 = arith.constant 101 : index
    %527 = memref.load %arg5[%c101] : memref<144xf32, #tpu.memory_space<smem>>
    %528 = vector.broadcast %527 : f32 to vector<16x16xf32>
    %529 = arith.mulf %528, %494 : vector<16x16xf32>
    %530 = arith.addf %526, %529 : vector<16x16xf32>
    %c135 = arith.constant 135 : index
    %531 = memref.load %arg5[%c135] : memref<144xf32, #tpu.memory_space<smem>>
    %532 = vector.broadcast %531 : f32 to vector<16x16xf32>
    %533 = arith.mulf %532, %492 : vector<16x16xf32>
    %534 = arith.addf %489, %533 : vector<16x16xf32>
    %c136 = arith.constant 136 : index
    %535 = memref.load %arg5[%c136] : memref<144xf32, #tpu.memory_space<smem>>
    %536 = vector.broadcast %535 : f32 to vector<16x16xf32>
    %537 = arith.mulf %536, %493 : vector<16x16xf32>
    %538 = arith.addf %534, %537 : vector<16x16xf32>
    %c137 = arith.constant 137 : index
    %539 = memref.load %arg5[%c137] : memref<144xf32, #tpu.memory_space<smem>>
    %540 = vector.broadcast %539 : f32 to vector<16x16xf32>
    %541 = arith.mulf %540, %494 : vector<16x16xf32>
    %542 = arith.addf %538, %541 : vector<16x16xf32>
    %543 = vector.extract_strided_slice %3 {offsets = [24, 16], sizes = [8, 16], strides = [1, 1]} : vector<32x48xf32> to vector<8x16xf32>
    %cst_21 = arith.constant dense<0.000000e+00> : vector<48x16xf32>
    %544 = tpu.matmul %4, %543, %cst_21 {dimension_numbers = #tpu.dot_dimension_numbers<[1], [0], [0], [1], [0, 0, 1, 1], [], []>} : vector<48x8xf32>, vector<8x16xf32>, vector<48x16xf32> -> vector<48x16xf32>
    %545 = vector.extract_strided_slice %544 {offsets = [0, 0], sizes = [16, 16], strides = [1, 1]} : vector<48x16xf32> to vector<16x16xf32>
    %546 = vector.extract_strided_slice %544 {offsets = [16, 0], sizes = [16, 16], strides = [1, 1]} : vector<48x16xf32> to vector<16x16xf32>
    %547 = vector.extract_strided_slice %544 {offsets = [32, 0], sizes = [16, 16], strides = [1, 1]} : vector<48x16xf32> to vector<16x16xf32>
    %c30 = arith.constant 30 : index
    %548 = memref.load %arg5[%c30] : memref<144xf32, #tpu.memory_space<smem>>
    %549 = vector.broadcast %548 : f32 to vector<16x16xf32>
    %550 = arith.mulf %549, %545 : vector<16x16xf32>
    %551 = arith.addf %506, %550 : vector<16x16xf32>
    %c31 = arith.constant 31 : index
    %552 = memref.load %arg5[%c31] : memref<144xf32, #tpu.memory_space<smem>>
    %553 = vector.broadcast %552 : f32 to vector<16x16xf32>
    %554 = arith.mulf %553, %546 : vector<16x16xf32>
    %555 = arith.addf %551, %554 : vector<16x16xf32>
    %c32 = arith.constant 32 : index
    %556 = memref.load %arg5[%c32] : memref<144xf32, #tpu.memory_space<smem>>
    %557 = vector.broadcast %556 : f32 to vector<16x16xf32>
    %558 = arith.mulf %557, %547 : vector<16x16xf32>
    %559 = arith.addf %555, %558 : vector<16x16xf32>
    %c66 = arith.constant 66 : index
    %560 = memref.load %arg5[%c66] : memref<144xf32, #tpu.memory_space<smem>>
    %561 = vector.broadcast %560 : f32 to vector<16x16xf32>
    %562 = arith.mulf %561, %545 : vector<16x16xf32>
    %563 = arith.addf %518, %562 : vector<16x16xf32>
    %c67 = arith.constant 67 : index
    %564 = memref.load %arg5[%c67] : memref<144xf32, #tpu.memory_space<smem>>
    %565 = vector.broadcast %564 : f32 to vector<16x16xf32>
    %566 = arith.mulf %565, %546 : vector<16x16xf32>
    %567 = arith.addf %563, %566 : vector<16x16xf32>
    %c68 = arith.constant 68 : index
    %568 = memref.load %arg5[%c68] : memref<144xf32, #tpu.memory_space<smem>>
    %569 = vector.broadcast %568 : f32 to vector<16x16xf32>
    %570 = arith.mulf %569, %547 : vector<16x16xf32>
    %571 = arith.addf %567, %570 : vector<16x16xf32>
    %c102 = arith.constant 102 : index
    %572 = memref.load %arg5[%c102] : memref<144xf32, #tpu.memory_space<smem>>
    %573 = vector.broadcast %572 : f32 to vector<16x16xf32>
    %574 = arith.mulf %573, %545 : vector<16x16xf32>
    %575 = arith.addf %530, %574 : vector<16x16xf32>
    %c103 = arith.constant 103 : index
    %576 = memref.load %arg5[%c103] : memref<144xf32, #tpu.memory_space<smem>>
    %577 = vector.broadcast %576 : f32 to vector<16x16xf32>
    %578 = arith.mulf %577, %546 : vector<16x16xf32>
    %579 = arith.addf %575, %578 : vector<16x16xf32>
    %c104 = arith.constant 104 : index
    %580 = memref.load %arg5[%c104] : memref<144xf32, #tpu.memory_space<smem>>
    %581 = vector.broadcast %580 : f32 to vector<16x16xf32>
    %582 = arith.mulf %581, %547 : vector<16x16xf32>
    %583 = arith.addf %579, %582 : vector<16x16xf32>
    %c138 = arith.constant 138 : index
    %584 = memref.load %arg5[%c138] : memref<144xf32, #tpu.memory_space<smem>>
    %585 = vector.broadcast %584 : f32 to vector<16x16xf32>
    %586 = arith.mulf %585, %545 : vector<16x16xf32>
    %587 = arith.addf %542, %586 : vector<16x16xf32>
    %c139 = arith.constant 139 : index
    %588 = memref.load %arg5[%c139] : memref<144xf32, #tpu.memory_space<smem>>
    %589 = vector.broadcast %588 : f32 to vector<16x16xf32>
    %590 = arith.mulf %589, %546 : vector<16x16xf32>
    %591 = arith.addf %587, %590 : vector<16x16xf32>
    %c140 = arith.constant 140 : index
    %592 = memref.load %arg5[%c140] : memref<144xf32, #tpu.memory_space<smem>>
    %593 = vector.broadcast %592 : f32 to vector<16x16xf32>
    %594 = arith.mulf %593, %547 : vector<16x16xf32>
    %595 = arith.addf %591, %594 : vector<16x16xf32>
    %596 = vector.extract_strided_slice %3 {offsets = [24, 32], sizes = [8, 16], strides = [1, 1]} : vector<32x48xf32> to vector<8x16xf32>
    %cst_22 = arith.constant dense<0.000000e+00> : vector<48x16xf32>
    %597 = tpu.matmul %4, %596, %cst_22 {dimension_numbers = #tpu.dot_dimension_numbers<[1], [0], [0], [1], [0, 0, 1, 1], [], []>} : vector<48x8xf32>, vector<8x16xf32>, vector<48x16xf32> -> vector<48x16xf32>
    %598 = vector.extract_strided_slice %597 {offsets = [0, 0], sizes = [16, 16], strides = [1, 1]} : vector<48x16xf32> to vector<16x16xf32>
    %599 = vector.extract_strided_slice %597 {offsets = [16, 0], sizes = [16, 16], strides = [1, 1]} : vector<48x16xf32> to vector<16x16xf32>
    %600 = vector.extract_strided_slice %597 {offsets = [32, 0], sizes = [16, 16], strides = [1, 1]} : vector<48x16xf32> to vector<16x16xf32>
    %c33 = arith.constant 33 : index
    %601 = memref.load %arg5[%c33] : memref<144xf32, #tpu.memory_space<smem>>
    %602 = vector.broadcast %601 : f32 to vector<16x16xf32>
    %603 = arith.mulf %602, %598 : vector<16x16xf32>
    %604 = arith.addf %559, %603 : vector<16x16xf32>
    %c34 = arith.constant 34 : index
    %605 = memref.load %arg5[%c34] : memref<144xf32, #tpu.memory_space<smem>>
    %606 = vector.broadcast %605 : f32 to vector<16x16xf32>
    %607 = arith.mulf %606, %599 : vector<16x16xf32>
    %608 = arith.addf %604, %607 : vector<16x16xf32>
    %c35 = arith.constant 35 : index
    %609 = memref.load %arg5[%c35] : memref<144xf32, #tpu.memory_space<smem>>
    %610 = vector.broadcast %609 : f32 to vector<16x16xf32>
    %611 = arith.mulf %610, %600 : vector<16x16xf32>
    %612 = arith.addf %608, %611 : vector<16x16xf32>
    %c69 = arith.constant 69 : index
    %613 = memref.load %arg5[%c69] : memref<144xf32, #tpu.memory_space<smem>>
    %614 = vector.broadcast %613 : f32 to vector<16x16xf32>
    %615 = arith.mulf %614, %598 : vector<16x16xf32>
    %616 = arith.addf %571, %615 : vector<16x16xf32>
    %c70 = arith.constant 70 : index
    %617 = memref.load %arg5[%c70] : memref<144xf32, #tpu.memory_space<smem>>
    %618 = vector.broadcast %617 : f32 to vector<16x16xf32>
    %619 = arith.mulf %618, %599 : vector<16x16xf32>
    %620 = arith.addf %616, %619 : vector<16x16xf32>
    %c71 = arith.constant 71 : index
    %621 = memref.load %arg5[%c71] : memref<144xf32, #tpu.memory_space<smem>>
    %622 = vector.broadcast %621 : f32 to vector<16x16xf32>
    %623 = arith.mulf %622, %600 : vector<16x16xf32>
    %624 = arith.addf %620, %623 : vector<16x16xf32>
    %c105 = arith.constant 105 : index
    %625 = memref.load %arg5[%c105] : memref<144xf32, #tpu.memory_space<smem>>
    %626 = vector.broadcast %625 : f32 to vector<16x16xf32>
    %627 = arith.mulf %626, %598 : vector<16x16xf32>
    %628 = arith.addf %583, %627 : vector<16x16xf32>
    %c106 = arith.constant 106 : index
    %629 = memref.load %arg5[%c106] : memref<144xf32, #tpu.memory_space<smem>>
    %630 = vector.broadcast %629 : f32 to vector<16x16xf32>
    %631 = arith.mulf %630, %599 : vector<16x16xf32>
    %632 = arith.addf %628, %631 : vector<16x16xf32>
    %c107 = arith.constant 107 : index
    %633 = memref.load %arg5[%c107] : memref<144xf32, #tpu.memory_space<smem>>
    %634 = vector.broadcast %633 : f32 to vector<16x16xf32>
    %635 = arith.mulf %634, %600 : vector<16x16xf32>
    %636 = arith.addf %632, %635 : vector<16x16xf32>
    %c141 = arith.constant 141 : index
    %637 = memref.load %arg5[%c141] : memref<144xf32, #tpu.memory_space<smem>>
    %638 = vector.broadcast %637 : f32 to vector<16x16xf32>
    %639 = arith.mulf %638, %598 : vector<16x16xf32>
    %640 = arith.addf %595, %639 : vector<16x16xf32>
    %c142 = arith.constant 142 : index
    %641 = memref.load %arg5[%c142] : memref<144xf32, #tpu.memory_space<smem>>
    %642 = vector.broadcast %641 : f32 to vector<16x16xf32>
    %643 = arith.mulf %642, %599 : vector<16x16xf32>
    %644 = arith.addf %640, %643 : vector<16x16xf32>
    %c143 = arith.constant 143 : index
    %645 = memref.load %arg5[%c143] : memref<144xf32, #tpu.memory_space<smem>>
    %646 = vector.broadcast %645 : f32 to vector<16x16xf32>
    %647 = arith.mulf %646, %600 : vector<16x16xf32>
    %648 = arith.addf %644, %647 : vector<16x16xf32>
    %cst_23 = arith.constant 0.000000e+00 : f32
    %649 = vector.broadcast %cst_23 : f32 to vector<16x16xf32>
    %650 = arith.maximumf %612, %649 : vector<16x16xf32>
    %c0_24 = arith.constant 0 : index
    %c0_25 = arith.constant 0 : index
    %c0_26 = arith.constant 0 : index
    %c0_27 = arith.constant 0 : index
    %651 = vector.load %arg7[%c0_24, %c0_25, %c0_26, %c0_27] : memref<1x4x16x16xf32, #tpu.memory_space<vmem>>, vector<1x1x16x16xf32>
    %652 = vector.shape_cast %651 : vector<1x1x16x16xf32> to vector<16x16xf32>
    %653 = vector.shape_cast %650 : vector<16x16xf32> to vector<1x1x16x16xf32>
    tpu.vector_store %arg7[%c0_24, %c0_25, %c0_26, %c0_27], %653 {strides = array<i32>} : memref<1x4x16x16xf32, #tpu.memory_space<vmem>>, vector<1x1x16x16xf32>,
    %cst_28 = arith.constant 0.000000e+00 : f32
    %654 = vector.broadcast %cst_28 : f32 to vector<16x16xf32>
    %655 = arith.maximumf %624, %654 : vector<16x16xf32>
    %c0_29 = arith.constant 0 : index
    %c1_30 = arith.constant 1 : index
    %c0_31 = arith.constant 0 : index
    %c0_32 = arith.constant 0 : index
    %656 = vector.load %arg7[%c0_29, %c1_30, %c0_31, %c0_32] : memref<1x4x16x16xf32, #tpu.memory_space<vmem>>, vector<1x1x16x16xf32>
    %657 = vector.shape_cast %656 : vector<1x1x16x16xf32> to vector<16x16xf32>
    %658 = vector.shape_cast %655 : vector<16x16xf32> to vector<1x1x16x16xf32>
    tpu.vector_store %arg7[%c0_29, %c1_30, %c0_31, %c0_32], %658 {strides = array<i32>} : memref<1x4x16x16xf32, #tpu.memory_space<vmem>>, vector<1x1x16x16xf32>,
    %cst_33 = arith.constant 0.000000e+00 : f32
    %659 = vector.broadcast %cst_33 : f32 to vector<16x16xf32>
    %660 = arith.maximumf %636, %659 : vector<16x16xf32>
    %c0_34 = arith.constant 0 : index
    %c2_35 = arith.constant 2 : index
    %c0_36 = arith.constant 0 : index
    %c0_37 = arith.constant 0 : index
    %661 = vector.load %arg7[%c0_34, %c2_35, %c0_36, %c0_37] : memref<1x4x16x16xf32, #tpu.memory_space<vmem>>, vector<1x1x16x16xf32>
    %662 = vector.shape_cast %661 : vector<1x1x16x16xf32> to vector<16x16xf32>
    %663 = vector.shape_cast %660 : vector<16x16xf32> to vector<1x1x16x16xf32>
    tpu.vector_store %arg7[%c0_34, %c2_35, %c0_36, %c0_37], %663 {strides = array<i32>} : memref<1x4x16x16xf32, #tpu.memory_space<vmem>>, vector<1x1x16x16xf32>,
    %cst_38 = arith.constant 0.000000e+00 : f32
    %664 = vector.broadcast %cst_38 : f32 to vector<16x16xf32>
    %665 = arith.maximumf %648, %664 : vector<16x16xf32>
    %c0_39 = arith.constant 0 : index
    %c3_40 = arith.constant 3 : index
    %c0_41 = arith.constant 0 : index
    %c0_42 = arith.constant 0 : index
    %666 = vector.load %arg7[%c0_39, %c3_40, %c0_41, %c0_42] : memref<1x4x16x16xf32, #tpu.memory_space<vmem>>, vector<1x1x16x16xf32>
    %667 = vector.shape_cast %666 : vector<1x1x16x16xf32> to vector<16x16xf32>
    %668 = vector.shape_cast %665 : vector<16x16xf32> to vector<1x1x16x16xf32>
    tpu.vector_store %arg7[%c0_39, %c3_40, %c0_41, %c0_42], %668 {strides = array<i32>} : memref<1x4x16x16xf32, #tpu.memory_space<vmem>>, vector<1x1x16x16xf32>,
    return
  }
  func.func @transform_0(%arg0: i32, %arg1: i32) -> (i32, i32, i32) {
    %c0_i32 = arith.constant 0 : i32
    %c0_i32_0 = arith.constant 0 : i32
    %c0_i32_1 = arith.constant 0 : i32
    return %arg0, %c0_i32, %c0_i32_0 : i32, i32, i32
  }
  func.func @transform_1(%arg0: i32, %arg1: i32) -> (i32, i32) {
    %c0_i32 = arith.constant 0 : i32
    %c0_i32_0 = arith.constant 0 : i32
    %c0_i32_1 = arith.constant 0 : i32
    return %c0_i32, %c0_i32_0 : i32, i32
  }
  func.func @transform_2(%arg0: i32, %arg1: i32) -> (i32, i32) {
    %c0_i32 = arith.constant 0 : i32
    %c0_i32_0 = arith.constant 0 : i32
    return %arg1, %c0_i32 : i32, i32
  }
  func.func @transform_3(%arg0: i32, %arg1: i32) -> i32 {
    %c0_i32 = arith.constant 0 : i32
    %c0_i32_0 = arith.constant 0 : i32
    return %c0_i32 : i32
  }
  func.func @transform_4(%arg0: i32, %arg1: i32) -> i32 {
    %c0_i32 = arith.constant 0 : i32
    %c0_i32_0 = arith.constant 0 : i32
    return %c0_i32 : i32
  }
  func.func @transform_5(%arg0: i32, %arg1: i32) -> (i32, i32, i32, i32) {
    %c0_i32 = arith.constant 0 : i32
    %c0_i32_0 = arith.constant 0 : i32
    %c0_i32_1 = arith.constant 0 : i32
    return %arg0, %c0_i32, %arg1, %c0_i32_0 : i32, i32, i32, i32
  }
}

</mosaic_0001>

<bundles_post_ra>
// kernel: tpu_custom_call.1
= control target key start
LH: loop header
LB: loop body
LE: loop exit
PB: predicated region body
PF: predicated region fallthrough
CT: control target
= control target key end

     0   :  { %s4970_s0 = inlined_call_operand.vmem [shape: f32[2,32,8], index: 0, kind: input, shape index: {}]   ;;  %s4971_s1 = inlined_call_operand.vmem [shape: f32[8,48], index: 1, kind: input, shape index: {}]   ;;  %s4972_s2 = inlined_call_operand.vmem [shape: f32[48,8], index: 2, kind: input, shape index: {}]   ;;  %s4973_s3 = inlined_call_operand.vmem [shape: f32[144], index: 3, kind: input, shape index: {}]   ;;  %s4974_s4 = inlined_call_operand.vmem [shape: f32[4], index: 4, kind: input, shape index: {}]   ;;  %s4975_s5 = inlined_call_operand.hbm [shape: f32[2,4,16,16], index: 5, kind: output, shape index: {}]  }
   0x1   :  { %5145 = sst [smem:[#allocation135_spill]] %s4970_s0 }
   0x2   :  { %5146 = sst [smem:[#allocation136_spill]] %s4971_s1 }
   0x3   :  { %5147 = sst [smem:[#allocation137_spill]] %s4972_s2 }
   0x4   :  { %5148 = sst [smem:[#allocation138_spill]] %s4973_s3 }
   0x5   :  { %5149 = sst [smem:[#allocation139_spill]] %s4974_s4 }
   0x6   :  { %5150 = sst [smem:[#allocation140_spill]] %s4975_s5 }
   0x7   :  { %10 = vsyncpa [#allocation4], 0 }
   0x8   :  { %11 = vsyncpa [#allocation6], 0 }
   0x9   :  { %12 = vsyncpa [#allocation3], 0 }
   0xa   :  { %14 = vsyncpa [#allocation3 + $0x1], 0  ;;  %s3314_s18 = smov 0   ;;  %s3316_s19 = smov 0  }
   0xb   :  { %s3318_s20 = smov 0   ;;  %s3320_s21 = smov 0  }
   0xc   :  { %s3322_s22 = smov 0   ;;  %s3324_s23 = smov 0  }
   0xd LB: > { %5151 = sst [smem:[#allocation11_spill]] %s3255_s18  ;;  %s2600_s24 = sadd.s32 4294967295, %s3275_s23   ;;  %s3275_s23 = sphi %s3324_s23, %s20_s23   ;;  %s3271_s22 = sphi %s3322_s22, %s5666_s22   ;;  %s3267_s21 = sphi %s3320_s21, %s5665_s21   ;;  %s3263_s20 = sphi %s3318_s20, %s5664_s20   ;;  %s3259_s19 = sphi %s3316_s19, %s5663_s19   ;;  %s3255_s18 = sphi %s3314_s18, %s5662_s18  }
   0xe   : > { %5152 = sst [smem:[#allocation12_spill]] %s3259_s19  ;;  %s2601_s25 = sadd.s32 4294967294, %s3275_s23  }
   0xf   : > { %5153 = sst [smem:[#allocation13_spill]] %s3263_s20  ;;  %s32_s26 = sadd.s32 1, %s3271_s22 }
  0x10   : > { %5154 = sst [smem:[#allocation14_spill]] %s3267_s21  ;;  %s156_s27 = sadd.s32 1, %s3263_s20 }
  0x11   : > { %5155 = sst [smem:[#allocation15_spill]] %s3271_s22  ;;  %p34_p0 = scmp.ge.s32.totalorder %s32_s26, 2 }
  0x12   : > { %5156 = sst [smem:[#allocation16_spill]] %s3275_s23  ;;  %p166_p1 = scmp.ne.s32.totalorder %s3263_s20, %s3259_s19 }
  0x13   : > { %p167_p2 = scmp.eq.s32.totalorder %s2600_s24, 1  ;;  %p172_p3 = scmp.ne.s32.totalorder %s3259_s19, %s3255_s18 }
  0x14   : > { %s5668_s26 = smov (%p34_p0, %s32_s26), 0  ;;  %p173_p5 = scmp.eq.s32.totalorder %s2601_s25, 1 }
  0x15   : > { %5157 = sst [smem:[#allocation17_spill]] %s5668_s26  ;;  %p3354_p4 = por %p167_p2, %p166_p1 }
  0x16   : > { %s151_s29 = ssub.s32 %s3271_s22, %s5668_s26  ;;  %p2602_p6 = scmp.ge.s32.totalorder %s3275_s23, 1 }
  0x17   : > { %s5158_s28 = scalar_select %p3354_p4, 1, 0 }
  0x18   : > { %p154_p7 = scmp.eq.s32.totalorder %s151_s29, 0  ;;  %p3361_p8 = por %p173_p5, %p172_p3 }
  0x19   : > { %5159 = sst [smem:[#allocation18_spill]] %s5158_s28  ;;  %p180_p9 = scmp.lt.s32.totalorder %s3275_s23, 3 }
  0x1a   : > { %s5160_s30 = scalar_select %p3361_p8, 1, 0 }
  0x1b   : > { %s3367_s6 = scalar_select %p154_p7, %s3263_s20, %s156_s27  }
  0x1c   : > { %5161 = sst [smem:[#allocation19_spill]] %s5160_s30  ;;  %p3369_p10 = pnand %p2602_p6, %p180_p9 }
  0x1d   : > { %5162 = sst [smem:[#allocation20_spill]] %s3367_s6  ;;  %p3373_p11 = scmp.eq.s32.totalorder %s2600_s24, 0 }
  0x1e   : > { %s5163_s7 = scalar_select %p3369_p10, 1, 0 }
  0x1f   : > { %s5164_s8 = scalar_select %p3373_p11, 1, 0 }
  0x20   : > { %s5165_s3 = sld [smem:[#allocation138_spill]]  ;;  %p3089_p12 = pneg %p3369_p10 }
  0x21   : > { %s5166_s4 = sld [smem:[#allocation139_spill]] }
  0x22   : > { %p3387_p13 = pnand %p3373_p11, %p3089_p12 }
  0x24   : > { %p3161_p1 = pneg %p3387_p13 }
  0x26   : > { %s205_s11 = sshll.u32 %s5165_s3, 4  ;;  %s206_s11 = int_to_ptr.vmem [resolvable:$true] %s205_s11 }
  0x27   : > { %s216_s14 = sshll.u32 %s5166_s4, 4  ;;  %s3159_s16 = scalar_lea.vmem %s206_s11, 32  ;;  %s217_s14 = int_to_ptr.vmem [resolvable:$true] %s216_s14 }
  0x28   : > { %p3160_p0 = scmp.ne.s32.totalorder %s206_s11, %s3159_s16  ;;  %p3167_p5 = scmp.lt.s32.totalorder %s206_s11, %s206_s11 }
  0x29   : > { %p3168_p6 = scmp.lt.s32.totalorder %s3159_s16, %s3159_s16 }
  0x2a   : > { %p3162_p2 = pnand %p3161_p1, %p3160_p0 }
  0x2b   : > { %p3169_p7 = por %p3168_p6, %p3167_p5 }
  0x2c   : > { %p3163_p3 = pneg %p3162_p2 }
  0x2e   : > { %p3170_p9 = pnand %p3169_p7, %p3163_p3 }
  0x30   : > { %3173 = shalt.err (!%p3170_p9)
}
  0x31   : > { %s3277_s17 = smov [#allocation2]   ;;  %s3174_s24 = scalar_lea.vmem %s217_s14, 16 }
  0x32   : > { %3092 = dma.vmem_to_smem (!%p3387_p13), %s206_s11, 32, %s3277_s17, [#allocation4]  }
  0x33   : > { %p3175_p12 = scmp.ne.s32.totalorder %s217_s14, %s3174_s24  ;;  %p3182_p11 = scmp.lt.s32.totalorder %s217_s14, %s217_s14 }
  0x34   : > { %p3183_p10 = scmp.lt.s32.totalorder %s3174_s24, %s3174_s24 }
  0x35   : > { %p3177_p8 = pnand %p3175_p12, %p3161_p1 }
  0x36   : > { %p3184_p0 = por %p3183_p10, %p3182_p11 }
  0x37   : > { %p3178_p4 = pneg %p3177_p8 }
  0x39   : > { %p3185_p2 = pnand %p3184_p0, %p3178_p4 }
  0x3b   : > { %3188 = shalt.err (!%p3185_p2)
}
  0x3c   : > { %s3278_s25 = smov [#allocation5]   ;;  %p5168_p3 = scmp.ne.s32.totalorder %s5163_s7, 0 }
  0x3d   : > { %3095 = dma.vmem_to_smem (!%p3387_p13), %s217_s14, 16, %s3278_s25, [#allocation6]  }
  0x3e   : > { %237 = sbr.rel (%p5168_p3) target bundleno = 825 (0x339), region = 40 }
  0x45   : > { %p5169_p5 = scmp.ne.s32.totalorder %s5164_s8, 0 }
  0x47   : > { %3242 = dma.done.wait (%p5169_p5), [#allocation4], 32  }
  0x48   : > { %3244 = vsyncadd (%p5169_p5), [#allocation4], 4294967264 }
  0x49   : > { %3246 = dma.done.wait (%p5169_p5), [#allocation6], 16  }
  0x4a   : > { %3248 = vsyncadd (%p5169_p5), [#allocation6], 4294967280 }
  0x4b   : > { %247 = sfence }
  0x4c   : > { %s5170_s1 = sld [smem:[#allocation136_spill]]  ;;  %p275_p4 = scmp.lt.s32.totalorder %s3267_s21, 1  ;;  %vm292_vm0 = vcmask 64512   ;;  %vm2456_vm1 = vcmask 130048  }
  0x4d   : > { %s5171_s0 = sld [smem:[#allocation135_spill]]  ;;  %s5172_s2 = sld [smem:[#allocation137_spill]] }
  0x4e   : > { %s276_s7 = scalar_select %p275_p4, %s3267_s21, 1 }
  0x4f   : > { %s3279_s14 = smov 112   ;;  %s3280_s25 = smov 96  }
  0x50   : > { %s2846_s9 = sshll.u32 %s276_s7, 5  ;;  %s3601_s12 = sld [smem:[#allocation5 + $0x1]] }
  0x51   : > { %s3603_s13 = sld [smem:[#allocation5 + $0x2]]  ;;  %s3607_s15 = sld [smem:[#allocation2]] }
  0x52   : > { %v291_v0 = vld [vmem:[%s5170_s1] sm:$0xff]  ;;  %s3609_s16 = sld [smem:[#allocation2 + $0x24]]  ;;  %s3611_s17 = sld [smem:[#allocation2 + $0x48]] }
  0x53   : > { %2937 = vmatprep.subr.mxu0 %v291_v0  ;;  %3077 = vmatprep.subr.mxu1 %v291_v0  ;;  %s279_s8 = scalar_lea.vmem %s5171_s0, %s2846_s9  ;;  %v3422_v5 = vld [vmem:[%s5172_s2] sm:$0xff]  ;;  %v3433_v10 = vld [vmem:[%s5172_s2 + $0x8] sm:$0xff]  ;;  %v3438_v11 = vld [vmem:[%s5172_s2 + $0x10] sm:$0xff]  ;;  %s3613_s24 = sld [smem:[#allocation2 + $0x6c]] }
  0x54   : > { %2938 = vmatpush3.msra.mxu0 %v291_v0  ;;  %3078 = vmatpush3.msra.mxu1 %v291_v0  ;;  %v287_v1 = vld [vmem:[%s279_s8] sm:$0xff]  ;;  %v288_v2 = vld [vmem:[%s279_s8 + $0x8] sm:$0xff]  ;;  %v289_v3 = vld [vmem:[%s279_s8 + $0x10] sm:$0xff]  ;;  %s3617_s27 = sld [smem:[#allocation2 + $0x25]]  ;;  %s3619_s29 = sld [smem:[#allocation2 + $0x49]] }
  0x55   : > { %2939 = vmatprep.mubr.msk.f32.mxu0 %vm292_vm0, %v287_v1  ;;  %2942 = vmatprep.mubr.msk.f32.mxu1 %vm292_vm0, %v289_v3  ;;  %v290_v4 = vld [vmem:[%s279_s8 + $0x18] sm:$0xff]  ;;  %v3452_v13 = vld [vmem:[%s5172_s2 + $0x20] sm:$0xff]  ;;  %v3461_v14 = vld [vmem:[%s5172_s2 + $0x28] sm:$0xff]  ;;  %s3599_s8 = sld [smem:[#allocation5]]  ;;  %s3621_s7 = sld [smem:[#allocation2 + $0x6d]] }
  0x56   : > { %2940 = vmatmul.mubr.msk.f32.vlgmr.msra.gmra.mrb[0].mxu0 %vm292_vm0, %v288_v2  ;;  %2943 = vmatmul.mubr.msk.f32.vlgmr.msra.gmra.mrb[0].mxu1 %vm292_vm0, %v290_v4  ;;  %v3447_v12 = vld [vmem:[%s5172_s2 + $0x18] sm:$0xff]  ;;  %s3623_s9 = sld [smem:[#allocation2 + $0x2]]  ;;  %s3625_s10 = sld [smem:[#allocation2 + $0x26]]  ;;  %v399_v24 = vstv %s3601_s12 }
  0x57   : > { %2947 = vmatprep.mubr.msk.f32.mxu1 %vm292_vm0, %v3422_v5  ;;  %2958 = vmatprep.mubr.msk.f32.mxu0 %vm292_vm0, %v3422_v5  ;;  %s3627_s11 = sld [smem:[#allocation2 + $0x4a]]  ;;  %s3629_s0 = sld [smem:[#allocation2 + $0x6e]]  ;;  %v401_v25 = vstv %s3603_s13  ;;  %v518_v27 = vstv %s3607_s15 }
  0x58   : > { %v536_v28 = vstv %s3609_s16  ;;  %v554_v29 = vstv %s3611_s17  ;;  %s3667_s12 = sld [smem:[#allocation2 + $0x4b]]  ;;  %s3669_s13 = sld [smem:[#allocation2 + $0x6f]] }
  0x59   : > { %v572_v30 = vstv %s3613_s24  ;;  %s3673_s15 = sld [smem:[#allocation2 + $0x28]]  ;;  %s3675_s16 = sld [smem:[#allocation2 + $0x4c]] }
  0x5a   : > { %v542_v32 = vstv %s3617_s27  ;;  %v560_v33 = vstv %s3619_s29  ;;  %s3677_s17 = sld [smem:[#allocation2 + $0x70]]  ;;  %s3679_s24 = sld [smem:[#allocation2 + $0x5]] }
  0x5b   : > { %v397_v23 = vstv %s3599_s8  ;;  %v578_v34 = vstv %s3621_s7  ;;  %s3665_s8 = sld [smem:[#allocation2 + $0x27]]  ;;  %s3683_s27 = sld [smem:[#allocation2 + $0x29]] }
  0x5c   : > { %v530_v36 = vstv %s3623_s9  ;;  %v548_v37 = vstv %s3625_s10  ;;  %s3685_s29 = sld [smem:[#allocation2 + $0x4d]]  ;;  %s3687_s7 = sld [smem:[#allocation2 + $0x71]] }
  0x5d   : > { %v566_v38 = vstv %s3627_s11  ;;  %v584_v39 = vstv %s3629_s0  ;;  %s3663_s0 = sld [smem:[#allocation2 + $0x3]]  ;;  %s3689_s9 = sld [smem:[#allocation2 + $0x2a]] }
  0x5e   : > { %5175 = sst [smem:[#allocation23_spill]] %s3667_s12  ;;  %s3691_s10 = sld [smem:[#allocation2 + $0x4e]] }
  0x5f   : > { %5176 = sst [smem:[#allocation24_spill]] %s3669_s13  ;;  %s3693_s11 = sld [smem:[#allocation2 + $0x72]] }
  0x60   : > { %5178 = sst [smem:[#allocation26_spill]] %s3673_s15  ;;  %s3697_s2 = sld [smem:[#allocation2 + $0x2b]] }
  0x61   : > { %5174 = sst [smem:[#allocation22_spill]] %s3665_s8  ;;  %s3695_s1 = sld [smem:[#allocation2 + $0x7]] }
  0x62   : > { %5179 = sst [smem:[#allocation27_spill]] %s3675_s16  ;;  %s3699_s3 = sld [smem:[#allocation2 + $0x4f]] }
  0x63   : > { %5173 = sst [smem:[#allocation21_spill]] %s3663_s0  ;;  %s3701_s4 = sld [smem:[#allocation2 + $0x73]] }
  0x64   : > { %5180 = sst [smem:[#allocation28_spill]] %s3677_s17  ;;  %s3703_s26 = sld [smem:[#allocation2 + $0x8]] }
  0x65   : > { %5181 = sst [smem:[#allocation29_spill]] %s3679_s24  ;;  %s3705_s22 = sld [smem:[#allocation2 + $0x9]] }
  0x66   : > { %5183 = sst [smem:[#allocation31_spill]] %s3683_s27  ;;  %s3709_s20 = sld [smem:[#allocation2 + $0x50]] }
  0x67   : > { %5184 = sst [smem:[#allocation32_spill]] %s3685_s29  ;;  %s3707_s6 = sld [smem:[#allocation2 + $0x2c]] }
  0x68   : > { %5185 = sst [smem:[#allocation33_spill]] %s3687_s7  ;;  %s3711_s30 = sld [smem:[#allocation2 + $0x74]] }
  0x69   : > { %5186 = sst [smem:[#allocation34_spill]] %s3689_s9  ;;  %s3713_s18 = sld [smem:[#allocation2 + $0x2d]] }
  0x6a   : > { %5187 = sst [smem:[#allocation35_spill]] %s3691_s10  ;;  %s3715_s23 = sld [smem:[#allocation2 + $0x51]] }
  0x6b   : > { %5188 = sst [smem:[#allocation36_spill]] %s3693_s11  ;;  %s3717_s5 = sld [smem:[#allocation2 + $0x75]] }
  0x6c   : > { %5189 = sst [smem:[#allocation37_spill]] %s3695_s1  ;;  %s3721_s21 = sld [smem:[#allocation2 + $0x2e]] }
  0x6d   : > { %5190 = sst [smem:[#allocation38_spill]] %s3697_s2  ;;  %s3719_s28 = sld [smem:[#allocation2 + $0xa]] }
  0x6e   : > { %5191 = sst [smem:[#allocation39_spill]] %s3699_s3  ;;  %s3723_s19 = sld [smem:[#allocation2 + $0x52]] }
  0x6f   : > { %5192 = sst [smem:[#allocation40_spill]] %s3701_s4 }
  0x70   : > { %5193 = sst [smem:[#allocation41_spill]] %s3703_s26 }
  0x71   : > { %5194 = sst [smem:[#allocation42_spill]] %s3705_s22  ;;  %s3725_s26 = sld [smem:[#allocation2 + $0x76]] }
  0x72   : > { %5195 = sst [smem:[#allocation43_spill]] %s3707_s6  ;;  %s3727_s22 = sld [smem:[#allocation2 + $0xb]] }
  0x73   : > { %5196 = sst [smem:[#allocation44_spill]] %s3709_s20  ;;  %s3729_s6 = sld [smem:[#allocation2 + $0xc]] }
  0x74   : > { %5197 = sst [smem:[#allocation45_spill]] %s3711_s30  ;;  %s3731_s20 = sld [smem:[#allocation2 + $0x2f]] }
  0x75   : > { %5198 = sst [smem:[#allocation46_spill]] %s3713_s18  ;;  %s3735_s18 = sld [smem:[#allocation2 + $0x77]] }
  0x76   : > { %5199 = sst [smem:[#allocation47_spill]] %s3715_s23  ;;  %s3733_s30 = sld [smem:[#allocation2 + $0x53]] }
  0x77   : > { %5200 = sst [smem:[#allocation48_spill]] %s3717_s5  ;;  %s3737_s23 = sld [smem:[#allocation2 + $0x30]] }
  0x78   : > { %5201 = sst [smem:[#allocation49_spill]] %s3719_s28  ;;  %s3739_s5 = sld [smem:[#allocation2 + $0x54]] }
  0x79   : > { %5202 = sst [smem:[#allocation50_spill]] %s3721_s21  ;;  %s3741_s28 = sld [smem:[#allocation2 + $0x78]] }
  0x7a   : > { %5203 = sst [smem:[#allocation51_spill]] %s3723_s19  ;;  %s3743_s21 = sld [smem:[#allocation2 + $0xd]] }
  0x7b   : > { %5204 = sst [smem:[#allocation52_spill]] %s3725_s26  ;;  %s3747_s26 = sld [smem:[#allocation2 + $0x55]] }
  0x7c   : > { %5205 = sst [smem:[#allocation53_spill]] %s3727_s22  ;;  %s3745_s19 = sld [smem:[#allocation2 + $0x31]] }
  0x7d   : > { %5206 = sst [smem:[#allocation54_spill]] %s3729_s6  ;;  %s3749_s22 = sld [smem:[#allocation2 + $0x79]] }
  0x7e   : > { %5207 = sst [smem:[#allocation55_spill]] %s3731_s20  ;;  %s3751_s6 = sld [smem:[#allocation2 + $0xe]] }
  0x7f   : > { %5208 = sst [smem:[#allocation56_spill]] %s3733_s30  ;;  %s3753_s20 = sld [smem:[#allocation2 + $0xf]] }
  0x80   : > { %5209 = sst [smem:[#allocation57_spill]] %s3735_s18  ;;  %s3755_s30 = sld [smem:[#allocation2 + $0x32]] }
  0x81   : > { %5210 = sst [smem:[#allocation58_spill]] %s3737_s23  ;;  %s3757_s18 = sld [smem:[#allocation2 + $0x56]] }
  0x82   : > { %5211 = sst [smem:[#allocation59_spill]] %s3739_s5  ;;  %s3759_s23 = sld [smem:[#allocation2 + $0x7a]] }
  0x83   : > { %5212 = sst [smem:[#allocation60_spill]] %s3741_s28  ;;  %s3761_s5 = sld [smem:[#allocation2 + $0x33]] }
  0x84   : > { %5213 = sst [smem:[#allocation61_spill]] %s3743_s21  ;;  %s3763_s28 = sld [smem:[#allocation2 + $0x57]] }
  0x85   : > { %5214 = sst [smem:[#allocation62_spill]] %s3745_s19  ;;  %s3767_s19 = sld [smem:[#allocation2 + $0x10]] }
  0x86   : > { %5215 = sst [smem:[#allocation63_spill]] %s3747_s26  ;;  %s3765_s21 = sld [smem:[#allocation2 + $0x7b]] }
  0x87   : > { %5216 = sst [smem:[#allocation64_spill]] %s3749_s22  ;;  %s3769_s26 = sld [smem:[#allocation2 + $0x34]] }
  0x88   : > { %5217 = sst [smem:[#allocation65_spill]] %s3751_s6  ;;  %s3771_s22 = sld [smem:[#allocation2 + $0x58]] }
  0x89   : > { %5218 = sst [smem:[#allocation66_spill]] %s3753_s20  ;;  %s3773_s6 = sld [smem:[#allocation2 + $0x7c]] }
  0x8a   : > { %5219 = sst [smem:[#allocation67_spill]] %s3755_s30  ;;  %s3775_s20 = sld [smem:[#allocation2 + $0x11]] }
  0x8b   : > { %5220 = sst [smem:[#allocation68_spill]] %s3757_s18  ;;  %s3777_s30 = sld [smem:[#allocation2 + $0x12]] }
  0x8c   : > { %5221 = sst [smem:[#allocation69_spill]] %s3759_s23  ;;  %s3779_s18 = sld [smem:[#allocation2 + $0x35]] }
  0x8d   : > { %5222 = sst [smem:[#allocation70_spill]] %s3761_s5  ;;  %s3781_s23 = sld [smem:[#allocation2 + $0x59]] }
  0x8e   : > { %5223 = sst [smem:[#allocation71_spill]] %s3763_s28  ;;  %s3783_s5 = sld [smem:[#allocation2 + $0x7d]] }
  0x8f   : > { %5224 = sst [smem:[#allocation72_spill]] %s3765_s21  ;;  %s3785_s28 = sld [smem:[#allocation2 + $0x36]] }
  0x90   : > { %5225 = sst [smem:[#allocation73_spill]] %s3767_s19  ;;  %s3787_s21 = sld [smem:[#allocation2 + $0x5a]] }
  0x91   : > { %5226 = sst [smem:[#allocation74_spill]] %s3769_s26  ;;  %s3789_s19 = sld [smem:[#allocation2 + $0x7e]] }
  0x92   : > { %5227 = sst [smem:[#allocation75_spill]] %s3771_s22  ;;  %s3791_s26 = sld [smem:[#allocation2 + $0x13]] }
  0x93   : > { %5228 = sst [smem:[#allocation76_spill]] %s3773_s6  ;;  %s3793_s6 = sld [smem:[#allocation2 + $0x37]] }
  0x94   : > { %5229 = sst [smem:[#allocation77_spill]] %s3775_s20  ;;  %s3795_s20 = sld [smem:[#allocation2 + $0x5b]] }
  0x95   : > { %5230 = sst [smem:[#allocation78_spill]] %s3777_s30  ;;  %s3797_s30 = sld [smem:[#allocation2 + $0x7f]] }
  0x96   : > { %5231 = sst [smem:[#allocation79_spill]] %s3779_s18  ;;  %s3949_s18 = sld [smem:[#allocation2 + $0x8a]] }
  0x97   : > { %5232 = sst [smem:[#allocation80_spill]] %s3781_s23  ;;  %s3799_s23 = sld [smem:[#allocation2 + $0x14]] }
  0x98   : > { %5233 = sst [smem:[#allocation81_spill]] %s3783_s5  ;;  %s3801_s5 = sld [smem:[#allocation2 + $0x15]] }
  0x99   : > { %5234 = sst [smem:[#allocation82_spill]] %s3785_s28  ;;  %s3803_s28 = sld [smem:[#allocation2 + $0x38]] }
  0x9a   : > { %5235 = sst [smem:[#allocation83_spill]] %s3787_s21  ;;  %s3815_s21 = sld [smem:[#allocation2 + $0x16]] }
  0x9b   : > { %5236 = sst [smem:[#allocation84_spill]] %s3789_s19  ;;  %s3805_s19 = sld [smem:[#allocation2 + $0x5c]] }
  0x9c   : > { %5237 = sst [smem:[#allocation85_spill]] %s3791_s26  ;;  %s3807_s26 = sld [smem:[#allocation2 + $0x80]] }
  0x9d   : > { %5238 = sst [smem:[#allocation86_spill]] %s3793_s6  ;;  %s3809_s6 = sld [smem:[#allocation2 + $0x39]] }
  0x9e   : > { %5239 = sst [smem:[#allocation87_spill]] %s3795_s20  ;;  %s3811_s20 = sld [smem:[#allocation2 + $0x5d]] }
  0x9f   : > { %5240 = sst [smem:[#allocation88_spill]] %s3797_s30  ;;  %s3813_s30 = sld [smem:[#allocation2 + $0x81]] }
  0xa0   : > { %5241 = sst [smem:[#allocation89_spill]] %s3799_s23 }
  0xa1   : > { %5242 = sst [smem:[#allocation90_spill]] %s3801_s5  ;;  %s3817_s5 = sld [smem:[#allocation2 + $0x3a]] }
  0xa2   : > { %5243 = sst [smem:[#allocation91_spill]] %s3803_s28  ;;  %s3819_s28 = sld [smem:[#allocation2 + $0x5e]] }
  0xa3   : > { %5244 = sst [smem:[#allocation92_spill]] %s3805_s19  ;;  %s3821_s19 = sld [smem:[#allocation2 + $0x82]] }
  0xa4   : > { %5245 = sst [smem:[#allocation93_spill]] %s3807_s26  ;;  %s4005_s23 = sld [smem:[#allocation2 + $0x46]] }
  0xa5   : > { %5246 = sst [smem:[#allocation94_spill]] %s3809_s6  ;;  %s3981_s6 = sld [smem:[#allocation2 + $0x8c]] }
  0xa6   : > { %5247 = sst [smem:[#allocation95_spill]] %s3811_s20  ;;  %s3827_s20 = sld [smem:[#allocation2 + $0x17]] }
  0xa7   : > { %5248 = sst [smem:[#allocation96_spill]] %s3813_s30  ;;  %s4013_s26 = sld [smem:[#allocation2 + $0x8e]] }
  0xa8   : > { %5249 = sst [smem:[#allocation97_spill]] %s3815_s21  ;;  %s3829_s21 = sld [smem:[#allocation2 + $0x18]] }
  0xa9   : > { %5250 = sst [smem:[#allocation98_spill]] %s3817_s5  ;;  %s3989_s5 = sld [smem:[#allocation2 + $0x45]] }
  0xaa   : > { %5251 = sst [smem:[#allocation99_spill]] %s3819_s28 }
  0xab   : > { %5252 = sst [smem:[#allocation100_spill]] %s3821_s19  ;;  %s3835_s19 = sld [smem:[#allocation2 + $0x3b]] }
  0xac   : > { %5253 = sst [smem:[#allocation101_spill]] %s3827_s20 }
  0xad   : > { %5346 = sst [smem:[#allocation133_spill]] %s3981_s6  ;;  %s3995_s6 = sld [smem:[#allocation2 + $0x69]] }
  0xae   : > { %5254 = sst [smem:[#allocation102_spill]] %s3829_s21 }
  0xaf   : > { %s5264_s21 = sld [smem:[#allocation46_spill]] }
  0xb0   : > { %5351 = sst [smem:[#allocation134_spill]] %s3989_s5 }
  0xb1   : > { %5255 = sst [smem:[#allocation103_spill]] %s3835_s19  ;;  %s3997_s19 = sld [smem:[#allocation2 + $0x8d]] }
  0xb2   : > { %s5413_s5 = sld [smem:[#allocation62_spill]] }
 0x129   : > { %v2941_v6 = vpop.f32.mrb[0].mxu0  ;;  %v3428_v7 = vpop.f32.mrb[0].mxu1 }
 0x12a   : > { %1098 = vrot.lane.b32.xlu1 %v2941_v6, %s3279_s14  ;;  %v371_v8 = vpop.f32.mrb[1].mxu0  ;;  %v381_v9 = vpop.f32.mrb[1].mxu1 }
 0x12b   : > { %590 = vrot.lane.b32.xlu0 %v371_v8, %s3279_s14  ;;  %2945 = vmatprep.subr.mxu1 %v371_v8 }
 0x12c   : > { %2946 = vmatpush3.msra.mxu1 %v371_v8 }
 0x12d   : > { %2948 = vmatmul.mubr.msk.f32.vlgmr.msra.gmra.mrb[2].mxu1 %vm292_vm0, %v3433_v10 }
 0x12e   : > { %1268 = vrot.lane.b32.xlu1 %v2941_v6, %s3280_s25  ;;  %2950 = vmatprep.mubr.msk.f32.mxu1 %vm292_vm0, %v3438_v11 }
 0x12f   : > { %760 = vrot.lane.b32.xlu0 %v371_v8, %s3280_s25 }
 0x131   : > { %2951 = vmatmul.mubr.msk.f32.gmra.mrb[4].mxu1 %vm292_vm0, %v3447_v12 }
 0x132   : > { %1776 = vrot.lane.b32.xlu1 %v381_v9, %s3280_s25  ;;  %2953 = vmatprep.mubr.msk.f32.mxu1 %vm292_vm0, %v3452_v13 }
 0x133   : > { %1606 = vrot.lane.b32.xlu0 %v381_v9, %s3279_s14 }
 0x135   : > { %2954 = vmatmul.mubr.msk.f32.gmra.mrb[6].mxu1 %vm292_vm0, %v3461_v14 }
 0x136   : > { %2284 = vrot.lane.b32.xlu1 %v3428_v7, %s3280_s25  ;;  %2969 = vmatprep.mubr.msk.f32.mxu1 %vm292_vm0, %v3422_v5  ;;  %s3615_s25 = sld [smem:[#allocation2 + $0x1]] }
 0x137   : > { %2114 = vrot.lane.b32.xlu0 %v3428_v7, %s3279_s14  ;;  %s3605_s14 = sld [smem:[#allocation5 + $0x3]] }
 0x13c   : > { %v524_v31 = vstv %s3615_s25  ;;  %s3681_s25 = sld [smem:[#allocation2 + $0x6]] }
 0x13d   : > { %v403_v26 = vstv %s3605_s14  ;;  %s3671_s14 = sld [smem:[#allocation2 + $0x4]] }
 0x142   : > { %5182 = sst [smem:[#allocation30_spill]] %s3681_s25 }
 0x143   : > { %5177 = sst [smem:[#allocation25_spill]] %s3671_s14 }
 0x19c   : > { %v1099_v15 = vpop.permute.xlu1 %1098 }
 0x19d   : > { %v591_v16 = vpop.permute.xlu0 %590 }
 0x19e   : > { %2956 = vmatprep.subr.mxu0 %v591_v16 }
 0x19f   : > { %2957 = vmatpush3.msra.mxu0 %v591_v16 }
 0x1a0   : > { %v1269_v17 = vpop.permute.xlu1 %1268  ;;  %2959 = vmatmul.mubr.msk.f32.vlgmr.msra.gmra.mrb[2].mxu0 %vm292_vm0, %v3433_v10  ;;  %2978 = vmatprep.subr.mxu0 %v2941_v6 }
 0x1a1   : > { %2979 = vmatpush3.msra.mxu0 %v2941_v6  ;;  %v761_v18 = vpop.permute.xlu0 %760  ;;  %2961 = vmatprep.mubr.msk.f32.mxu0 %vm292_vm0, %v3438_v11 }
 0x1a2   : > { %2967 = vmatprep.subr.mxu1 %v761_v18  ;;  %3000 = vmatprep.subr.mxu0 %v1269_v17 }
 0x1a3   : > { %2968 = vmatpush3.msra.mxu1 %v761_v18 }
 0x1a4   : > { %2962 = vmatmul.mubr.msk.f32.gmra.mrb[4].mxu0 %vm292_vm0, %v3447_v12  ;;  %2970 = vmatmul.mubr.msk.f32.vlgmr.msra.gmra.mrb[8].mxu1 %vm292_vm0, %v3433_v10  ;;  %v1777_v20 = vpop.permute.xlu1 %1776 }
 0x1a5   : > { %2989 = vmatprep.subr.mxu1 %v1099_v15  ;;  %2964 = vmatprep.mubr.msk.f32.mxu0 %vm292_vm0, %v3452_v13  ;;  %v1607_v19 = vpop.permute.xlu0 %1606 }
 0x1a6   : > { %2990 = vmatpush3.msra.mxu1 %v1099_v15  ;;  %2972 = vmatprep.mubr.msk.f32.mxu1 %vm292_vm0, %v3438_v11 }
 0x1a7   : > { %3011 = vmatprep.subr.mxu1 %v381_v9 }
 0x1a8   : > { %2965 = vmatmul.mubr.msk.f32.gmra.mrb[6].mxu0 %vm292_vm0, %v3461_v14  ;;  %2973 = vmatmul.mubr.msk.f32.gmra.mrb[10].mxu1 %vm292_vm0, %v3447_v12  ;;  %v2285_v22 = vpop.permute.xlu1 %2284 }
 0x1a9   : > { %2975 = vmatprep.mubr.msk.f32.mxu1 %vm292_vm0, %v3452_v13  ;;  %2980 = vmatprep.mubr.msk.f32.mxu0 %vm292_vm0, %v3422_v5  ;;  %v2115_v21 = vpop.permute.xlu0 %2114 }
 0x1ac   : > { %2976 = vmatmul.mubr.msk.f32.gmra.mrb[12].mxu1 %vm292_vm0, %v3461_v14  ;;  %2981 = vmatmul.mubr.msk.f32.vlgmr.msra.gmra.mrb[8].mxu0 %vm292_vm0, %v3433_v10 }
 0x1ad   : > { %3001 = vmatpush3.msra.mxu0 %v1269_v17  ;;  %2983 = vmatprep.mubr.msk.f32.mxu0 %vm292_vm0, %v3438_v11 }
 0x1ae   : > { %2991 = vmatprep.mubr.msk.f32.mxu1 %vm292_vm0, %v3422_v5  ;;  %3022 = vmatprep.subr.mxu0 %v1607_v19 }
 0x1b0   : > { %2984 = vmatmul.mubr.msk.f32.gmra.mrb[10].mxu0 %vm292_vm0, %v3447_v12  ;;  %2992 = vmatmul.mubr.msk.f32.vlgmr.msra.gmra.mrb[14].mxu1 %vm292_vm0, %v3433_v10 }
 0x1b1   : > { %3012 = vmatpush3.msra.mxu1 %v381_v9  ;;  %2986 = vmatprep.mubr.msk.f32.mxu0 %vm292_vm0, %v3452_v13 }
 0x1b2   : > { %2994 = vmatprep.mubr.msk.f32.mxu1 %vm292_vm0, %v3438_v11  ;;  %3033 = vmatprep.subr.mxu1 %v1777_v20 }
 0x1b4   : > { %2987 = vmatmul.mubr.msk.f32.gmra.mrb[12].mxu0 %vm292_vm0, %v3461_v14  ;;  %2995 = vmatmul.mubr.msk.f32.gmra.mrb[16].mxu1 %vm292_vm0, %v3447_v12 }
 0x1b5   : > { %2997 = vmatprep.mubr.msk.f32.mxu1 %vm292_vm0, %v3452_v13  ;;  %3002 = vmatprep.mubr.msk.f32.mxu0 %vm292_vm0, %v3422_v5 }
 0x1b8   : > { %2998 = vmatmul.mubr.msk.f32.gmra.mrb[18].mxu1 %vm292_vm0, %v3461_v14  ;;  %3003 = vmatmul.mubr.msk.f32.vlgmr.msra.gmra.mrb[14].mxu0 %vm292_vm0, %v3433_v10 }
 0x1b9   : > { %3023 = vmatpush3.msra.mxu0 %v1607_v19  ;;  %3005 = vmatprep.mubr.msk.f32.mxu0 %vm292_vm0, %v3438_v11 }
 0x1ba   : > { %3044 = vmatprep.subr.mxu0 %v3428_v7  ;;  %3013 = vmatprep.mubr.msk.f32.mxu1 %vm292_vm0, %v3422_v5 }
 0x1bc   : > { %3006 = vmatmul.mubr.msk.f32.gmra.mrb[16].mxu0 %vm292_vm0, %v3447_v12  ;;  %3014 = vmatmul.mubr.msk.f32.vlgmr.msra.gmra.mrb[20].mxu1 %vm292_vm0, %v3433_v10 }
 0x1bd   : > { %3034 = vmatpush3.msra.mxu1 %v1777_v20  ;;  %3008 = vmatprep.mubr.msk.f32.mxu0 %vm292_vm0, %v3452_v13 }
 0x1be   : > { %3016 = vmatprep.mubr.msk.f32.mxu1 %vm292_vm0, %v3438_v11  ;;  %3055 = vmatprep.subr.mxu1 %v2115_v21 }
 0x1c0   : > { %3009 = vmatmul.mubr.msk.f32.gmra.mrb[18].mxu0 %vm292_vm0, %v3461_v14  ;;  %3017 = vmatmul.mubr.msk.f32.gmra.mrb[22].mxu1 %vm292_vm0, %v3447_v12 }
 0x1c1   : > { %3019 = vmatprep.mubr.msk.f32.mxu1 %vm292_vm0, %v3452_v13  ;;  %3024 = vmatprep.mubr.msk.f32.mxu0 %vm292_vm0, %v3422_v5 }
 0x1c4   : > { %3020 = vmatmul.mubr.msk.f32.gmra.mrb[24].mxu1 %vm292_vm0, %v3461_v14  ;;  %3025 = vmatmul.mubr.msk.f32.vlgmr.msra.gmra.mrb[20].mxu0 %vm292_vm0, %v3433_v10 }
 0x1c5   : > { %3045 = vmatpush3.msra.mxu0 %v3428_v7  ;;  %3027 = vmatprep.mubr.msk.f32.mxu0 %vm292_vm0, %v3438_v11 }
 0x1c6   : > { %3066 = vmatprep.subr.mxu0 %v2285_v22  ;;  %3035 = vmatprep.mubr.msk.f32.mxu1 %vm292_vm0, %v3422_v5 }
 0x1c8   : > { %3028 = vmatmul.mubr.msk.f32.gmra.mrb[22].mxu0 %vm292_vm0, %v3447_v12  ;;  %3036 = vmatmul.mubr.msk.f32.vlgmr.msra.gmra.mrb[26].mxu1 %vm292_vm0, %v3433_v10 }
 0x1c9   : > { %3056 = vmatpush3.msra.mxu1 %v2115_v21  ;;  %3030 = vmatprep.mubr.msk.f32.mxu0 %vm292_vm0, %v3452_v13 }
 0x1ca   : > { %3038 = vmatprep.mubr.msk.f32.mxu1 %vm292_vm0, %v3438_v11 }
 0x1cc   : > { %3031 = vmatmul.mubr.msk.f32.gmra.mrb[24].mxu0 %vm292_vm0, %v3461_v14  ;;  %3039 = vmatmul.mubr.msk.f32.gmra.mrb[28].mxu1 %vm292_vm0, %v3447_v12 }
 0x1cd   : > { %3046 = vmatprep.mubr.msk.f32.mxu0 %vm292_vm0, %v3422_v5  ;;  %3041 = vmatprep.mubr.msk.f32.mxu1 %vm292_vm0, %v3452_v13 }
 0x1d0   : > { %3047 = vmatmul.mubr.msk.f32.vlgmr.msra.gmra.mrb[26].mxu0 %vm292_vm0, %v3433_v10  ;;  %3042 = vmatmul.mubr.msk.f32.gmra.mrb[30].mxu1 %vm292_vm0, %v3461_v14 }
 0x1d1   : > { %3067 = vmatpush3.msra.mxu0 %v2285_v22  ;;  %3049 = vmatprep.mubr.msk.f32.mxu0 %vm292_vm0, %v3438_v11 }
 0x1d2   : > { %3057 = vmatprep.mubr.msk.f32.mxu1 %vm292_vm0, %v3422_v5 }
 0x1d4   : > { %3050 = vmatmul.mubr.msk.f32.gmra.mrb[28].mxu0 %vm292_vm0, %v3447_v12  ;;  %3058 = vmatmul.mubr.msk.f32.vlgmr.msra.gmra.mrb[32].mxu1 %vm292_vm0, %v3433_v10 }
 0x1d5   : > { %3052 = vmatprep.mubr.msk.f32.mxu0 %vm292_vm0, %v3452_v13  ;;  %3060 = vmatprep.mubr.msk.f32.mxu1 %vm292_vm0, %v3438_v11 }
 0x1d8   : > { %3053 = vmatmul.mubr.msk.f32.gmra.mrb[30].mxu0 %vm292_vm0, %v3461_v14  ;;  %3061 = vmatmul.mubr.msk.f32.gmra.mrb[34].mxu1 %vm292_vm0, %v3447_v12 }
 0x1d9   : > { %3068 = vmatprep.mubr.msk.f32.mxu0 %vm292_vm0, %v3422_v5  ;;  %3063 = vmatprep.mubr.msk.f32.mxu1 %vm292_vm0, %v3452_v13 }
 0x1dc   : > { %3069 = vmatmul.mubr.msk.f32.vlgmr.msra.gmra.mrb[32].mxu0 %vm292_vm0, %v3433_v10  ;;  %3064 = vmatmul.mubr.msk.f32.gmra.mrb[36].mxu1 %vm292_vm0, %v3461_v14 }
 0x1dd   : > { %3071 = vmatprep.mubr.msk.f32.mxu0 %vm292_vm0, %v3438_v11 }
 0x1e0   : > { %3072 = vmatmul.mubr.msk.f32.gmra.mrb[34].mxu0 %vm292_vm0, %v3447_v12 }
 0x1e1   : > { %3074 = vmatprep.mubr.msk.f32.mxu0 %vm292_vm0, %v3452_v13 }
 0x1e4   : > { %3075 = vmatmul.mubr.msk.f32.gmra.mrb[36].mxu0 %vm292_vm0, %v3461_v14 }
 0x200   : > { %v2949_v35 = vpop.f32.mrb[2].mxu1 }
 0x201   : > { %v520_v40 = vmul.f32 %v2949_v35, %v518_v27  ;;  %v538_v41 = vmul.f32 %v2949_v35, %v536_v28  ;;  %v556_v42 = vmul.f32 %v2949_v35, %v554_v29  ;;  %v574_v43 = vmul.f32 %v2949_v35, %v572_v30  ;;  %v488_v44 = vpop.f32.mrb[3].mxu1 }
 0x202   : > { %v519_v45 = vmul.f32 %v518_v27, %v488_v44  ;;  %v537_v46 = vmul.f32 %v536_v28, %v488_v44  ;;  %v555_v47 = vmul.f32 %v554_v29, %v488_v44  ;;  %v573_v48 = vmul.f32 %v572_v30, %v488_v44 }
 0x203   : > { %v522_v49 = vadd.f32 %v520_v40, %v397_v23  ;;  %v540_v50 = vadd.f32 %v538_v41, %v399_v24  ;;  %v558_v51 = vadd.f32 %v556_v42, %v401_v25  ;;  %v576_v52 = vadd.f32 %v574_v43, %v403_v26 }
 0x204   : > { %v521_v53 = vadd.f32 %v519_v45, %v397_v23  ;;  %v539_v54 = vadd.f32 %v537_v46, %v399_v24  ;;  %v557_v55 = vadd.f32 %v555_v47, %v401_v25  ;;  %v575_v56 = vadd.f32 %v573_v48, %v403_v26  ;;  %v2952_v57 = vpop.f32.mrb[4].mxu1 }
 0x205   : > { %v526_v58 = vmul.f32 %v2952_v57, %v524_v31  ;;  %v544_v59 = vmul.f32 %v2952_v57, %v542_v32  ;;  %v562_v60 = vmul.f32 %v2952_v57, %v560_v33  ;;  %v580_v61 = vmul.f32 %v2952_v57, %v578_v34  ;;  %v498_v62 = vpop.f32.mrb[5].mxu1 }
 0x206   : > { %v525_v63 = vmul.f32 %v524_v31, %v498_v62  ;;  %v543_v0 = vmul.f32 %v542_v32, %v498_v62  ;;  %v561_v1 = vmul.f32 %v560_v33, %v498_v62  ;;  %v579_v2 = vmul.f32 %v578_v34, %v498_v62 }
 0x207   : > { %v528_v3 = vadd.f32 %v526_v58, %v522_v49  ;;  %v546_v4 = vadd.f32 %v544_v59, %v540_v50  ;;  %v564_v5 = vadd.f32 %v562_v60, %v558_v51  ;;  %v582_v6 = vadd.f32 %v580_v61, %v576_v52 }
 0x208   : > { %v527_v7 = vadd.f32 %v525_v63, %v521_v53  ;;  %v545_v8 = vadd.f32 %v543_v0, %v539_v54  ;;  %v563_v9 = vadd.f32 %v561_v1, %v557_v55  ;;  %v581_v10 = vadd.f32 %v579_v2, %v575_v56  ;;  %v2955_v11 = vpop.f32.mrb[6].mxu1 }
 0x209   : > { %v532_v12 = vmul.f32 %v2955_v11, %v530_v36  ;;  %v550_v13 = vmul.f32 %v2955_v11, %v548_v37  ;;  %v568_v14 = vmul.f32 %v2955_v11, %v566_v38  ;;  %v586_v15 = vmul.f32 %v2955_v11, %v584_v39  ;;  %v508_v16 = vpop.f32.mrb[7].mxu1 }
 0x20a   : > { %v531_v17 = vmul.f32 %v530_v36, %v508_v16  ;;  %v549_v18 = vmul.f32 %v548_v37, %v508_v16  ;;  %v567_v19 = vmul.f32 %v566_v38, %v508_v16  ;;  %v585_v20 = vmul.f32 %v584_v39, %v508_v16 }
 0x20b   : > { %v3647_v21 = vadd.f32 %v532_v12, %v528_v3  ;;  %v3649_v22 = vadd.f32 %v550_v13, %v546_v4  ;;  %v3651_v23 = vadd.f32 %v568_v14, %v564_v5  ;;  %v3653_v24 = vadd.f32 %v586_v15, %v582_v6 }
 0x20c   : > { %v3655_v25 = vadd.f32 %v531_v17, %v527_v7  ;;  %v3657_v26 = vadd.f32 %v549_v18, %v545_v8  ;;  %v3659_v27 = vadd.f32 %v567_v19, %v563_v9  ;;  %v3661_v28 = vadd.f32 %v585_v20, %v581_v10 }
 0x20d   : > { %v689_v29 = vstv %s3663_s0  ;;  %v707_v30 = vstv %s3665_s8  ;;  %v725_v31 = vstv %s3667_s12  ;;  %v743_v32 = vstv %s3669_s13  ;;  %s3837_s8 = sld [smem:[#allocation2 + $0x5f]]  ;;  %s5257_s13 = sld [smem:[#allocation41_spill]] }
 0x20e   : > { %v695_v33 = vstv %s3671_s14  ;;  %v713_v34 = vstv %s3673_s15  ;;  %v731_v35 = vstv %s3675_s16  ;;  %v749_v36 = vstv %s3677_s17  ;;  %s5258_s12 = sld [smem:[#allocation43_spill]]  ;;  %s3843_s0 = sld [smem:[#allocation2 + $0x83]] }
 0x20f   : > { %v701_v37 = vstv %s3679_s24  ;;  %v719_v38 = vstv %s3683_s27  ;;  %v737_v39 = vstv %s3685_s29  ;;  %v859_v40 = vstv %s3681_s25  ;;  %s5260_s14 = sld [smem:[#allocation44_spill]]  ;;  %s3845_s15 = sld [smem:[#allocation2 + $0x3c]] }
 0x210   : > { %s5262_s16 = sld [smem:[#allocation45_spill]]  ;;  %v755_v41 = vstv %s3687_s7  ;;  %v877_v42 = vstv %s3689_s9  ;;  %v895_v43 = vstv %s3691_s10  ;;  %s5263_s17 = sld [smem:[#allocation42_spill]]  ;;  %v913_v44 = vstv %s3693_s11 }
 0x211   : > { %s5266_s24 = sld [smem:[#allocation47_spill]]  ;;  %s5268_s29 = sld [smem:[#allocation48_spill]]  ;;  %v865_v45 = vstv %s3695_s1  ;;  %v883_v46 = vstv %s3697_s2  ;;  %v901_v47 = vstv %s3699_s3  ;;  %v919_v48 = vstv %s3701_s4 }
 0x212   : > { %s3853_s27 = sld [smem:[#allocation2 + $0x84]]  ;;  %s5269_s25 = sld [smem:[#allocation49_spill]]  ;;  %v1044_v54 = vstv %s5264_s21 }
 0x213   : > { %5256 = sst [smem:[#allocation104_spill]] %s3837_s8  ;;  %s3851_s8 = sld [smem:[#allocation2 + $0x60]]  ;;  %v871_v49 = vstv %s5257_s13 }
 0x214   : > { %5259 = sst [smem:[#allocation105_spill]] %s3843_s0  ;;  %s5270_s0 = sld [smem:[#allocation50_spill]]  ;;  %v889_v50 = vstv %s5258_s12 }
 0x215   : > { %5261 = sst [smem:[#allocation106_spill]] %s3845_s15  ;;  %s3859_s15 = sld [smem:[#allocation2 + $0x19]]  ;;  %v907_v51 = vstv %s5260_s14 }
 0x216   : > { %s5272_s7 = sld [smem:[#allocation51_spill]]  ;;  %s3861_s9 = sld [smem:[#allocation2 + $0x3d]]  ;;  %v925_v52 = vstv %s5262_s16  ;;  %v1026_v53 = vstv %s5263_s17 }
 0x217   : > { %s5274_s10 = sld [smem:[#allocation52_spill]]  ;;  %s5275_s11 = sld [smem:[#allocation53_spill]]  ;;  %v1062_v55 = vstv %s5266_s24  ;;  %v1080_v56 = vstv %s5268_s29 }
 0x218   : > { %5267 = sst [smem:[#allocation108_spill]] %s3853_s27  ;;  %s5278_s1 = sld [smem:[#allocation56_spill]]  ;;  %v1032_v57 = vstv %s5269_s25 }
 0x219   : > { %5265 = sst [smem:[#allocation107_spill]] %s3851_s8  ;;  %s5276_s8 = sld [smem:[#allocation55_spill]] }
 0x21a   : > { %s3867_s27 = sld [smem:[#allocation2 + $0x61]]  ;;  %s3869_s2 = sld [smem:[#allocation2 + $0x85]]  ;;  %v1050_v58 = vstv %s5270_s0 }
 0x21b   : > { %5271 = sst [smem:[#allocation109_spill]] %s3859_s15  ;;  %s5280_s3 = sld [smem:[#allocation54_spill]] }
 0x21c   : > { %5273 = sst [smem:[#allocation110_spill]] %s3861_s9  ;;  %s5281_s4 = sld [smem:[#allocation57_spill]]  ;;  %v1068_v59 = vstv %s5272_s7 }
 0x21d   : > { %s5282_s15 = sld [smem:[#allocation58_spill]]  ;;  %s3875_s9 = sld [smem:[#allocation2 + $0x1a]]  ;;  %v1086_v60 = vstv %s5274_s10  ;;  %v1038_v61 = vstv %s5275_s11 }
 0x21e   : > { %s5284_s13 = sld [smem:[#allocation59_spill]]  ;;  %s3877_s12 = sld [smem:[#allocation2 + $0x1b]]  ;;  %v1074_v63 = vstv %s5278_s1 }
 0x21f   : > { %s5286_s14 = sld [smem:[#allocation60_spill]]  ;;  %s3885_s21 = sld [smem:[#allocation2 + $0x62]]  ;;  %v1056_v62 = vstv %s5276_s8 }
 0x220   : > { %5277 = sst [smem:[#allocation111_spill]] %s3867_s27  ;;  %s3893_s0 = sld [smem:[#allocation2 + $0x3f]] }
 0x221   : > { %5279 = sst [smem:[#allocation112_spill]] %s3869_s2  ;;  %s3883_s2 = sld [smem:[#allocation2 + $0x3e]]  ;;  %v1197_v0 = vstv %s5280_s3 }
 0x222   : > { %v1092_v1 = vstv %s5281_s4  ;;  %s3901_s8 = sld [smem:[#allocation2 + $0x87]]  ;;  %s3915_s4 = sld [smem:[#allocation2 + $0x64]] }
 0x223   : > { %5283 = sst [smem:[#allocation113_spill]] %s3875_s9  ;;  %v1215_v2 = vstv %s5282_s15  ;;  %s3909_s15 = sld [smem:[#allocation2 + $0x40]] }
 0x224   : > { %5285 = sst [smem:[#allocation114_spill]] %s3877_s12  ;;  %s3891_s12 = sld [smem:[#allocation2 + $0x86]]  ;;  %v1233_v3 = vstv %s5284_s13 }
 0x225   : > { %5291 = sst [smem:[#allocation116_spill]] %s3885_s21  ;;  %v1251_v4 = vstv %s5286_s14  ;;  %s3899_s21 = sld [smem:[#allocation2 + $0x63]] }
 0x226   : > { %5297 = sst [smem:[#allocation118_spill]] %s3893_s0  ;;  %s3907_s0 = sld [smem:[#allocation2 + $0x1c]] }
 0x227   : > { %5289 = sst [smem:[#allocation115_spill]] %s3883_s2  ;;  %s3925_s9 = sld [smem:[#allocation2 + $0x1e]] }
 0x228   : > { %5309 = sst [smem:[#allocation121_spill]] %s3915_s4  ;;  %s3917_s27 = sld [smem:[#allocation2 + $0x88]] }
 0x229   : > { %5306 = sst [smem:[#allocation120_spill]] %s3909_s15  ;;  %s3947_s13 = sld [smem:[#allocation2 + $0x66]] }
 0x22a   : > { %5295 = sst [smem:[#allocation117_spill]] %s3891_s12  ;;  %s3923_s15 = sld [smem:[#allocation2 + $0x1d]] }
 0x22b   : > { %s3933_s2 = sld [smem:[#allocation2 + $0x65]]  ;;  %s3941_s12 = sld [smem:[#allocation2 + $0x42]] }
 0x22c   : > { %5305 = sst [smem:[#allocation119_spill]] %s3907_s0  ;;  %s3955_s16 = sld [smem:[#allocation2 + $0x1f]] }
 0x22d   : > { %5317 = sst [smem:[#allocation124_spill]] %s3925_s9  ;;  %s3957_s0 = sld [smem:[#allocation2 + $0x43]] }
 0x22e   : > { %5311 = sst [smem:[#allocation122_spill]] %s3917_s27  ;;  %s3931_s27 = sld [smem:[#allocation2 + $0x41]] }
 0x22f   : > { %s3939_s9 = sld [smem:[#allocation2 + $0x89]]  ;;  %s3963_s25 = sld [smem:[#allocation2 + $0x67]] }
 0x230   : > { %5315 = sst [smem:[#allocation123_spill]] %s3923_s15  ;;  %s3965_s4 = sld [smem:[#allocation2 + $0x8b]] }
 0x231   : > { %5323 = sst [smem:[#allocation126_spill]] %s3933_s2  ;;  %s3973_s1 = sld [smem:[#allocation2 + $0x44]] }
 0x232   : > { %s5353_s29 = sld [smem:[#allocation117_spill]]  ;;  %s5356_s10 = sld [smem:[#allocation119_spill]] }
 0x233   : > { %5330 = sst [smem:[#allocation127_spill]] %s3957_s0  ;;  %s3971_s0 = sld [smem:[#allocation2 + $0x20]] }
 0x234   : > { %5321 = sst [smem:[#allocation125_spill]] %s3931_s27  ;;  %s5357_s7 = sld [smem:[#allocation120_spill]] }
 0x235   : > { %5332 = sst [smem:[#allocation128_spill]] %s3963_s25  ;;  %s4003_s11 = sld [smem:[#allocation2 + $0x22]] }
 0x236   : > { %5334 = sst [smem:[#allocation129_spill]] %s3965_s4  ;;  %s3979_s4 = sld [smem:[#allocation2 + $0x68]] }
 0x237   : > { %5340 = sst [smem:[#allocation131_spill]] %s3973_s1  ;;  %s3987_s1 = sld [smem:[#allocation2 + $0x21]] }
 0x238   : > { %5355 = sst [smem:[#allocation117_spill]] %s3997_s19  ;;  %s5361_s3 = sld [smem:[#allocation124_spill]] }
 0x239   : > { %5338 = sst [smem:[#allocation130_spill]] %s3971_s0  ;;  %s4011_s25 = sld [smem:[#allocation2 + $0x6a]] }
 0x23a   : > { %5362 = sst [smem:[#allocation119_spill]] %s4013_s26  ;;  %s5364_s22 = sld [smem:[#allocation128_spill]] }
 0x23b   : > { %s5363_s14 = sld [smem:[#allocation127_spill]]  ;;  %s5365_s30 = sld [smem:[#allocation129_spill]] }
 0x23c   : > { %5344 = sst [smem:[#allocation132_spill]] %s3979_s4  ;;  %s5354_s4 = sld [smem:[#allocation118_spill]] }
 0x23d   : > { %5360 = sst [smem:[#allocation118_spill]] %s4005_s23  ;;  %s5366_s0 = sld [smem:[#allocation130_spill]] }
 0x23e   : > { %s5367_s17 = sld [smem:[#allocation131_spill]]  ;;  %s5368_s28 = sld [smem:[#allocation132_spill]] }
 0x23f   : > { %s5371_s20 = sld [smem:[#allocation119_spill]]  ;;  %s5412_s2 = sld [smem:[#allocation61_spill]] }
 0x240   : > { %s5414_s15 = sld [smem:[#allocation63_spill]]  ;;  %s5415_s27 = sld [smem:[#allocation64_spill]] }
 0x241   : > { %s5420_s19 = sld [smem:[#allocation65_spill]]  ;;  %s5422_s23 = sld [smem:[#allocation67_spill]] }
 0x242   : > { %s5424_s26 = sld [smem:[#allocation68_spill]]  ;;  %s5426_s24 = sld [smem:[#allocation69_spill]] }
 0x273   : > { %v2960_v9 = vpop.f32.mrb[2].mxu0 }
 0x274   : > { %v691_v13 = vmul.f32 %v2960_v9, %v689_v29  ;;  %v709_v11 = vmul.f32 %v2960_v9, %v707_v30  ;;  %v727_v14 = vmul.f32 %v2960_v9, %v725_v31  ;;  %v745_v15 = vmul.f32 %v2960_v9, %v743_v32  ;;  %v659_v10 = vpop.f32.mrb[3].mxu0 }
 0x275   : > { %v690_v20 = vmul.f32 %v689_v29, %v659_v10  ;;  %v708_v18 = vmul.f32 %v707_v30, %v659_v10  ;;  %v726_v17 = vmul.f32 %v725_v31, %v659_v10  ;;  %v744_v7 = vmul.f32 %v743_v32, %v659_v10 }
 0x276   : > { %v693_v8 = vadd.f32 %v691_v13, %v3647_v21  ;;  %v711_v16 = vadd.f32 %v709_v11, %v3649_v22  ;;  %v729_v9 = vadd.f32 %v727_v14, %v3651_v23  ;;  %v747_v19 = vadd.f32 %v745_v15, %v3653_v24 }
 0x277   : > { %v692_v29 = vadd.f32 %v690_v20, %v3655_v25  ;;  %v710_v30 = vadd.f32 %v708_v18, %v3657_v26  ;;  %v728_v31 = vadd.f32 %v726_v17, %v3659_v27  ;;  %v746_v32 = vadd.f32 %v744_v7, %v3661_v28  ;;  %v2963_v10 = vpop.f32.mrb[4].mxu0  ;;  %v2971_v21 = vpop.f32.mrb[8].mxu1 }
 0x278   : > { %v697_v13 = vmul.f32 %v2963_v10, %v695_v33  ;;  %v715_v22 = vmul.f32 %v2963_v10, %v713_v34  ;;  %v733_v23 = vmul.f32 %v2963_v10, %v731_v35  ;;  %v751_v11 = vmul.f32 %v2963_v10, %v749_v36  ;;  %v669_v24 = vpop.f32.mrb[5].mxu0  ;;  %v829_v14 = vpop.f32.mrb[9].mxu1 }
 0x279   : > { %v696_v25 = vmul.f32 %v695_v33, %v669_v24  ;;  %v714_v26 = vmul.f32 %v713_v34, %v669_v24  ;;  %v732_v27 = vmul.f32 %v731_v35, %v669_v24  ;;  %v750_v28 = vmul.f32 %v749_v36, %v669_v24 }
 0x27a   : > { %v699_v7 = vadd.f32 %v697_v13, %v693_v8  ;;  %v717_v15 = vadd.f32 %v715_v22, %v711_v16  ;;  %v735_v17 = vadd.f32 %v733_v23, %v729_v9  ;;  %v753_v18 = vadd.f32 %v751_v11, %v747_v19 }
 0x27b   : > { %v698_v20 = vadd.f32 %v696_v25, %v692_v29  ;;  %v716_v10 = vadd.f32 %v714_v26, %v710_v30  ;;  %v734_v12 = vadd.f32 %v732_v27, %v728_v31  ;;  %v752_v33 = vadd.f32 %v750_v28, %v746_v32  ;;  %v2966_v6 = vpop.f32.mrb[6].mxu0  ;;  %v2974_v5 = vpop.f32.mrb[10].mxu1 }
 0x27c   : > { %v703_v34 = vmul.f32 %v2966_v6, %v701_v37  ;;  %v721_v35 = vmul.f32 %v2966_v6, %v719_v38  ;;  %v739_v36 = vmul.f32 %v2966_v6, %v737_v39  ;;  %v757_v8 = vmul.f32 %v2966_v6, %v755_v41  ;;  %v679_v16 = vpop.f32.mrb[7].mxu0  ;;  %v839_v9 = vpop.f32.mrb[11].mxu1 }
 0x27d   : > { %v702_v19 = vmul.f32 %v701_v37, %v679_v16  ;;  %v720_v29 = vmul.f32 %v719_v38, %v679_v16  ;;  %v738_v30 = vmul.f32 %v737_v39, %v679_v16  ;;  %v756_v31 = vmul.f32 %v755_v41, %v679_v16 }
 0x27e   : > { %v705_v32 = vadd.f32 %v703_v34, %v699_v7  ;;  %v723_v13 = vadd.f32 %v721_v35, %v717_v15  ;;  %v741_v22 = vadd.f32 %v739_v36, %v735_v17  ;;  %v759_v6 = vadd.f32 %v757_v8, %v753_v18 }
 0x27f   : > { %v704_v23 = vadd.f32 %v702_v19, %v698_v20  ;;  %v722_v11 = vadd.f32 %v720_v29, %v716_v10  ;;  %v740_v24 = vadd.f32 %v738_v30, %v734_v12  ;;  %v758_v37 = vadd.f32 %v756_v31, %v752_v33  ;;  %v2977_v25 = vpop.f32.mrb[12].mxu1  ;;  %v4103_v26 = vpop.f32.mrb[8].mxu0 }
 0x280   : > { %v861_v38 = vmul.f32 %v2971_v21, %v859_v40  ;;  %v879_v39 = vmul.f32 %v2971_v21, %v877_v42  ;;  %v897_v41 = vmul.f32 %v2971_v21, %v895_v43  ;;  %v915_v27 = vmul.f32 %v2971_v21, %v913_v44  ;;  %v849_v28 = vpop.f32.mrb[13].mxu1  ;;  %v4113_v7 = vpop.f32.mrb[9].mxu0 }
 0x281   : > { %v860_v15 = vmul.f32 %v859_v40, %v829_v14  ;;  %v878_v12 = vmul.f32 %v877_v42, %v829_v14  ;;  %v896_v17 = vmul.f32 %v895_v43, %v829_v14  ;;  %v914_v18 = vmul.f32 %v913_v44, %v829_v14 }
 0x282   : > { %v863_v20 = vadd.f32 %v861_v38, %v705_v32  ;;  %v881_v10 = vadd.f32 %v879_v39, %v723_v13  ;;  %v899_v21 = vadd.f32 %v897_v41, %v741_v22  ;;  %v917_v33 = vadd.f32 %v915_v27, %v759_v6 }
 0x283   : > { %v862_v34 = vadd.f32 %v860_v15, %v704_v23  ;;  %v880_v35 = vadd.f32 %v878_v12, %v722_v11  ;;  %v898_v36 = vadd.f32 %v896_v17, %v740_v24  ;;  %v916_v40 = vadd.f32 %v914_v18, %v758_v37  ;;  %v4123_v8 = vpop.f32.mrb[10].mxu0  ;;  %v4125_v42 = vpop.f32.mrb[14].mxu1 }
 0x284   : > { %v867_v43 = vmul.f32 %v2974_v5, %v865_v45  ;;  %v885_v44 = vmul.f32 %v2974_v5, %v883_v46  ;;  %v903_v14 = vmul.f32 %v2974_v5, %v901_v47  ;;  %v921_v16 = vmul.f32 %v2974_v5, %v919_v48  ;;  %v4135_v19 = vpop.f32.mrb[11].mxu0  ;;  %v4137_v29 = vpop.f32.mrb[15].mxu1 }
 0x285   : > { %v866_v30 = vmul.f32 %v865_v45, %v839_v9  ;;  %v884_v31 = vmul.f32 %v883_v46, %v839_v9  ;;  %v902_v32 = vmul.f32 %v901_v47, %v839_v9  ;;  %v920_v13 = vmul.f32 %v919_v48, %v839_v9 }
 0x286   : > { %v869_v22 = vadd.f32 %v867_v43, %v863_v20  ;;  %v887_v6 = vadd.f32 %v885_v44, %v881_v10  ;;  %v905_v5 = vadd.f32 %v903_v14, %v899_v21  ;;  %v923_v23 = vadd.f32 %v921_v16, %v917_v33 }
 0x287   : > { %v868_v11 = vadd.f32 %v866_v30, %v862_v34  ;;  %v886_v24 = vadd.f32 %v884_v31, %v880_v35  ;;  %v904_v37 = vadd.f32 %v902_v32, %v898_v36  ;;  %v922_v45 = vadd.f32 %v920_v13, %v916_v40  ;;  %v4147_v38 = vpop.f32.mrb[12].mxu0  ;;  %v4149_v46 = vpop.f32.mrb[16].mxu1 }
 0x288   : > { %v873_v47 = vmul.f32 %v2977_v25, %v871_v49  ;;  %v891_v48 = vmul.f32 %v2977_v25, %v889_v50  ;;  %v909_v9 = vmul.f32 %v2977_v25, %v907_v51  ;;  %v927_v39 = vmul.f32 %v2977_v25, %v925_v52  ;;  %v4159_v41 = vpop.f32.mrb[13].mxu0  ;;  %v4161_v27 = vpop.f32.mrb[17].mxu1 }
 0x289   : > { %v872_v15 = vmul.f32 %v871_v49, %v849_v28  ;;  %v890_v12 = vmul.f32 %v889_v50, %v849_v28  ;;  %v908_v17 = vmul.f32 %v907_v51, %v849_v28  ;;  %v926_v18 = vmul.f32 %v925_v52, %v849_v28 }
 0x28a   : > { %v875_v20 = vadd.f32 %v873_v47, %v869_v22  ;;  %v893_v10 = vadd.f32 %v891_v48, %v887_v6  ;;  %v911_v25 = vadd.f32 %v909_v9, %v905_v5  ;;  %v929_v21 = vadd.f32 %v927_v39, %v923_v23 }
 0x28b   : > { %v874_v33 = vadd.f32 %v872_v15, %v868_v11  ;;  %v892_v34 = vadd.f32 %v890_v12, %v886_v24  ;;  %v910_v35 = vadd.f32 %v908_v17, %v904_v37  ;;  %v928_v49 = vadd.f32 %v926_v18, %v922_v45  ;;  %v4171_v36 = vpop.f32.mrb[18].mxu1  ;;  %v4173_v50 = vpop.f32.mrb[14].mxu0 }
 0x28c   : > { %v1028_v51 = vmul.f32 %v4103_v26, %v1026_v53  ;;  %v1046_v52 = vmul.f32 %v4103_v26, %v1044_v54  ;;  %v1064_v28 = vmul.f32 %v4103_v26, %v1062_v55  ;;  %v1082_v40 = vmul.f32 %v4103_v26, %v1080_v56  ;;  %v4187_v43 = vpop.f32.mrb[19].mxu1  ;;  %v4189_v44 = vpop.f32.mrb[15].mxu0 }
 0x28d   : > { %v1027_v14 = vmul.f32 %v1026_v53, %v4113_v7  ;;  %v1045_v16 = vmul.f32 %v1044_v54, %v4113_v7  ;;  %v1063_v30 = vmul.f32 %v1062_v55, %v4113_v7  ;;  %v1081_v26 = vmul.f32 %v1080_v56, %v4113_v7 }
 0x28e   : > { %v1030_v31 = vadd.f32 %v1028_v51, %v875_v20  ;;  %v1048_v32 = vadd.f32 %v1046_v52, %v893_v10  ;;  %v1066_v13 = vadd.f32 %v1064_v28, %v911_v25  ;;  %v1084_v22 = vadd.f32 %v1082_v40, %v929_v21 }
 0x28f   : > { %v1029_v53 = vadd.f32 %v1027_v14, %v874_v33  ;;  %v1047_v6 = vadd.f32 %v1045_v16, %v892_v34  ;;  %v1065_v5 = vadd.f32 %v1063_v30, %v910_v35  ;;  %v1083_v23 = vadd.f32 %v1081_v26, %v928_v49  ;;  %v4203_v54 = vpop.f32.mrb[16].mxu0  ;;  %v4205_v11 = vpop.f32.mrb[20].mxu1 }
 0x290   : > { %v1034_v55 = vmul.f32 %v4123_v8, %v1032_v57  ;;  %v1052_v56 = vmul.f32 %v4123_v8, %v1050_v58  ;;  %v1070_v7 = vmul.f32 %v4123_v8, %v1068_v59  ;;  %v1088_v24 = vmul.f32 %v4123_v8, %v1086_v60  ;;  %v4219_v37 = vpop.f32.mrb[17].mxu0  ;;  %v4221_v45 = vpop.f32.mrb[21].mxu1 }
 0x291   : > { %v1033_v47 = vmul.f32 %v1032_v57, %v4135_v19  ;;  %v1051_v48 = vmul.f32 %v1050_v58, %v4135_v19  ;;  %v1069_v9 = vmul.f32 %v1068_v59, %v4135_v19  ;;  %v1087_v8 = vmul.f32 %v1086_v60, %v4135_v19 }
 0x292   : > { %v1036_v39 = vadd.f32 %v1034_v55, %v1030_v31  ;;  %v1054_v15 = vadd.f32 %v1052_v56, %v1048_v32  ;;  %v1072_v12 = vadd.f32 %v1070_v7, %v1066_v13  ;;  %v1090_v17 = vadd.f32 %v1088_v24, %v1084_v22 }
 0x293   : > { %v1035_v57 = vadd.f32 %v1033_v47, %v1029_v53  ;;  %v1053_v18 = vadd.f32 %v1051_v48, %v1047_v6  ;;  %v1071_v20 = vadd.f32 %v1069_v9, %v1065_v5  ;;  %v1089_v10 = vadd.f32 %v1087_v8, %v1083_v23  ;;  %v4235_v58 = vpop.f32.mrb[18].mxu0  ;;  %v4237_v25 = vpop.f32.mrb[22].mxu1 }
 0x294   : > { %v1040_v59 = vmul.f32 %v4147_v38, %v1038_v61  ;;  %v1058_v60 = vmul.f32 %v4147_v38, %v1056_v62  ;;  %v1076_v19 = vmul.f32 %v4147_v38, %v1074_v63  ;;  %v1094_v21 = vmul.f32 %v4147_v38, %v1092_v1  ;;  %v4251_v33 = vpop.f32.mrb[19].mxu0  ;;  %v4253_v34 = vpop.f32.mrb[23].mxu1 }
 0x295   : > { %v1039_v35 = vmul.f32 %v1038_v61, %v4159_v41  ;;  %v1057_v49 = vmul.f32 %v1056_v62, %v4159_v41  ;;  %v1075_v51 = vmul.f32 %v1074_v63, %v4159_v41  ;;  %v1093_v38 = vmul.f32 %v1092_v1, %v4159_v41 }
 0x296   : > { %v1042_v52 = vadd.f32 %v1040_v59, %v1036_v39  ;;  %v1060_v28 = vadd.f32 %v1058_v60, %v1054_v15  ;;  %v1078_v40 = vadd.f32 %v1076_v19, %v1072_v12  ;;  %v1096_v14 = vadd.f32 %v1094_v21, %v1090_v17 }
 0x297   : > { %v1041_v61 = vadd.f32 %v1039_v35, %v1035_v57  ;;  %v1059_v16 = vadd.f32 %v1057_v49, %v1053_v18  ;;  %v1077_v30 = vadd.f32 %v1075_v51, %v1071_v20  ;;  %v1095_v26 = vadd.f32 %v1093_v38, %v1089_v10  ;;  %v4267_v62 = vpop.f32.mrb[24].mxu1  ;;  %v4269_v31 = vpop.f32.mrb[20].mxu0 }
 0x298   : > { %v1199_v63 = vmul.f32 %v4125_v42, %v1197_v0  ;;  %v1217_v1 = vmul.f32 %v4125_v42, %v1215_v2  ;;  %v1235_v41 = vmul.f32 %v4125_v42, %v1233_v3  ;;  %v1253_v32 = vmul.f32 %v4125_v42, %v1251_v4  ;;  %v4283_v13 = vpop.f32.mrb[25].mxu1  ;;  %v4285_v22 = vpop.f32.mrb[21].mxu0 }
 0x299   : > { %v1198_v53 = vmul.f32 %v1197_v0, %v4137_v29  ;;  %v1216_v6 = vmul.f32 %v1215_v2, %v4137_v29  ;;  %v1234_v5 = vmul.f32 %v1233_v3, %v4137_v29  ;;  %v1252_v42 = vmul.f32 %v1251_v4, %v4137_v29 }
 0x29a   : > { %v1201_v23 = vadd.f32 %v1199_v63, %v1042_v52  ;;  %v1219_v55 = vadd.f32 %v1217_v1, %v1060_v28  ;;  %v1237_v56 = vadd.f32 %v1235_v41, %v1078_v40  ;;  %v1255_v7 = vadd.f32 %v1253_v32, %v1096_v14 }
 0x29b   : > { %v1200_v0 = vadd.f32 %v1198_v53, %v1041_v61  ;;  %v1218_v24 = vadd.f32 %v1216_v6, %v1059_v16  ;;  %v1236_v47 = vadd.f32 %v1234_v5, %v1077_v30  ;;  %v1254_v48 = vadd.f32 %v1252_v42, %v1095_v26  ;;  %v4299_v2 = vpop.f32.mrb[22].mxu0  ;;  %v4301_v9 = vpop.f32.mrb[26].mxu1 }
 0x29c   : > { %v5416_v3 = vstv %s5412_s2  ;;  %v5417_v4 = vstv %s5413_s5  ;;  %v5418_v39 = vstv %s5414_s15  ;;  %v5419_v12 = vstv %s5415_s27  ;;  %v4315_v57 = vpop.f32.mrb[23].mxu0  ;;  %v4317_v18 = vpop.f32.mrb[27].mxu1  ;;  %s5432_s2 = sld [smem:[#allocation66_spill]]  ;;  %s5434_s5 = sld [smem:[#allocation70_spill]] }
 0x29d   : > { %v1205_v8 = vmul.f32 %v4149_v46, %v5416_v3  ;;  %v1223_v29 = vmul.f32 %v4149_v46, %v5417_v4  ;;  %v1241_v15 = vmul.f32 %v4149_v46, %v5418_v39  ;;  %v1259_v17 = vmul.f32 %v4149_v46, %v5419_v12  ;;  %s5436_s15 = sld [smem:[#allocation71_spill]]  ;;  %s5438_s27 = sld [smem:[#allocation72_spill]] }
 0x29e   : > { %v5421_v20 = vmov %v5416_v3  ;;  %v5423_v59 = vmov %v5417_v4  ;;  %v5425_v19 = vmov %v5418_v39  ;;  %v5427_v35 = vmov %v5419_v12 }
 0x29f   : > { %v1204_v10 = vmul.f32 %v5421_v20, %v4161_v27  ;;  %v1222_v60 = vmul.f32 %v5423_v59, %v4161_v27  ;;  %v1240_v21 = vmul.f32 %v5425_v19, %v4161_v27  ;;  %v1258_v46 = vmul.f32 %v5427_v35, %v4161_v27  ;;  %v4331_v16 = vpop.f32.mrb[24].mxu0  ;;  %v4333_v30 = vpop.f32.mrb[28].mxu1 }
 0x2a0   : > { %v1207_v49 = vadd.f32 %v1205_v8, %v1201_v23  ;;  %v1225_v51 = vadd.f32 %v1223_v29, %v1219_v55  ;;  %v1243_v38 = vadd.f32 %v1241_v15, %v1237_v56  ;;  %v1261_v52 = vadd.f32 %v1259_v17, %v1255_v7  ;;  %v4347_v5 = vpop.f32.mrb[25].mxu0  ;;  %v4349_v42 = vpop.f32.mrb[29].mxu1 }
 0x2a1   : > { %v1206_v28 = vadd.f32 %v1204_v10, %v1200_v0  ;;  %v1224_v40 = vadd.f32 %v1222_v60, %v1218_v24  ;;  %v1242_v14 = vadd.f32 %v1240_v21, %v1236_v47  ;;  %v1260_v61 = vadd.f32 %v1258_v46, %v1254_v48 }
 0x2a2   : > { %v5428_v26 = vstv %s5420_s19  ;;  %v5429_v27 = vstv %s5422_s23  ;;  %v5430_v41 = vstv %s5424_s26  ;;  %v5431_v53 = vstv %s5426_s24  ;;  %s5444_s19 = sld [smem:[#allocation73_spill]]  ;;  %s5446_s23 = sld [smem:[#allocation74_spill]] }
 0x2a3   : > { %v1211_v63 = vmul.f32 %v4171_v36, %v5428_v26  ;;  %v1229_v1 = vmul.f32 %v4171_v36, %v5429_v27  ;;  %v1247_v32 = vmul.f32 %v4171_v36, %v5430_v41  ;;  %v1265_v6 = vmul.f32 %v4171_v36, %v5431_v53  ;;  %v4363_v17 = vpop.f32.mrb[30].mxu1  ;;  %v4365_v20 = vpop.f32.mrb[26].mxu0  ;;  %s5448_s26 = sld [smem:[#allocation75_spill]]  ;;  %s5450_s24 = sld [smem:[#allocation76_spill]] }
 0x2a4   : > { %v5433_v23 = vmov %v5428_v26  ;;  %v5435_v56 = vmov %v5429_v27  ;;  %v5437_v0 = vmov %v5430_v41  ;;  %v5439_v47 = vmov %v5431_v53 }
 0x2a5   : > { %v1210_v55 = vmul.f32 %v5433_v23, %v4187_v43  ;;  %v1228_v7 = vmul.f32 %v5435_v56, %v4187_v43  ;;  %v1246_v24 = vmul.f32 %v5437_v0, %v4187_v43  ;;  %v1264_v36 = vmul.f32 %v5439_v47, %v4187_v43 }
 0x2a6   : > { %v1213_v48 = vadd.f32 %v1211_v63, %v1207_v49  ;;  %v1231_v3 = vadd.f32 %v1229_v1, %v1225_v51  ;;  %v1249_v8 = vadd.f32 %v1247_v32, %v1243_v38  ;;  %v1267_v4 = vadd.f32 %v1265_v6, %v1261_v52  ;;  %v4379_v49 = vpop.f32.mrb[31].mxu1  ;;  %v4381_v51 = vpop.f32.mrb[27].mxu0 }
 0x2a7   : > { %v1212_v29 = vadd.f32 %v1210_v55, %v1206_v28  ;;  %v1230_v39 = vadd.f32 %v1228_v7, %v1224_v40  ;;  %v1248_v15 = vadd.f32 %v1246_v24, %v1242_v14  ;;  %v1266_v12 = vadd.f32 %v1264_v36, %v1260_v61  ;;  %v4395_v55 = vpop.f32.mrb[28].mxu0  ;;  %v4397_v56 = vpop.f32.mrb[32].mxu1 }
 0x2a8   : > { %v5440_v10 = vstv %s5432_s2  ;;  %v5441_v43 = vstv %s5434_s5  ;;  %v5442_v19 = vstv %s5436_s15  ;;  %v5443_v35 = vstv %s5438_s27  ;;  %s5456_s2 = sld [smem:[#allocation77_spill]]  ;;  %s5458_s5 = sld [smem:[#allocation79_spill]] }
 0x2a9   : > { %v1369_v59 = vmul.f32 %v4173_v50, %v5440_v10  ;;  %v1387_v60 = vmul.f32 %v4173_v50, %v5441_v43  ;;  %v1405_v21 = vmul.f32 %v4173_v50, %v5442_v19  ;;  %v1423_v46 = vmul.f32 %v4173_v50, %v5443_v35  ;;  %s5460_s15 = sld [smem:[#allocation80_spill]]  ;;  %s5462_s27 = sld [smem:[#allocation81_spill]] }
 0x2aa   : > { %v5445_v38 = vmov %v5440_v10  ;;  %v5447_v28 = vmov %v5441_v43  ;;  %v5449_v14 = vmov %v5442_v19  ;;  %v5451_v26 = vmov %v5443_v35 }
 0x2ab   : > { %v1368_v52 = vmul.f32 %v5445_v38, %v4189_v44  ;;  %v1386_v40 = vmul.f32 %v5447_v28, %v4189_v44  ;;  %v1404_v61 = vmul.f32 %v5449_v14, %v4189_v44  ;;  %v1422_v50 = vmul.f32 %v5451_v26, %v4189_v44 }
 0x2ac   : > { %v1371_v63 = vadd.f32 %v1369_v59, %v1213_v48  ;;  %v1389_v27 = vadd.f32 %v1387_v60, %v1231_v3  ;;  %v1407_v1 = vadd.f32 %v1405_v21, %v1249_v8  ;;  %v1425_v41 = vadd.f32 %v1423_v46, %v1267_v4  ;;  %v4411_v8 = vpop.f32.mrb[29].mxu0  ;;  %v4413_v4 = vpop.f32.mrb[33].mxu1 }
 0x2ad   : > { %v1370_v32 = vadd.f32 %v1368_v52, %v1212_v29  ;;  %v1388_v53 = vadd.f32 %v1386_v40, %v1230_v39  ;;  %v1406_v6 = vadd.f32 %v1404_v61, %v1248_v15  ;;  %v1424_v23 = vadd.f32 %v1422_v50, %v1266_v12  ;;  %v4427_v40 = vpop.f32.mrb[30].mxu0  ;;  %v4429_v14 = vpop.f32.mrb[34].mxu1 }
 0x2ae   : > { %v5452_v7 = vstv %s5444_s19  ;;  %v5453_v44 = vstv %s5446_s23  ;;  %v5454_v47 = vstv %s5448_s26  ;;  %v5455_v48 = vstv %s5450_s24  ;;  %s5468_s19 = sld [smem:[#allocation78_spill]]  ;;  %s5470_s23 = sld [smem:[#allocation82_spill]] }
 0x2af   : > { %v1375_v0 = vmul.f32 %v4203_v54, %v5452_v7  ;;  %v1393_v24 = vmul.f32 %v4203_v54, %v5453_v44  ;;  %v1411_v36 = vmul.f32 %v4203_v54, %v5454_v47  ;;  %v1429_v3 = vmul.f32 %v4203_v54, %v5455_v48  ;;  %s5472_s26 = sld [smem:[#allocation83_spill]]  ;;  %s5474_s24 = sld [smem:[#allocation84_spill]] }
 0x2b0   : > { %v5457_v29 = vmov %v5452_v7  ;;  %v5459_v15 = vmov %v5453_v44  ;;  %v5461_v10 = vmov %v5454_v47  ;;  %v5463_v43 = vmov %v5455_v48 }
 0x2b1   : > { %v1374_v39 = vmul.f32 %v5457_v29, %v4219_v37  ;;  %v1392_v12 = vmul.f32 %v5459_v15, %v4219_v37  ;;  %v1410_v59 = vmul.f32 %v5461_v10, %v4219_v37  ;;  %v1428_v54 = vmul.f32 %v5463_v43, %v4219_v37 }
 0x2b2   : > { %v1377_v60 = vadd.f32 %v1375_v0, %v1371_v63  ;;  %v1395_v19 = vadd.f32 %v1393_v24, %v1389_v27  ;;  %v1413_v21 = vadd.f32 %v1411_v36, %v1407_v1  ;;  %v1431_v35 = vadd.f32 %v1429_v3, %v1425_v41 }
 0x2b3   : > { %v1376_v46 = vadd.f32 %v1374_v39, %v1370_v32  ;;  %v1394_v38 = vadd.f32 %v1392_v12, %v1388_v53  ;;  %v1412_v52 = vadd.f32 %v1410_v59, %v1406_v6  ;;  %v1430_v28 = vadd.f32 %v1428_v54, %v1424_v23  ;;  %v4443_v32 = vpop.f32.mrb[31].mxu0  ;;  %v4445_v53 = vpop.f32.mrb[35].mxu1 }
 0x2b4   : > { %v5464_v61 = vstv %s5456_s2  ;;  %v5465_v37 = vstv %s5458_s5  ;;  %v5466_v63 = vstv %s5460_s15  ;;  %v5467_v1 = vstv %s5462_s27  ;;  %v4459_v59 = vpop.f32.mrb[36].mxu1  ;;  %v4461_v43 = vpop.f32.mrb[32].mxu0  ;;  %s5480_s2 = sld [smem:[#allocation85_spill]]  ;;  %s5481_s5 = sld [smem:[#allocation86_spill]] }
 0x2b5   : > { %v1381_v26 = vmul.f32 %v4235_v58, %v5464_v61  ;;  %v1399_v50 = vmul.f32 %v4235_v58, %v5465_v37  ;;  %v1417_v27 = vmul.f32 %v4235_v58, %v5466_v63  ;;  %v1435_v41 = vmul.f32 %v4235_v58, %v5467_v1  ;;  %s5483_s15 = sld [smem:[#allocation87_spill]]  ;;  %s5485_s27 = sld [smem:[#allocation88_spill]] }
 0x2b6   : > { %v5469_v6 = vmov %v5464_v61  ;;  %v5471_v7 = vmov %v5465_v37  ;;  %v5473_v44 = vmov %v5466_v63  ;;  %v5475_v47 = vmov %v5467_v1 }
 0x2b7   : > { %v1380_v23 = vmul.f32 %v5469_v6, %v4251_v33  ;;  %v1398_v0 = vmul.f32 %v5471_v7, %v4251_v33  ;;  %v1416_v24 = vmul.f32 %v5473_v44, %v4251_v33  ;;  %v1434_v58 = vmul.f32 %v5475_v47, %v4251_v33 }
 0x2b8   : > { %v1383_v36 = vadd.f32 %v1381_v26, %v1377_v60  ;;  %v1401_v48 = vadd.f32 %v1399_v50, %v1395_v19  ;;  %v1419_v3 = vadd.f32 %v1417_v27, %v1413_v21  ;;  %v1437_v29 = vadd.f32 %v1435_v41, %v1431_v35 }
 0x2b9   : > { %v1382_v39 = vadd.f32 %v1380_v23, %v1376_v46  ;;  %v1400_v15 = vadd.f32 %v1398_v0, %v1394_v38  ;;  %v1418_v12 = vadd.f32 %v1416_v24, %v1412_v52  ;;  %v1436_v10 = vadd.f32 %v1434_v58, %v1430_v28  ;;  %v4475_v46 = vpop.f32.mrb[37].mxu1  ;;  %v4477_v38 = vpop.f32.mrb[33].mxu0 }
 0x2ba   : > { %v5476_v54 = vstv %s5468_s19  ;;  %v5477_v33 = vstv %s5470_s23  ;;  %v5478_v19 = vstv %s5472_s26  ;;  %v5479_v26 = vstv %s5474_s24  ;;  %v4491_v58 = vpop.f32.mrb[34].mxu0  ;;  %s5492_s19 = sld [smem:[#allocation89_spill]]  ;;  %s5493_s23 = sld [smem:[#allocation91_spill]] }
 0x2bb   : > { %v1536_v61 = vmul.f32 %v4205_v11, %v5476_v54  ;;  %v1554_v60 = vmul.f32 %v4205_v11, %v5477_v33  ;;  %v1572_v21 = vmul.f32 %v4205_v11, %v5478_v19  ;;  %v1590_v35 = vmul.f32 %v4205_v11, %v5479_v26  ;;  %s5495_s26 = sld [smem:[#allocation92_spill]]  ;;  %s5497_s24 = sld [smem:[#allocation93_spill]] }
 0x2bc   : > { %v5482_v52 = vmov %v5476_v54  ;;  %v5484_v37 = vmov %v5477_v33  ;;  %v5486_v63 = vmov %v5478_v19  ;;  %v5487_v1 = vmov %v5479_v26 }
 0x2bd   : > { %v1535_v28 = vmul.f32 %v5482_v52, %v4221_v45  ;;  %v1553_v50 = vmul.f32 %v5484_v37, %v4221_v45  ;;  %v1571_v27 = vmul.f32 %v5486_v63, %v4221_v45  ;;  %v1589_v11 = vmul.f32 %v5487_v1, %v4221_v45 }
 0x2be   : > { %v1538_v41 = vadd.f32 %v1536_v61, %v1383_v36  ;;  %v1556_v6 = vadd.f32 %v1554_v60, %v1401_v48  ;;  %v1574_v23 = vadd.f32 %v1572_v21, %v1419_v3  ;;  %v1592_v7 = vadd.f32 %v1590_v35, %v1437_v29  ;;  %v4505_v3 = vpop.f32.mrb[35].mxu0 }
 0x2bf   : > { %v1537_v0 = vadd.f32 %v1535_v28, %v1382_v39  ;;  %v1555_v44 = vadd.f32 %v1553_v50, %v1400_v15  ;;  %v1573_v24 = vadd.f32 %v1571_v27, %v1418_v12  ;;  %v1591_v47 = vadd.f32 %v1589_v11, %v1436_v10  ;;  %v4519_v11 = vpop.f32.mrb[36].mxu0 }
 0x2c0   : > { %v5488_v54 = vstv %s5480_s2  ;;  %v5489_v19 = vstv %s5481_s5  ;;  %v5490_v45 = vstv %s5483_s15  ;;  %v5491_v61 = vstv %s5485_s27  ;;  %s5503_s2 = sld [smem:[#allocation90_spill]]  ;;  %s5505_s5 = sld [smem:[#allocation94_spill]] }
 0x2c1   : > { %v1542_v33 = vmul.f32 %v4237_v25, %v5488_v54  ;;  %v1560_v26 = vmul.f32 %v4237_v25, %v5489_v19  ;;  %v1578_v36 = vmul.f32 %v4237_v25, %v5490_v45  ;;  %v1596_v48 = vmul.f32 %v4237_v25, %v5491_v61  ;;  %s5506_s15 = sld [smem:[#allocation95_spill]]  ;;  %s5508_s27 = sld [smem:[#allocation96_spill]] }
 0x2c2   : > { %v5494_v29 = vmov %v5488_v54  ;;  %v5496_v15 = vmov %v5489_v19  ;;  %v5498_v10 = vmov %v5490_v45  ;;  %v5499_v21 = vmov %v5491_v61 }
 0x2c3   : > { %v1541_v39 = vmul.f32 %v5494_v29, %v4253_v34  ;;  %v1559_v12 = vmul.f32 %v5496_v15, %v4253_v34  ;;  %v1577_v60 = vmul.f32 %v5498_v10, %v4253_v34  ;;  %v1595_v35 = vmul.f32 %v5499_v21, %v4253_v34 }
 0x2c4   : > { %v1544_v25 = vadd.f32 %v1542_v33, %v1538_v41  ;;  %v1562_v52 = vadd.f32 %v1560_v26, %v1556_v6  ;;  %v1580_v28 = vadd.f32 %v1578_v36, %v1574_v23  ;;  %v1598_v37 = vadd.f32 %v1596_v48, %v1592_v7  ;;  %v4533_v7 = vpop.f32.mrb[37].mxu0 }
 0x2c5   : > { %v1543_v50 = vadd.f32 %v1541_v39, %v1537_v0  ;;  %v1561_v63 = vadd.f32 %v1559_v12, %v1555_v44  ;;  %v1579_v27 = vadd.f32 %v1577_v60, %v1573_v24  ;;  %v1597_v1 = vadd.f32 %v1595_v35, %v1591_v47 }
 0x2c6   : > { %v5500_v54 = vstv %s5492_s19  ;;  %v5501_v45 = vstv %s5493_s23  ;;  %v5502_v34 = vstv %s5495_s26  ;;  %v5504_v6 = vstv %s5497_s24  ;;  %s5514_s19 = sld [smem:[#allocation97_spill]]  ;;  %s5516_s23 = sld [smem:[#allocation98_spill]] }
 0x2c7   : > { %v1548_v19 = vmul.f32 %v4267_v62, %v5500_v54  ;;  %v1566_v61 = vmul.f32 %v4267_v62, %v5501_v45  ;;  %v1584_v41 = vmul.f32 %v4267_v62, %v5502_v34  ;;  %v1602_v23 = vmul.f32 %v4267_v62, %v5504_v6  ;;  %s5518_s26 = sld [smem:[#allocation99_spill]]  ;;  %s5520_s24 = sld [smem:[#allocation100_spill]] }
 0x2c8   : > { %v5507_v0 = vmov %v5500_v54  ;;  %v5509_v24 = vmov %v5501_v45  ;;  %v5510_v33 = vmov %v5502_v34  ;;  %v5511_v36 = vmov %v5504_v6 }
 0x2c9   : > { %v1547_v44 = vmul.f32 %v5507_v0, %v4283_v13  ;;  %v1565_v47 = vmul.f32 %v5509_v24, %v4283_v13  ;;  %v1583_v26 = vmul.f32 %v5510_v33, %v4283_v13  ;;  %v1601_v48 = vmul.f32 %v5511_v36, %v4283_v13 }
 0x2ca   : > { %v1550_v62 = vadd.f32 %v1548_v19, %v1544_v25  ;;  %v1568_v29 = vadd.f32 %v1566_v61, %v1562_v52  ;;  %v1586_v39 = vadd.f32 %v1584_v41, %v1580_v28  ;;  %v1604_v15 = vadd.f32 %v1602_v23, %v1598_v37 }
 0x2cb   : > { %v1549_v12 = vadd.f32 %v1547_v44, %v1543_v50  ;;  %v1567_v10 = vadd.f32 %v1565_v47, %v1561_v63  ;;  %v1585_v60 = vadd.f32 %v1583_v26, %v1579_v27  ;;  %v1603_v21 = vadd.f32 %v1601_v48, %v1597_v1 }
 0x2cc   : > { %v5512_v35 = vstv %s5503_s2  ;;  %v5513_v45 = vstv %s5505_s5  ;;  %v5515_v6 = vstv %s5506_s15  ;;  %v5517_v0 = vstv %s5508_s27  ;;  %s5526_s2 = sld [smem:[#allocation101_spill]]  ;;  %s5528_s5 = sld [smem:[#allocation103_spill]] }
 0x2cd   : > { %v1707_v54 = vmul.f32 %v4269_v31, %v5512_v35  ;;  %v1725_v34 = vmul.f32 %v4269_v31, %v5513_v45  ;;  %v1743_v13 = vmul.f32 %v4269_v31, %v5515_v6  ;;  %v1761_v25 = vmul.f32 %v4269_v31, %v5517_v0  ;;  %s5530_s15 = sld [smem:[#allocation104_spill]]  ;;  %s5532_s27 = sld [smem:[#allocation105_spill]] }
 0x2ce   : > { %v5519_v52 = vmov %v5512_v35  ;;  %v5521_v37 = vmov %v5513_v45  ;;  %v5522_v63 = vmov %v5515_v6  ;;  %v5523_v1 = vmov %v5517_v0 }
 0x2cf   : > { %v1706_v28 = vmul.f32 %v5519_v52, %v4285_v22  ;;  %v1724_v50 = vmul.f32 %v5521_v37, %v4285_v22  ;;  %v1742_v27 = vmul.f32 %v5522_v63, %v4285_v22  ;;  %v1760_v19 = vmul.f32 %v5523_v1, %v4285_v22 }
 0x2d0   : > { %v1709_v61 = vadd.f32 %v1707_v54, %v1550_v62  ;;  %v1727_v41 = vadd.f32 %v1725_v34, %v1568_v29  ;;  %v1745_v31 = vadd.f32 %v1743_v13, %v1586_v39  ;;  %v1763_v23 = vadd.f32 %v1761_v25, %v1604_v15 }
 0x2d1   : > { %v1708_v44 = vadd.f32 %v1706_v28, %v1549_v12  ;;  %v1726_v24 = vadd.f32 %v1724_v50, %v1567_v10  ;;  %v1744_v47 = vadd.f32 %v1742_v27, %v1585_v60  ;;  %v1762_v33 = vadd.f32 %v1760_v19, %v1603_v21 }
 0x2d2   : > { %v5524_v26 = vstv %s5514_s19  ;;  %v5525_v48 = vstv %s5516_s23  ;;  %v5527_v45 = vstv %s5518_s26  ;;  %v5529_v6 = vstv %s5520_s24  ;;  %s5538_s19 = sld [smem:[#allocation102_spill]]  ;;  %s5540_s23 = sld [smem:[#allocation106_spill]] }
 0x2d3   : > { %v1713_v36 = vmul.f32 %v4299_v2, %v5524_v26  ;;  %v1731_v35 = vmul.f32 %v4299_v2, %v5525_v48  ;;  %v1749_v22 = vmul.f32 %v4299_v2, %v5527_v45  ;;  %v1767_v62 = vmul.f32 %v4299_v2, %v5529_v6  ;;  %s5542_s26 = sld [smem:[#allocation107_spill]]  ;;  %s5544_s24 = sld [smem:[#allocation108_spill]] }
 0x2d4   : > { %v5531_v29 = vmov %v5524_v26  ;;  %v5533_v15 = vmov %v5525_v48  ;;  %v5534_v10 = vmov %v5527_v45  ;;  %v5535_v21 = vmov %v5529_v6 }
 0x2d5   : > { %v1712_v39 = vmul.f32 %v5531_v29, %v4315_v57  ;;  %v1730_v12 = vmul.f32 %v5533_v15, %v4315_v57  ;;  %v1748_v60 = vmul.f32 %v5534_v10, %v4315_v57  ;;  %v1766_v54 = vmul.f32 %v5535_v21, %v4315_v57 }
 0x2d6   : > { %v1715_v34 = vadd.f32 %v1713_v36, %v1709_v61  ;;  %v1733_v13 = vadd.f32 %v1731_v35, %v1727_v41  ;;  %v1751_v2 = vadd.f32 %v1749_v22, %v1745_v31  ;;  %v1769_v0 = vadd.f32 %v1767_v62, %v1763_v23 }
 0x2d7   : > { %v1714_v25 = vadd.f32 %v1712_v39, %v1708_v44  ;;  %v1732_v52 = vadd.f32 %v1730_v12, %v1726_v24  ;;  %v1750_v28 = vadd.f32 %v1748_v60, %v1744_v47  ;;  %v1768_v37 = vadd.f32 %v1766_v54, %v1762_v33 }
 0x2d8   : > { %v5536_v50 = vstv %s5526_s2  ;;  %v5537_v27 = vstv %s5528_s5  ;;  %v5539_v19 = vstv %s5530_s15  ;;  %v5541_v26 = vstv %s5532_s27  ;;  %s5550_s2 = sld [smem:[#allocation109_spill]]  ;;  %s5552_s5 = sld [smem:[#allocation110_spill]] }
 0x2d9   : > { %v1719_v63 = vmul.f32 %v4331_v16, %v5536_v50  ;;  %v1737_v1 = vmul.f32 %v4331_v16, %v5537_v27  ;;  %v1755_v57 = vmul.f32 %v4331_v16, %v5539_v19  ;;  %v1773_v61 = vmul.f32 %v4331_v16, %v5541_v26  ;;  %s5554_s15 = sld [smem:[#allocation111_spill]]  ;;  %s5556_s27 = sld [smem:[#allocation112_spill]] }
 0x2da   : > { %v5543_v41 = vmov %v5536_v50  ;;  %v5545_v23 = vmov %v5537_v27  ;;  %v5546_v24 = vmov %v5539_v19  ;;  %v5547_v33 = vmov %v5541_v26 }
 0x2db   : > { %v1718_v31 = vmul.f32 %v5543_v41, %v4347_v5  ;;  %v1736_v44 = vmul.f32 %v5545_v23, %v4347_v5  ;;  %v1754_v47 = vmul.f32 %v5546_v24, %v4347_v5  ;;  %v1772_v36 = vmul.f32 %v5547_v33, %v4347_v5 }
 0x2dc   : > { %v1721_v48 = vadd.f32 %v1719_v63, %v1715_v34  ;;  %v1739_v35 = vadd.f32 %v1737_v1, %v1733_v13  ;;  %v1757_v16 = vadd.f32 %v1755_v57, %v1751_v2  ;;  %v1775_v45 = vadd.f32 %v1773_v61, %v1769_v0 }
 0x2dd   : > { %v1720_v22 = vadd.f32 %v1718_v31, %v1714_v25  ;;  %v1738_v6 = vadd.f32 %v1736_v44, %v1732_v52  ;;  %v1756_v62 = vadd.f32 %v1754_v47, %v1750_v28  ;;  %v1774_v29 = vadd.f32 %v1772_v36, %v1768_v37 }
 0x2de   : > { %v5548_v39 = vstv %s5538_s19  ;;  %v5549_v12 = vstv %s5540_s23  ;;  %v5551_v60 = vstv %s5542_s26  ;;  %v5553_v21 = vstv %s5544_s24  ;;  %s5562_s19 = sld [smem:[#allocation113_spill]]  ;;  %s5564_s23 = sld [smem:[#allocation115_spill]] }
 0x2df   : > { %v1877_v15 = vmul.f32 %v4301_v9, %v5548_v39  ;;  %v1895_v10 = vmul.f32 %v4301_v9, %v5549_v12  ;;  %v1913_v5 = vmul.f32 %v4301_v9, %v5551_v60  ;;  %v1931_v54 = vmul.f32 %v4301_v9, %v5553_v21  ;;  %s5566_s26 = sld [smem:[#allocation116_spill]]  ;;  %s5573_s24 = sld [smem:[#allocation114_spill]] }
 0x2e0   : > { %v5555_v34 = vmov %v5548_v39  ;;  %v5557_v2 = vmov %v5549_v12  ;;  %v5558_v25 = vmov %v5551_v60  ;;  %v5559_v28 = vmov %v5553_v21 }
 0x2e1   : > { %v1876_v13 = vmul.f32 %v5555_v34, %v4317_v18  ;;  %v1894_v0 = vmul.f32 %v5557_v2, %v4317_v18  ;;  %v1912_v52 = vmul.f32 %v5558_v25, %v4317_v18  ;;  %v1930_v37 = vmul.f32 %v5559_v28, %v4317_v18 }
 0x2e2   : > { %v1879_v50 = vadd.f32 %v1877_v15, %v1721_v48  ;;  %v1897_v63 = vadd.f32 %v1895_v10, %v1739_v35  ;;  %v1915_v9 = vadd.f32 %v1913_v5, %v1757_v16  ;;  %v1933_v27 = vadd.f32 %v1931_v54, %v1775_v45 }
 0x2e3   : > { %v1878_v1 = vadd.f32 %v1876_v13, %v1720_v22  ;;  %v1896_v19 = vadd.f32 %v1894_v0, %v1738_v6  ;;  %v1914_v57 = vadd.f32 %v1912_v52, %v1756_v62  ;;  %v1932_v26 = vadd.f32 %v1930_v37, %v1774_v29 }
 0x2e4   : > { %v5560_v61 = vstv %s5550_s2  ;;  %v5561_v31 = vstv %s5552_s5  ;;  %v5563_v44 = vstv %s5554_s15  ;;  %v5565_v24 = vstv %s5556_s27  ;;  %s5586_s2 = sld [smem:[#allocation122_spill]] }
 0x2e5   : > { %v1883_v41 = vmul.f32 %v4333_v30, %v5560_v61  ;;  %v1901_v23 = vmul.f32 %v4333_v30, %v5561_v31  ;;  %v1919_v18 = vmul.f32 %v4333_v30, %v5563_v44  ;;  %v1937_v47 = vmul.f32 %v4333_v30, %v5565_v24 }
 0x2e6   : > { %v5567_v33 = vmov %v5560_v61  ;;  %v5568_v48 = vmov %v5561_v31  ;;  %v5569_v16 = vmov %v5563_v44  ;;  %v5570_v22 = vmov %v5565_v24 }
 0x2e7   : > { %v1882_v36 = vmul.f32 %v5567_v33, %v4349_v42  ;;  %v1900_v35 = vmul.f32 %v5568_v48, %v4349_v42  ;;  %v1918_v45 = vmul.f32 %v5569_v16, %v4349_v42  ;;  %v1936_v6 = vmul.f32 %v5570_v22, %v4349_v42 }
 0x2e8   : > { %v1885_v62 = vadd.f32 %v1883_v41, %v1879_v50  ;;  %v1903_v29 = vadd.f32 %v1901_v23, %v1897_v63  ;;  %v1921_v30 = vadd.f32 %v1919_v18, %v1915_v9  ;;  %v1939_v39 = vadd.f32 %v1937_v47, %v1933_v27 }
 0x2e9   : > { %v1884_v15 = vadd.f32 %v1882_v36, %v1878_v1  ;;  %v1902_v12 = vadd.f32 %v1900_v35, %v1896_v19  ;;  %v1920_v10 = vadd.f32 %v1918_v45, %v1914_v57  ;;  %v1938_v60 = vadd.f32 %v1936_v6, %v1932_v26 }
 0x2ea   : > { %v5571_v5 = vstv %s5562_s19  ;;  %v5572_v54 = vstv %s5564_s23  ;;  %v5574_v13 = vstv %s5566_s26  ;;  %v5575_v2 = vstv %s5353_s29  ;;  %s5584_s29 = sld [smem:[#allocation121_spill]]  ;;  %s3281_s19 = smov [#allocation7]  }
 0x2eb   : > { %v1889_v21 = vmul.f32 %v4363_v17, %v5571_v5  ;;  %v1907_v34 = vmul.f32 %v4363_v17, %v5572_v54  ;;  %v1925_v42 = vmul.f32 %v4363_v17, %v5574_v13  ;;  %v1943_v0 = vmul.f32 %v4363_v17, %v5575_v2  ;;  %s3193_s23 = sshll.u32 %s3281_s19, 4  ;;  %s3194_s23 = int_to_ptr.vmem [resolvable:$false] %s3193_s23 }
 0x2ec   : > { %v5576_v25 = vmov %v5571_v5  ;;  %v5577_v28 = vmov %v5572_v54  ;;  %v5578_v50 = vmov %v5574_v13  ;;  %v5579_v9 = vmov %v5575_v2  ;;  %s3195_s26 = scalar_lea.vmem %s3194_s23, 2048 }
 0x2ed   : > { %v1888_v52 = vmul.f32 %v5576_v25, %v4379_v49  ;;  %v1906_v37 = vmul.f32 %v5577_v28, %v4379_v49  ;;  %v1924_v63 = vmul.f32 %v5578_v50, %v4379_v49  ;;  %v1942_v27 = vmul.f32 %v5579_v9, %v4379_v49 }
 0x2ee   : > { %v1891_v1 = vadd.f32 %v1889_v21, %v1885_v62  ;;  %v1909_v19 = vadd.f32 %v1907_v34, %v1903_v29  ;;  %v1927_v17 = vadd.f32 %v1925_v42, %v1921_v30  ;;  %v1945_v57 = vadd.f32 %v1943_v0, %v1939_v39 }
 0x2ef   : > { %v1890_v26 = vadd.f32 %v1888_v52, %v1884_v15  ;;  %v1908_v61 = vadd.f32 %v1906_v37, %v1902_v12  ;;  %v1926_v41 = vadd.f32 %v1924_v63, %v1920_v10  ;;  %v1944_v31 = vadd.f32 %v1942_v27, %v1938_v60 }
 0x2f0   : > { %v5580_v23 = vstv %s5573_s24  ;;  %v5581_v18 = vstv %s5354_s4  ;;  %v5582_v47 = vstv %s3899_s21  ;;  %v5583_v33 = vstv %s3901_s8  ;;  %s5592_s4 = sld [smem:[#allocation123_spill]]  ;;  %s5594_s21 = sld [smem:[#allocation125_spill]] }
 0x2f1   : > { %v2044_v44 = vmul.f32 %v4365_v20, %v5580_v23  ;;  %v2062_v24 = vmul.f32 %v4365_v20, %v5581_v18  ;;  %v2080_v49 = vmul.f32 %v4365_v20, %v5582_v47  ;;  %v2098_v36 = vmul.f32 %v4365_v20, %v5583_v33  ;;  %s5596_s8 = sld [smem:[#allocation126_spill]] }
 0x2f2   : > { %v5585_v48 = vmov %v5580_v23  ;;  %v5587_v16 = vmov %v5581_v18  ;;  %v5588_v22 = vmov %v5582_v47  ;;  %v5589_v62 = vmov %v5583_v33 }
 0x2f3   : > { %v2043_v35 = vmul.f32 %v5585_v48, %v4381_v51  ;;  %v2061_v45 = vmul.f32 %v5587_v16, %v4381_v51  ;;  %v2079_v6 = vmul.f32 %v5588_v22, %v4381_v51  ;;  %v2097_v29 = vmul.f32 %v5589_v62, %v4381_v51 }
 0x2f4   : > { %v2046_v30 = vadd.f32 %v2044_v44, %v1891_v1  ;;  %v2064_v39 = vadd.f32 %v2062_v24, %v1909_v19  ;;  %v2082_v20 = vadd.f32 %v2080_v49, %v1927_v17  ;;  %v2100_v15 = vadd.f32 %v2098_v36, %v1945_v57 }
 0x2f5   : > { %v2045_v12 = vadd.f32 %v2043_v35, %v1890_v26  ;;  %v2063_v10 = vadd.f32 %v2061_v45, %v1908_v61  ;;  %v2081_v60 = vadd.f32 %v2079_v6, %v1926_v41  ;;  %v2099_v5 = vadd.f32 %v2097_v29, %v1944_v31 }
 0x2f6   : > { %v5590_v21 = vstv %s5356_s10  ;;  %v5591_v34 = vstv %s5357_s7  ;;  %v5593_v42 = vstv %s5584_s29  ;;  %v5595_v2 = vstv %s5586_s2  ;;  %s5655_s7 = sld [smem:[#allocation18_spill]] }
 0x2f7   : > { %v2050_v54 = vmul.f32 %v4395_v55, %v5590_v21  ;;  %v2068_v13 = vmul.f32 %v4395_v55, %v5591_v34  ;;  %v2086_v51 = vmul.f32 %v4395_v55, %v5593_v42  ;;  %v2104_v0 = vmul.f32 %v4395_v55, %v5595_v2 }
 0x2f8   : > { %v5597_v25 = vmov %v5590_v21  ;;  %v5598_v28 = vmov %v5591_v34  ;;  %v5599_v50 = vmov %v5593_v42  ;;  %v5600_v9 = vmov %v5595_v2 }
 0x2f9   : > { %v2049_v52 = vmul.f32 %v5597_v25, %v4411_v8  ;;  %v2067_v37 = vmul.f32 %v5598_v28, %v4411_v8  ;;  %v2085_v63 = vmul.f32 %v5599_v50, %v4411_v8  ;;  %v2103_v27 = vmul.f32 %v5600_v9, %v4411_v8 }
 0x2fa   : > { %v2052_v1 = vadd.f32 %v2050_v54, %v2046_v30  ;;  %v2070_v19 = vadd.f32 %v2068_v13, %v2064_v39  ;;  %v2088_v55 = vadd.f32 %v2086_v51, %v2082_v20  ;;  %v2106_v17 = vadd.f32 %v2104_v0, %v2100_v15 }
 0x2fb   : > { %v2051_v57 = vadd.f32 %v2049_v52, %v2045_v12  ;;  %v2069_v26 = vadd.f32 %v2067_v37, %v2063_v10  ;;  %v2087_v61 = vadd.f32 %v2085_v63, %v2081_v60  ;;  %v2105_v41 = vadd.f32 %v2103_v27, %v2099_v5 }
 0x2fc   : > { %v5601_v31 = vstv %s5592_s4  ;;  %v5602_v44 = vstv %s5594_s21  ;;  %v5603_v24 = vstv %s5596_s8  ;;  %v5604_v47 = vstv %s3939_s9  ;;  %p5657_p10 = scmp.ne.s32.totalorder %s5655_s7, 0 }
 0x2fd   : > { %v2056_v23 = vmul.f32 %v4427_v40, %v5601_v31  ;;  %v2074_v18 = vmul.f32 %v4427_v40, %v5602_v44  ;;  %v2092_v8 = vmul.f32 %v4427_v40, %v5603_v24  ;;  %v2110_v49 = vmul.f32 %v4427_v40, %v5604_v47 }
 0x2fe   : > { %v5605_v33 = vmov %v5601_v31  ;;  %v5606_v48 = vmov %v5602_v44  ;;  %v5607_v16 = vmov %v5603_v24  ;;  %v5608_v22 = vmov %v5604_v47 }
 0x2ff   : > { %v2055_v36 = vmul.f32 %v5605_v33, %v4443_v32  ;;  %v2073_v35 = vmul.f32 %v5606_v48, %v4443_v32  ;;  %v2091_v45 = vmul.f32 %v5607_v16, %v4443_v32  ;;  %v2109_v6 = vmul.f32 %v5608_v22, %v4443_v32 }
 0x300   : > { %v2058_v62 = vadd.f32 %v2056_v23, %v2052_v1  ;;  %v2076_v29 = vadd.f32 %v2074_v18, %v2070_v19  ;;  %v2094_v40 = vadd.f32 %v2092_v8, %v2088_v55  ;;  %v2112_v30 = vadd.f32 %v2110_v49, %v2106_v17 }
 0x301   : > { %v2057_v39 = vadd.f32 %v2055_v36, %v2051_v57  ;;  %v2075_v20 = vadd.f32 %v2073_v35, %v2069_v26  ;;  %v2093_v15 = vadd.f32 %v2091_v45, %v2087_v61  ;;  %v2111_v12 = vadd.f32 %v2109_v6, %v2105_v41 }
 0x302   : > { %v5609_v10 = vstv %s5361_s3  ;;  %v5610_v5 = vstv %s3941_s12  ;;  %v5611_v54 = vstv %s3947_s13  ;;  %v5612_v34 = vstv %s3949_s18  ;;  %s5625_s3 = sld [smem:[#allocation133_spill]]  ;;  %s5629_s18 = sld [smem:[#allocation134_spill]] }
 0x303   : > { %v2215_v60 = vmul.f32 %v4397_v56, %v5609_v10  ;;  %v2233_v21 = vmul.f32 %v4397_v56, %v5610_v5  ;;  %v2251_v32 = vmul.f32 %v4397_v56, %v5611_v54  ;;  %v2269_v13 = vmul.f32 %v4397_v56, %v5612_v34  ;;  %s5642_s12 = sld [smem:[#allocation118_spill]] }
 0x304   : > { %v5613_v42 = vmov %v5609_v10  ;;  %v5614_v2 = vmov %v5610_v5  ;;  %v5615_v25 = vmov %v5611_v54  ;;  %v5616_v28 = vmov %v5612_v34  ;;  %s4857_s13 = sld [smem:[#allocation2 + $0x6b]] }
 0x305   : > { %v2214_v51 = vmul.f32 %v5613_v42, %v4413_v4  ;;  %v2232_v0 = vmul.f32 %v5614_v2, %v4413_v4  ;;  %v2250_v52 = vmul.f32 %v5615_v25, %v4413_v4  ;;  %v2268_v37 = vmul.f32 %v5616_v28, %v4413_v4 }
 0x306   : > { %v2217_v50 = vadd.f32 %v2215_v60, %v2058_v62  ;;  %v2235_v63 = vadd.f32 %v2233_v21, %v2076_v29  ;;  %v2253_v56 = vadd.f32 %v2251_v32, %v2094_v40  ;;  %v2271_v9 = vadd.f32 %v2269_v13, %v2112_v30 }
 0x307   : > { %v2216_v27 = vadd.f32 %v2214_v51, %v2057_v39  ;;  %v2234_v1 = vadd.f32 %v2232_v0, %v2075_v20  ;;  %v2252_v19 = vadd.f32 %v2250_v52, %v2093_v15  ;;  %v2270_v55 = vadd.f32 %v2268_v37, %v2111_v12 }
 0x308   : > { %v5617_v17 = vstv %s3955_s16  ;;  %v5618_v26 = vstv %s5363_s14  ;;  %v5619_v41 = vstv %s5364_s22  ;;  %v5620_v31 = vstv %s5365_s30  ;;  %s5632_s22 = sld [smem:[#allocation117_spill]]  ;;  %s5638_s30 = sld [smem:[#allocation12_spill]] }
 0x309   : > { %v2221_v57 = vmul.f32 %v4429_v14, %v5617_v17  ;;  %v2239_v61 = vmul.f32 %v4429_v14, %v5618_v26  ;;  %v2257_v4 = vmul.f32 %v4429_v14, %v5619_v41  ;;  %v2275_v23 = vmul.f32 %v4429_v14, %v5620_v31  ;;  %s4859_s14 = sld [smem:[#allocation2 + $0x8f]]  ;;  %s5654_s16 = sld [smem:[#allocation14_spill]] }
 0x30a   : > { %v5621_v44 = vmov %v5617_v17  ;;  %v5622_v24 = vmov %v5618_v26  ;;  %v5623_v47 = vmov %v5619_v41  ;;  %v5624_v33 = vmov %v5620_v31 }
 0x30b   : > { %v2220_v18 = vmul.f32 %v5621_v44, %v4445_v53  ;;  %v2238_v8 = vmul.f32 %v5622_v24, %v4445_v53  ;;  %v2256_v49 = vmul.f32 %v5623_v47, %v4445_v53  ;;  %v2274_v36 = vmul.f32 %v5624_v33, %v4445_v53 }
 0x30c   : > { %v2223_v48 = vadd.f32 %v2221_v57, %v2217_v50  ;;  %v2241_v35 = vadd.f32 %v2239_v61, %v2235_v63  ;;  %v2259_v16 = vadd.f32 %v2257_v4, %v2253_v56  ;;  %v2277_v45 = vadd.f32 %v2275_v23, %v2271_v9 }
 0x30d   : > { %v2222_v14 = vadd.f32 %v2220_v18, %v2216_v27  ;;  %v5626_v22 = vstv %s5366_s0  ;;  %v2240_v40 = vadd.f32 %v2238_v8, %v2234_v1  ;;  %v5628_v30 = vstv %s5367_s17  ;;  %s4843_s0 = sld [smem:[#allocation2 + $0x47]] }
 0x30e   : > { %v2226_v6 = vmul.f32 %v5626_v22, %v4475_v46  ;;  %v5627_v62 = vmov %v5626_v22  ;;  %v2244_v39 = vmul.f32 %v5628_v30, %v4475_v46  ;;  %v5630_v53 = vmov %v5628_v30 }
 0x30f   : > { %v2227_v29 = vmul.f32 %v4459_v59, %v5627_v62  ;;  %v2245_v20 = vmul.f32 %v4459_v59, %v5630_v53  ;;  %v2258_v15 = vadd.f32 %v2256_v49, %v2252_v19  ;;  %v5631_v12 = vstv %s5368_s28  ;;  %s4841_s28 = sld [smem:[#allocation2 + $0x23]] }
 0x310   : > { %v2262_v10 = vmul.f32 %v5631_v12, %v4475_v46  ;;  %v2228_v60 = vadd.f32 %v2226_v6, %v2222_v14  ;;  %v5633_v21 = vmov %v5631_v12  ;;  %v2276_v32 = vadd.f32 %v2274_v36, %v2270_v55 }
 0x311   : > { %v2229_v5 = vadd.f32 %v2227_v29, %v2223_v48  ;;  %v2263_v54 = vmul.f32 %v4459_v59, %v5633_v21  ;;  %v2246_v34 = vadd.f32 %v2244_v39, %v2240_v40  ;;  %v2247_v13 = vadd.f32 %v2245_v20, %v2241_v35 }
 0x312   : > { %v2264_v42 = vadd.f32 %v2262_v10, %v2258_v15  ;;  %v5634_v51 = vstv %s5625_s3  ;;  %v5636_v28 = vstv %s3987_s1  ;;  %v5637_v50 = vstv %s5629_s18  ;;  %s272_s1 = sand.u32 1, %s5638_s30  }
 0x313   : > { %v2280_v2 = vmul.f32 %v5634_v51, %v4475_v46  ;;  %v2265_v0 = vadd.f32 %v2263_v54, %v2259_v16  ;;  %v5635_v25 = vmov %v5634_v51  ;;  %v2385_v37 = vmul.f32 %v4461_v43, %v5636_v28  ;;  %s4924_s15 = scalar_lea.sflag [#allocation3], %s272_s1 }
 0x314   : > { %v2281_v52 = vmul.f32 %v4459_v59, %v5635_v25  ;;  %v2403_v63 = vmul.f32 %v4461_v43, %v5637_v50  ;;  %v5639_v9 = vstv %s3995_s6  ;;  %v5640_v27 = vstv %s5632_s22  ;;  %s2610_s6 = sshll.u32 %s272_s1, 6 }
 0x315   : > { %v2282_v56 = vadd.f32 %v2280_v2, %v2276_v32  ;;  %v2421_v46 = vmul.f32 %v4461_v43, %v5639_v9  ;;  %v2439_v59 = vmul.f32 %v4461_v43, %v5640_v27  ;;  %v5641_v1 = vmov %v5636_v28  ;;  %s274_s17 = scalar_lea.vmem [#allocation7], %s2610_s6 }
 0x316   : > { %v2384_v19 = vmul.f32 %v5641_v1, %v4477_v38  ;;  %v2283_v55 = vadd.f32 %v2281_v52, %v2277_v45  ;;  %v2387_v17 = vadd.f32 %v2385_v37, %v2229_v5  ;;  %v2405_v57 = vadd.f32 %v2403_v63, %v2247_v13 }
 0x317   : > { %v5643_v26 = vmov %v5637_v50  ;;  %v2423_v41 = vadd.f32 %v2421_v46, %v2265_v0  ;;  %v5644_v4 = vmov %v5639_v9  ;;  %v5645_v23 = vmov %v5640_v27 }
 0x318   : > { %v2402_v61 = vmul.f32 %v5643_v26, %v4477_v38  ;;  %v2386_v43 = vadd.f32 %v2384_v19, %v2228_v60  ;;  %v2420_v31 = vmul.f32 %v5644_v4, %v4477_v38  ;;  %v2438_v44 = vmul.f32 %v5645_v23, %v4477_v38 }
 0x319   : > { %v2441_v18 = vadd.f32 %v2439_v59, %v2283_v55  ;;  %v5646_v8 = vstv %s4003_s11  ;;  %v5647_v49 = vstv %s5642_s12  ;;  %v5648_v35 = vstv %s4011_s25  ;;  %s2490_s25 = sshll.u32 %s274_s17, 4  ;;  %s5656_s11 = sld [smem:[#allocation140_spill]]  ;;  %s4915_s25 = int_to_ptr.vmem [resolvable:$true] %s2490_s25 }
 0x31a   : > { %v2404_v24 = vadd.f32 %v2402_v61, %v2246_v34  ;;  %v2391_v47 = vmul.f32 %v4491_v58, %v5646_v8  ;;  %v2409_v33 = vmul.f32 %v4491_v58, %v5647_v49  ;;  %v2422_v36 = vadd.f32 %v2420_v31, %v2264_v42  ;;  %s3189_s27 = scalar_lea.vmem %s4915_s25, 1024  ;;  %p3196_p1 = scmp.lt.s32.totalorder %s4915_s25, %s3194_s23 }
 0x31b   : > { %v2440_v48 = vadd.f32 %v2438_v44, %v2282_v56  ;;  %v2427_v16 = vmul.f32 %v4491_v58, %v5648_v35  ;;  %v5649_v45 = vstv %s5371_s20  ;;  %v5650_v6 = vmov %v5646_v8  ;;  %s2847_s20 = sshll.u32 %s5654_s16, 10  ;;  %p3190_p8 = scmp.ne.s32.totalorder %s4915_s25, %s3189_s27 }
 0x31c   : > { %v2445_v38 = vmul.f32 %v4491_v58, %v5649_v45  ;;  %v2393_v14 = vadd.f32 %v2391_v47, %v2387_v17  ;;  %v2411_v22 = vadd.f32 %v2409_v33, %v2405_v57  ;;  %v2390_v62 = vmul.f32 %v5650_v6, %v4505_v3  ;;  %p3197_p6 = scmp.lt.s32.totalorder %s3195_s26, %s3189_s27 }
 0x31d   : > { %v5651_v29 = vmov %v5647_v49  ;;  %v2429_v30 = vadd.f32 %v2427_v16, %v2423_v41  ;;  %v5652_v53 = vmov %v5648_v35  ;;  %v5653_v15 = vmov %v5649_v45  ;;  %p3191_p11 = pnand %p3190_p8, %p5657_p10 }
 0x31e   : > { %v2408_v40 = vmul.f32 %v5651_v29, %v4505_v3  ;;  %v2447_v39 = vadd.f32 %v2445_v38, %v2441_v18  ;;  %v2426_v20 = vmul.f32 %v5652_v53, %v4505_v3  ;;  %v2444_v58 = vmul.f32 %v5653_v15, %v4505_v3  ;;  %p3198_p7 = por %p3197_p6, %p3196_p1 }
 0x31f   : > { %v2392_v12 = vadd.f32 %v2390_v62, %v2386_v43  ;;  %v2395_v10 = vstv %s4841_s28  ;;  %v2413_v5 = vstv %s4843_s0  ;;  %v2431_v42 = vstv %s4857_s13  ;;  %s4913_s5 = scalar_lea.hbm %s5656_s11, %s2847_s20  ;;  %p3192_p13 = pneg %p3191_p11 }
 0x320   : > { %v2410_v60 = vadd.f32 %v2408_v40, %v2404_v24  ;;  %v2396_v21 = vmul.f32 %v2395_v10, %v4533_v7  ;;  %v2397_v54 = vmul.f32 %v4519_v11, %v2395_v10  ;;  %v2414_v32 = vmul.f32 %v2413_v5, %v4533_v7 }
 0x321   : > { %v2415_v34 = vmul.f32 %v4519_v11, %v2413_v5  ;;  %v2428_v13 = vadd.f32 %v2426_v20, %v2422_v36  ;;  %v2446_v51 = vadd.f32 %v2444_v58, %v2440_v48  ;;  %v2449_v2 = vstv %s4859_s14  ;;  %p3199_p9 = pnand %p3198_p7, %p3192_p13 }
 0x322   : > { %v2398_v0 = vadd.f32 %v2396_v21, %v2392_v12  ;;  %v2399_v25 = vadd.f32 %v2397_v54, %v2393_v14  ;;  %v2416_v3 = vadd.f32 %v2414_v32, %v2410_v60  ;;  %v2432_v28 = vmul.f32 %v2431_v42, %v4533_v7 }
 0x323   : > { %v2417_v52 = vadd.f32 %v2415_v34, %v2411_v22  ;;  %v2433_v37 = vmul.f32 %v4519_v11, %v2431_v42  ;;  %v2450_v50 = vmul.f32 %v2449_v2, %v4533_v7  ;;  %v2451_v63 = vmul.f32 %v4519_v11, %v2449_v2 }
 0x324   : > { %v2454_v56 = vmax.f32 %v2398_v0, 0.0  ;;  %v2455_v9 = vmax.f32 %v2399_v25, 0.0  ;;  %v2459_v46 = vmax.f32 %v2416_v3, 0.0  ;;  %v2434_v27 = vadd.f32 %v2432_v28, %v2428_v13 }
 0x325   : > { %v2435_v59 = vadd.f32 %v2433_v37, %v2429_v30  ;;  %v2452_v1 = vadd.f32 %v2450_v50, %v2446_v51  ;;  %v2453_v19 = vadd.f32 %v2451_v63, %v2447_v39  ;;  %v2460_v55 = vmax.f32 %v2417_v52, 0.0 }
 0x326   : > { %2457 = vst.msk [vmem:[%s274_s17] sm:$0xff] %vm2456_vm1, %v2454_v56  ;;  %2458 = vst.msk [vmem:[%s274_s17 + $0x8] sm:$0xff] %vm2456_vm1, %v2455_v9  ;;  %v2464_v11 = vmax.f32 %v2434_v27, 0.0 }
 0x327   : > { %2835 = vst.msk [vmem:[%s274_s17 + $0x10] sm:$0xff] %vm2456_vm1, %v2459_v46  ;;  %v2465_v7 = vmax.f32 %v2435_v59, 0.0  ;;  %v2469_v17 = vmax.f32 %v2452_v1, 0.0  ;;  %v2470_v57 = vmax.f32 %v2453_v19, 0.0  ;;  %2836 = vst.msk [vmem:[%s274_s17 + $0x18] sm:$0xff] %vm2456_vm1, %v2460_v55 }
 0x328   : > { %2837 = vst.msk [vmem:[%s274_s17 + $0x20] sm:$0xff] %vm2456_vm1, %v2464_v11 }
 0x329   : > { %2838 = vst.msk [vmem:[%s274_s17 + $0x28] sm:$0xff] %vm2456_vm1, %v2465_v7  ;;  %2839 = vst.msk [vmem:[%s274_s17 + $0x30] sm:$0xff] %vm2456_vm1, %v2469_v17 }
 0x32a   : > { %2840 = vst.msk [vmem:[%s274_s17 + $0x38] sm:$0xff] %vm2456_vm1, %v2470_v57 }
 0x32b   : > { %3202 = shalt.err (!%p3199_p9)
}
 0x32c   : > { %s3203_s24 = scalar_lea.hbm %s4913_s5, 1024  ;;  %s3207_s4 = scalar_lea.hbm %s5656_s11, 2048 }
 0x32d   : > { %p3204_p12 = scmp.ne.s32.totalorder %s4913_s5, %s3203_s24  ;;  %p3208_p3 = scmp.lt.u32.totalorder %s4913_s5, %s5656_s11 }
 0x32e   : > { %p3209_p5 = scmp.lt.u32.totalorder %s3207_s4, %s3203_s24  ;;  %p3211_p8 = scmp.lt.u32.totalorder %s3203_s24, %s4913_s5 }
 0x32f   : > { %p3205_p0 = pnand %p3204_p12, %p5657_p10 }
 0x330   : > { %p3210_p4 = por %p3209_p5, %p3208_p3 }
 0x331   : > { %p3206_p2 = pneg %p3205_p0 }
 0x332   : > { %p3212_p11 = por %p3211_p8, %p3210_p4 }
 0x334   : > { %p3213_p13 = pnand %p3212_p11, %p3206_p2 }
 0x336   : > { %3216 = shalt.err (!%p3213_p13)
}
 0x337   : > { %s3282_s3 = smov 128   ;;  %s3283_s18 = smov 8  }
 0x338   : > { %3087 = dma.vmem_to_hbm [thread:$0]  (%p5657_p10), %s4915_s25, 1024, %s4913_s5, %s4924_s15, %s3282_s3, %s3282_s3, %s3283_s18  }
 0x339 PF: > { %s5658_s22 = sld [smem:[#allocation16_spill]]  ;;  %s5659_s28 = sld [smem:[#allocation11_spill]] }
 0x33a   : > { %s5660_s30 = sld [smem:[#allocation19_spill]] }
 0x33f   : > { %p3104_p1 = scmp.ge.s32.totalorder %s5658_s22, 2  ;;  %s2505_s0 = sand.u32 1, %s5659_s28  }
 0x340   : > { %p5661_p6 = scmp.ne.s32.totalorder %s5660_s30, 0  ;;  %s2506_s12 = scalar_lea.sflag [#allocation3], %s2505_s0 }
 0x342   : > { %p3097_p7 = pnand %p3104_p1, %p5661_p6 }
 0x344   : > { %3250 = dma.done.wait (!%p3097_p7), %s2506_s12, 1024  }
 0x345   : > { %3252 = vsyncadd (!%p3097_p7), %s2506_s12, 4294966272  ;;  %s20_s23 = sadd.s32 1, %s5658_s22   ;;  %s5662_s18 = sld [smem:[#allocation12_spill]] }
 0x346   : > { %p17_p9 = scmp.ge.s32.totalorder %s20_s23, 4   ;;  %s5663_s19 = sld [smem:[#allocation13_spill]] }
 0x347   : > { %s5664_s20 = sld [smem:[#allocation20_spill]]  ;;  %s5665_s21 = sld [smem:[#allocation15_spill]] }
 0x348   : > { %s5666_s22 = sld [smem:[#allocation17_spill]]  ;;  %19 = sbr.rel (!%p17_p9) target bundleno = 13 (0xd), region = 90 }
 0x34f   :  { %2511 = vsyncpa [#allocation3], 1 }
 0x350   :  { %2513 = vsyncpa [#allocation3 + $0x1], 1 }
 0x351   :  { %2514 = vsyncpa [#allocation4], 1 }
 0x352   :  { %2516 = vsyncpa [#allocation4 + $0x1], 1 }
 0x353   :  { %2517 = vsyncpa [#allocation6], 1 }

</bundles_post_ra>
